<compile_context>
chip_gen: v6e
topology: v6e:2x2x1
jax: 0.10.0
libtpu: 0.0.40
codegen_flags: <defaults>
</compile_context>

<pallas_src>
import numpy as np

import jax
import jax.numpy as jnp
from jax import lax
from jax.experimental import pallas as pl
from jax.experimental.pallas import tpu as pltpu

_LANES = 128


# ---------------------------------------------------------------------------
# The single fused kernel
# ---------------------------------------------------------------------------

def _net_kernel(x_ref, c1w_ref, c1b_ref, c2w_ref, c2b_ref,
                f1w_ref, f1b_ref, f2w_ref, f2b_ref, f3w_ref, f3b_ref, o_ref):
    """One batch tile per grid step.

    x_ref:   (Hin, TB, Win*Cin)     images, batch on sublanes, (w,c) on lanes
    c1w_ref: (kh, Win*Cin, 256)     banded conv1 filters, cols [even|odd] ow,
                                    each half zero-padded to 128 lanes
    c1b_ref: (1, 128)               conv1 bias tiled over pooled ow, padded
    c2w_ref: (kh, 128, 256)         banded conv2 filters (input rows 128-lane)
    c2b_ref: (1, 128)
    f1w_ref: (5, 128, 128)          fc1 split into 5 height chunks, padded
    f1b_ref/f2w_ref/f2b_ref/f3w_ref/f3b_ref: padded FC params
    o_ref:   (TB, 128)              logits padded to 128 lanes
    """
    hin, tb, wc = x_ref.shape
    kh, _, n1 = c1w_ref.shape
    oh1 = hin - kh + 1                       # 28
    hp1 = oh1 // 2                           # 14
    half1 = n1 // 2                          # 128

    x = x_ref[...]                           # (32, TB, 96)

    # ---- conv1: banded matmul over kh taps, M folded to oh1*TB -------------
    acc = jnp.dot(x[0:oh1].reshape(oh1 * tb, wc), c1w_ref[0],
                  preferred_element_type=jnp.float32)
    for i in range(1, kh):                   # static, unrolled (kh = 5)
        acc = acc + jnp.dot(x[i:i + oh1].reshape(oh1 * tb, wc), c1w_ref[i],
                            preferred_element_type=jnp.float32)
    # 2x2 max-pool: width = max of [even|odd] vreg-aligned 128-lane halves,
    # height = max of adjacent row pairs (value-level, no scratch).
    acc = jnp.maximum(acc[:, :half1], acc[:, half1:])          # (oh1*TB, 128)
    acc = acc.reshape(hp1, 2, tb, half1)
    acc = jnp.maximum(acc[:, 0], acc[:, 1])                    # (14, TB, 128)
    # bias + ReLU commute with max-pool (per-channel bias, monotone) -> once.
    y1 = jnp.maximum(acc + c1b_ref[...], 0.0)

    # ---- conv2 --------------------------------------------------------------
    kh2, k2, n2 = c2w_ref.shape
    oh2 = hp1 - kh2 + 1                      # 10
    hp2 = oh2 // 2                           # 5
    half2 = n2 // 2                          # 128
    acc = jnp.dot(y1[0:oh2].reshape(oh2 * tb, k2), c2w_ref[0],
                  preferred_element_type=jnp.float32)
    for i in range(1, kh2):
        acc = acc + jnp.dot(y1[i:i + oh2].reshape(oh2 * tb, k2), c2w_ref[i],
                            preferred_element_type=jnp.float32)
    acc = jnp.maximum(acc[:, :half2], acc[:, half2:])          # (oh2*TB, 128)
    acc = acc.reshape(hp2, 2, tb, half2)
    acc = jnp.maximum(acc[:, 0], acc[:, 1])                    # (5, TB, 128)
    y2 = jnp.maximum(acc + c2b_ref[...], 0.0)

    # ---- fc1 (accumulated over the 5 height chunks: flatten-free) + ReLU ----
    h = jnp.dot(y2[0], f1w_ref[0], preferred_element_type=jnp.float32)
    for i in range(1, hp2):
        h = h + jnp.dot(y2[i], f1w_ref[i], preferred_element_type=jnp.float32)
    h = jnp.maximum(h + f1b_ref[...], 0.0)                     # (TB, 128)
    # ---- fc2 + ReLU ---------------------------------------------------------
    h = jnp.maximum(jnp.dot(h, f2w_ref[...],
                            preferred_element_type=jnp.float32) + f2b_ref[...],
                    0.0)
    # ---- fc3 (lane-dense padded logits) -------------------------------------
    o_ref[...] = (jnp.dot(h, f3w_ref[...],
                          preferred_element_type=jnp.float32)
                  + f3b_ref[...]).astype(o_ref.dtype)


# ---------------------------------------------------------------------------
# pallas_call wrapper
# ---------------------------------------------------------------------------

def _round_up(x, m):
    return (x + m - 1) // m * m


def _pick_batch_tile(b8):
    """Batch tile: multiple of 8, <= 32, >= 2 grid steps when batch allows
    (so both v7x TensorCores get work via dimension_semantics='parallel')."""
    tb = min(32, b8)
    if b8 // tb < 2 and b8 >= 16:
        tb = (b8 // 2) // 8 * 8
    return max(tb, 8)


def _fused_net_call(xr, prep, tb):
    hin, bp, wc = xr.shape
    grid = (bp // tb,)

    c1w, c1b = prep["conv1_w"], prep["conv1_b"]
    c2w, c2b = prep["conv2_w"], prep["conv2_b"]
    f1w, f1b = prep["fc1_w"], prep["fc1_b"]
    f2w, f2b = prep["fc2_w"], prep["fc2_b"]
    f3w, f3b = prep["fc3_w"], prep["fc3_b"]
    weights = (c1w, c1b, c2w, c2b, f1w, f1b, f2w, f2b, f3w, f3b)

    kh, k1, n1 = c1w.shape
    oh1 = hin - kh + 1
    hp1 = oh1 // 2
    _, k2, n2 = c2w.shape
    oh2 = hp1 - kh + 1
    hp2 = oh2 // 2
    flops = 2 * bp * (kh * oh1 * k1 * n1 + kh * oh2 * k2 * n2
                      + hp2 * _LANES * _LANES + 2 * _LANES * _LANES)
    bytes_accessed = 4 * (int(xr.size) + bp * _LANES
                          + sum(int(w.size) for w in weights))

    return pl.pallas_call(
        _net_kernel,
        out_shape=jax.ShapeDtypeStruct((bp, _LANES), jnp.float32),
        grid=grid,
        in_specs=[
            pl.BlockSpec((hin, tb, wc), lambda i: (0, i, 0)),   # streamed images
            pl.BlockSpec(c1w.shape, lambda i: (0, 0, 0)),       # weights resident
            pl.BlockSpec(c1b.shape, lambda i: (0, 0)),
            pl.BlockSpec(c2w.shape, lambda i: (0, 0, 0)),
            pl.BlockSpec(c2b.shape, lambda i: (0, 0)),
            pl.BlockSpec(f1w.shape, lambda i: (0, 0, 0)),
            pl.BlockSpec(f1b.shape, lambda i: (0, 0)),
            pl.BlockSpec(f2w.shape, lambda i: (0, 0)),
            pl.BlockSpec(f2b.shape, lambda i: (0, 0)),
            pl.BlockSpec(f3w.shape, lambda i: (0, 0)),
            pl.BlockSpec(f3b.shape, lambda i: (0, 0)),
        ],
        out_specs=pl.BlockSpec((tb, _LANES), lambda i: (i, 0)),
        compiler_params=pltpu.CompilerParams(
            dimension_semantics=("parallel",)),                 # megacore on v7x
        cost_estimate=pl.CostEstimate(flops=int(flops), transcendentals=0,
                                      bytes_accessed=int(bytes_accessed)),
    )(xr, *weights)


def net_forward(prep, x, num_classes=10):
    """x: [B, 3, 32, 32] NCHW (PyTorch layout) -> [B, num_classes]."""
    B, C, H, W = x.shape
    # Single boundary relayout: NCHW -> (H, B, W*C); batch on the sublane axis.
    xr = jnp.transpose(x, (2, 0, 3, 1)).reshape(H, B, W * C)
    b8 = _round_up(B, 8)
    tb = _pick_batch_tile(b8)
    bp = _round_up(B, tb)
    if bp != B:                                   # zero-pad batch: no ragged blocks
        xr = jnp.pad(xr, ((0, 0), (0, bp - B), (0, 0)))
    out = _fused_net_call(xr, prep, tb)           # (bp, 128) lane-dense logits
    return out[:B, :num_classes]


# ---------------------------------------------------------------------------
# One-time parameter preparation (done at init, not per forward pass)
# ---------------------------------------------------------------------------

def _build_banded_conv_weights(w, win, row_width, half_cols):
    """PyTorch conv weight [Cout, Cin, kh, kw] -> kh banded matrices
    [row_width, 2*half_cols] such that  sum_i x_rows[i:i+OH] @ W[i]  is the
    VALID conv of an image whose rows are (w, c)-flattened (width row_width,
    extra lanes zero).  Output columns: [even ow | odd ow], each half padded
    to half_cols lanes, inner order (ow//2, cout) -> 2x width max-pool is a
    max of the two vreg-aligned halves."""
    w = np.asarray(w, np.float32)
    cout, cin, kh, kw = w.shape
    ow = win - kw + 1
    out = np.zeros((kh, row_width, 2 * half_cols), np.float32)
    for i in range(kh):
        for j in range(kw):
            wt = w[:, :, i, j].T                      # [cin, cout]
            for o in range(ow):
                col = (o % 2) * half_cols + (o // 2) * cout
                row = (o + j) * cin
                out[i, row:row + cin, col:col + cout] = wt
    return jnp.asarray(out)


def init_params(num_classes=10):
    """Parameters in the exact PyTorch layouts of the reference module."""
    key = jax.random.PRNGKey(0)
    ks = jax.random.split(key, 10)

    def u(k, shape, fan_in):
        bound = 1.0 / jnp.sqrt(fan_in)
        return jax.random.uniform(k, shape, jnp.float32, -bound, bound)

    return {
        "conv1_w": u(ks[0], (6, 3, 5, 5), 3 * 5 * 5),
        "conv1_b": u(ks[1], (6,), 3 * 5 * 5),
        "conv2_w": u(ks[2], (16, 6, 5, 5), 6 * 5 * 5),
        "conv2_b": u(ks[3], (16,), 6 * 5 * 5),
        "fc1_w": u(ks[4], (120, 400), 400),
        "fc1_b": u(ks[5], (120,), 400),
        "fc2_w": u(ks[6], (84, 120), 120),
        "fc2_b": u(ks[7], (84,), 120),
        "fc3_w": u(ks[8], (num_classes, 84), 84),
        "fc3_b": u(ks[9], (num_classes,), 84),
    }


def prepare_params(params, num_classes=10):
    """Convert PyTorch-layout params into kernel-ready constants once."""
    prep = {}
    # conv1: 32x32x3 image -> banded [5, 96, 256]; pooled cols 14*6=84 -> 128.
    prep["conv1_w"] = _build_banded_conv_weights(params["conv1_w"], win=32,
                                                 row_width=96, half_cols=_LANES)
    b1 = np.zeros((1, _LANES), np.float32)
    b1[0, :14 * 6] = np.tile(np.asarray(params["conv1_b"], np.float32), 14)
    prep["conv1_b"] = jnp.asarray(b1)
    # conv2: input rows are 128-lane (14*6 data + zero pad) -> banded [5,128,256].
    prep["conv2_w"] = _build_banded_conv_weights(params["conv2_w"], win=14,
                                                 row_width=_LANES, half_cols=_LANES)
    b2 = np.zeros((1, _LANES), np.float32)
    b2[0, :5 * 16] = np.tile(np.asarray(params["conv2_b"], np.float32), 5)
    prep["conv2_b"] = jnp.asarray(b2)

    # fc1: split into 5 height chunks of [(w,c) row -> unit col], permuting the
    # PyTorch (c,h,w) flatten order to our (h,(w,c)) layout; zero-pad to 128.
    w1 = np.asarray(params["fc1_w"], np.float32).reshape(120, 16, 5, 5)  # [u,c,h,w]
    w1 = np.transpose(w1, (2, 3, 1, 0)).reshape(5, 80, 120)              # [h,(w,c),u]
    f1 = np.zeros((5, _LANES, _LANES), np.float32)
    f1[:, :80, :120] = w1
    prep["fc1_w"] = jnp.asarray(f1)
    f1b = np.zeros((1, _LANES), np.float32)
    f1b[0, :120] = np.asarray(params["fc1_b"], np.float32)
    prep["fc1_b"] = jnp.asarray(f1b)

    f2 = np.zeros((_LANES, _LANES), np.float32)
    f2[:120, :84] = np.asarray(params["fc2_w"], np.float32).T
    prep["fc2_w"] = jnp.asarray(f2)
    f2b = np.zeros((1, _LANES), np.float32)
    f2b[0, :84] = np.asarray(params["fc2_b"], np.float32)
    prep["fc2_b"] = jnp.asarray(f2b)

    f3 = np.zeros((_LANES, _LANES), np.float32)
    f3[:84, :num_classes] = np.asarray(params["fc3_w"], np.float32).T
    prep["fc3_w"] = jnp.asarray(f3)
    f3b = np.zeros((1, _LANES), np.float32)
    f3b[0, :num_classes] = np.asarray(params["fc3_b"], np.float32)
    prep["fc3_b"] = jnp.asarray(f3b)
    return prep


# ---------------------------------------------------------------------------
# Pure-XLA reference (exact PyTorch semantics) for in-script verification
# ---------------------------------------------------------------------------

def net_reference(params, x):
    hi = lax.Precision.HIGHEST
    y = lax.conv_general_dilated(x, params["conv1_w"], (1, 1), "VALID",
                                 dimension_numbers=("NCHW", "OIHW", "NCHW"),
                                 precision=hi)
    y = jnp.maximum(y + params["conv1_b"][None, :, None, None], 0.0)
    y = lax.reduce_window(y, -jnp.inf, lax.max, (1, 1, 2, 2), (1, 1, 2, 2), "VALID")
    y = lax.conv_general_dilated(y, params["conv2_w"], (1, 1), "VALID",
                                 dimension_numbers=("NCHW", "OIHW", "NCHW"),
                                 precision=hi)
    y = jnp.maximum(y + params["conv2_b"][None, :, None, None], 0.0)
    y = lax.reduce_window(y, -jnp.inf, lax.max, (1, 1, 2, 2), (1, 1, 2, 2), "VALID")
    y = y.reshape(y.shape[0], -1)                                  # (c, h, w) flat
    y = jnp.maximum(jnp.dot(y, params["fc1_w"].T, precision=hi) + params["fc1_b"], 0.0)
    y = jnp.maximum(jnp.dot(y, params["fc2_w"].T, precision=hi) + params["fc2_b"], 0.0)
    return jnp.dot(y, params["fc3_w"].T, precision=hi) + params["fc3_b"]


if __name__ == "__main__":
    num_classes = 10
    params = init_params(num_classes)
    prep = prepare_params(params, num_classes)

    x = jax.random.normal(jax.random.PRNGKey(0), (2, 3, 32, 32), jnp.float32)

    fwd = jax.jit(lambda p, xx: net_forward(p, xx, num_classes))
    out = fwd(prep, x)
    jax.block_until_ready(out)
    assert out.shape == (2, num_classes)

    ref = net_reference(params, x)
    err = float(jnp.max(jnp.abs(out - ref)))
    assert err < 2e-2, f"kernel/reference mismatch: max abs err = {err}"

    print("KERNEL_OK")
</pallas_src>

<mosaic_0001>
module attributes {stable_mosaic.version = 11 : i64} {
  func.func @_net_kernel(%arg0: i32, %arg1: memref<32x8x96xf32, #tpu.memory_space<vmem>>, %arg2: memref<5x96x256xf32, #tpu.memory_space<vmem>>, %arg3: memref<1x128xf32, #tpu.memory_space<vmem>>, %arg4: memref<5x128x256xf32, #tpu.memory_space<vmem>>, %arg5: memref<1x128xf32, #tpu.memory_space<vmem>>, %arg6: memref<5x128x128xf32, #tpu.memory_space<vmem>>, %arg7: memref<1x128xf32, #tpu.memory_space<vmem>>, %arg8: memref<128x128xf32, #tpu.memory_space<vmem>>, %arg9: memref<1x128xf32, #tpu.memory_space<vmem>>, %arg10: memref<128x128xf32, #tpu.memory_space<vmem>>, %arg11: memref<1x128xf32, #tpu.memory_space<vmem>>, %arg12: memref<8x128xf32, #tpu.memory_space<vmem>>) attributes {dimension_semantics = [#tpu.dimension_semantics<parallel>], iteration_bounds = array<i64: 1>, scalar_prefetch = 0 : i64, scratch_operands = 0 : i64, tpu.core_type = #tpu.core_type<tc>, window_params = [{transform_indices = @transform_0, window_bounds = array<i64: 32, 8, 96>}, {pipeline_mode = #tpu.pipeline_mode<synchronous>, transform_indices = @transform_1, window_bounds = array<i64: 5, 96, 256>}, {pipeline_mode = #tpu.pipeline_mode<synchronous>, transform_indices = @transform_2, window_bounds = array<i64: 1, 128>}, {pipeline_mode = #tpu.pipeline_mode<synchronous>, transform_indices = @transform_3, window_bounds = array<i64: 5, 128, 256>}, {pipeline_mode = #tpu.pipeline_mode<synchronous>, transform_indices = @transform_4, window_bounds = array<i64: 1, 128>}, {pipeline_mode = #tpu.pipeline_mode<synchronous>, transform_indices = @transform_5, window_bounds = array<i64: 5, 128, 128>}, {pipeline_mode = #tpu.pipeline_mode<synchronous>, transform_indices = @transform_6, window_bounds = array<i64: 1, 128>}, {pipeline_mode = #tpu.pipeline_mode<synchronous>, transform_indices = @transform_7, window_bounds = array<i64: 128, 128>}, {pipeline_mode = #tpu.pipeline_mode<synchronous>, transform_indices = @transform_8, window_bounds = array<i64: 1, 128>}, {pipeline_mode = #tpu.pipeline_mode<synchronous>, transform_indices = @transform_9, window_bounds = array<i64: 128, 128>}, {pipeline_mode = #tpu.pipeline_mode<synchronous>, transform_indices = @transform_10, window_bounds = array<i64: 1, 128>}, {transform_indices = @transform_11, window_bounds = array<i64: 8, 128>}]} {
    %c0 = arith.constant 0 : index
    %c0_0 = arith.constant 0 : index
    %c0_1 = arith.constant 0 : index
    %0 = vector.load %arg1[%c0, %c0_0, %c0_1] : memref<32x8x96xf32, #tpu.memory_space<vmem>>, vector<32x8x96xf32>
    %1 = vector.extract_strided_slice %0 {offsets = [0, 0, 0], sizes = [28, 8, 96], strides = [1, 1, 1]} : vector<32x8x96xf32> to vector<28x8x96xf32>
    %2 = vector.shape_cast %1 : vector<28x8x96xf32> to vector<224x96xf32>
    %c0_2 = arith.constant 0 : index
    %c0_3 = arith.constant 0 : index
    %c0_4 = arith.constant 0 : index
    %3 = vector.load %arg2[%c0_2, %c0_3, %c0_4] : memref<5x96x256xf32, #tpu.memory_space<vmem>>, vector<1x96x256xf32>
    %4 = vector.shape_cast %3 : vector<1x96x256xf32> to vector<96x256xf32>
    %cst = arith.constant dense<0.000000e+00> : vector<224x256xf32>
    %5 = tpu.matmul %2, %4, %cst {dimension_numbers = #tpu.dot_dimension_numbers<[1], [0], [0], [1], [0, 0, 1, 1], [], []>} : vector<224x96xf32>, vector<96x256xf32>, vector<224x256xf32> -> vector<224x256xf32>
    %6 = vector.extract_strided_slice %0 {offsets = [1, 0, 0], sizes = [28, 8, 96], strides = [1, 1, 1]} : vector<32x8x96xf32> to vector<28x8x96xf32>
    %7 = vector.shape_cast %6 : vector<28x8x96xf32> to vector<224x96xf32>
    %c1 = arith.constant 1 : index
    %c0_5 = arith.constant 0 : index
    %c0_6 = arith.constant 0 : index
    %8 = vector.load %arg2[%c1, %c0_5, %c0_6] : memref<5x96x256xf32, #tpu.memory_space<vmem>>, vector<1x96x256xf32>
    %9 = vector.shape_cast %8 : vector<1x96x256xf32> to vector<96x256xf32>
    %cst_7 = arith.constant dense<0.000000e+00> : vector<224x256xf32>
    %10 = tpu.matmul %7, %9, %cst_7 {dimension_numbers = #tpu.dot_dimension_numbers<[1], [0], [0], [1], [0, 0, 1, 1], [], []>} : vector<224x96xf32>, vector<96x256xf32>, vector<224x256xf32> -> vector<224x256xf32>
    %11 = arith.addf %5, %10 : vector<224x256xf32>
    %12 = vector.extract_strided_slice %0 {offsets = [2, 0, 0], sizes = [28, 8, 96], strides = [1, 1, 1]} : vector<32x8x96xf32> to vector<28x8x96xf32>
    %13 = vector.shape_cast %12 : vector<28x8x96xf32> to vector<224x96xf32>
    %c2 = arith.constant 2 : index
    %c0_8 = arith.constant 0 : index
    %c0_9 = arith.constant 0 : index
    %14 = vector.load %arg2[%c2, %c0_8, %c0_9] : memref<5x96x256xf32, #tpu.memory_space<vmem>>, vector<1x96x256xf32>
    %15 = vector.shape_cast %14 : vector<1x96x256xf32> to vector<96x256xf32>
    %cst_10 = arith.constant dense<0.000000e+00> : vector<224x256xf32>
    %16 = tpu.matmul %13, %15, %cst_10 {dimension_numbers = #tpu.dot_dimension_numbers<[1], [0], [0], [1], [0, 0, 1, 1], [], []>} : vector<224x96xf32>, vector<96x256xf32>, vector<224x256xf32> -> vector<224x256xf32>
    %17 = arith.addf %11, %16 : vector<224x256xf32>
    %18 = vector.extract_strided_slice %0 {offsets = [3, 0, 0], sizes = [28, 8, 96], strides = [1, 1, 1]} : vector<32x8x96xf32> to vector<28x8x96xf32>
    %19 = vector.shape_cast %18 : vector<28x8x96xf32> to vector<224x96xf32>
    %c3 = arith.constant 3 : index
    %c0_11 = arith.constant 0 : index
    %c0_12 = arith.constant 0 : index
    %20 = vector.load %arg2[%c3, %c0_11, %c0_12] : memref<5x96x256xf32, #tpu.memory_space<vmem>>, vector<1x96x256xf32>
    %21 = vector.shape_cast %20 : vector<1x96x256xf32> to vector<96x256xf32>
    %cst_13 = arith.constant dense<0.000000e+00> : vector<224x256xf32>
    %22 = tpu.matmul %19, %21, %cst_13 {dimension_numbers = #tpu.dot_dimension_numbers<[1], [0], [0], [1], [0, 0, 1, 1], [], []>} : vector<224x96xf32>, vector<96x256xf32>, vector<224x256xf32> -> vector<224x256xf32>
    %23 = arith.addf %17, %22 : vector<224x256xf32>
    %24 = vector.extract_strided_slice %0 {offsets = [4, 0, 0], sizes = [28, 8, 96], strides = [1, 1, 1]} : vector<32x8x96xf32> to vector<28x8x96xf32>
    %25 = vector.shape_cast %24 : vector<28x8x96xf32> to vector<224x96xf32>
    %c4 = arith.constant 4 : index
    %c0_14 = arith.constant 0 : index
    %c0_15 = arith.constant 0 : index
    %26 = vector.load %arg2[%c4, %c0_14, %c0_15] : memref<5x96x256xf32, #tpu.memory_space<vmem>>, vector<1x96x256xf32>
    %27 = vector.shape_cast %26 : vector<1x96x256xf32> to vector<96x256xf32>
    %cst_16 = arith.constant dense<0.000000e+00> : vector<224x256xf32>
    %28 = tpu.matmul %25, %27, %cst_16 {dimension_numbers = #tpu.dot_dimension_numbers<[1], [0], [0], [1], [0, 0, 1, 1], [], []>} : vector<224x96xf32>, vector<96x256xf32>, vector<224x256xf32> -> vector<224x256xf32>
    %29 = arith.addf %23, %28 : vector<224x256xf32>
    %30 = vector.extract_strided_slice %29 {offsets = [0, 0], sizes = [224, 128], strides = [1, 1]} : vector<224x256xf32> to vector<224x128xf32>
    %31 = vector.extract_strided_slice %29 {offsets = [0, 128], sizes = [224, 128], strides = [1, 1]} : vector<224x256xf32> to vector<224x128xf32>
    %32 = arith.maximumf %30, %31 : vector<224x128xf32>
    %33 = vector.shape_cast %32 : vector<224x128xf32> to vector<14x2x8x128xf32>
    %34 = vector.extract_strided_slice %33 {offsets = [0, 0, 0, 0], sizes = [14, 1, 8, 128], strides = [1, 1, 1, 1]} : vector<14x2x8x128xf32> to vector<14x1x8x128xf32>
    %35 = vector.shape_cast %34 : vector<14x1x8x128xf32> to vector<14x8x128xf32>
    %36 = vector.extract_strided_slice %33 {offsets = [0, 1, 0, 0], sizes = [14, 1, 8, 128], strides = [1, 1, 1, 1]} : vector<14x2x8x128xf32> to vector<14x1x8x128xf32>
    %37 = vector.shape_cast %36 : vector<14x1x8x128xf32> to vector<14x8x128xf32>
    %38 = arith.maximumf %35, %37 : vector<14x8x128xf32>
    %c0_17 = arith.constant 0 : index
    %c0_18 = arith.constant 0 : index
    %39 = vector.load %arg3[%c0_17, %c0_18] : memref<1x128xf32, #tpu.memory_space<vmem>>, vector<1x128xf32>
    %40 = vector.shape_cast %39 : vector<1x128xf32> to vector<1x1x128xf32>
    %41 = vector.broadcast %40 : vector<1x1x128xf32> to vector<14x8x128xf32>
    %42 = arith.addf %38, %41 : vector<14x8x128xf32>
    %cst_19 = arith.constant 0.000000e+00 : f32
    %43 = vector.broadcast %cst_19 : f32 to vector<14x8x128xf32>
    %44 = arith.maximumf %42, %43 : vector<14x8x128xf32>
    %45 = vector.extract_strided_slice %44 {offsets = [0, 0, 0], sizes = [10, 8, 128], strides = [1, 1, 1]} : vector<14x8x128xf32> to vector<10x8x128xf32>
    %46 = vector.shape_cast %45 : vector<10x8x128xf32> to vector<80x128xf32>
    %c0_20 = arith.constant 0 : index
    %c0_21 = arith.constant 0 : index
    %c0_22 = arith.constant 0 : index
    %47 = vector.load %arg4[%c0_20, %c0_21, %c0_22] : memref<5x128x256xf32, #tpu.memory_space<vmem>>, vector<1x128x256xf32>
    %48 = vector.shape_cast %47 : vector<1x128x256xf32> to vector<128x256xf32>
    %cst_23 = arith.constant dense<0.000000e+00> : vector<80x256xf32>
    %49 = tpu.matmul %46, %48, %cst_23 {dimension_numbers = #tpu.dot_dimension_numbers<[1], [0], [0], [1], [0, 0, 1, 1], [], []>} : vector<80x128xf32>, vector<128x256xf32>, vector<80x256xf32> -> vector<80x256xf32>
    %50 = vector.extract_strided_slice %44 {offsets = [1, 0, 0], sizes = [10, 8, 128], strides = [1, 1, 1]} : vector<14x8x128xf32> to vector<10x8x128xf32>
    %51 = vector.shape_cast %50 : vector<10x8x128xf32> to vector<80x128xf32>
    %c1_24 = arith.constant 1 : index
    %c0_25 = arith.constant 0 : index
    %c0_26 = arith.constant 0 : index
    %52 = vector.load %arg4[%c1_24, %c0_25, %c0_26] : memref<5x128x256xf32, #tpu.memory_space<vmem>>, vector<1x128x256xf32>
    %53 = vector.shape_cast %52 : vector<1x128x256xf32> to vector<128x256xf32>
    %cst_27 = arith.constant dense<0.000000e+00> : vector<80x256xf32>
    %54 = tpu.matmul %51, %53, %cst_27 {dimension_numbers = #tpu.dot_dimension_numbers<[1], [0], [0], [1], [0, 0, 1, 1], [], []>} : vector<80x128xf32>, vector<128x256xf32>, vector<80x256xf32> -> vector<80x256xf32>
    %55 = arith.addf %49, %54 : vector<80x256xf32>
    %56 = vector.extract_strided_slice %44 {offsets = [2, 0, 0], sizes = [10, 8, 128], strides = [1, 1, 1]} : vector<14x8x128xf32> to vector<10x8x128xf32>
    %57 = vector.shape_cast %56 : vector<10x8x128xf32> to vector<80x128xf32>
    %c2_28 = arith.constant 2 : index
    %c0_29 = arith.constant 0 : index
    %c0_30 = arith.constant 0 : index
    %58 = vector.load %arg4[%c2_28, %c0_29, %c0_30] : memref<5x128x256xf32, #tpu.memory_space<vmem>>, vector<1x128x256xf32>
    %59 = vector.shape_cast %58 : vector<1x128x256xf32> to vector<128x256xf32>
    %cst_31 = arith.constant dense<0.000000e+00> : vector<80x256xf32>
    %60 = tpu.matmul %57, %59, %cst_31 {dimension_numbers = #tpu.dot_dimension_numbers<[1], [0], [0], [1], [0, 0, 1, 1], [], []>} : vector<80x128xf32>, vector<128x256xf32>, vector<80x256xf32> -> vector<80x256xf32>
    %61 = arith.addf %55, %60 : vector<80x256xf32>
    %62 = vector.extract_strided_slice %44 {offsets = [3, 0, 0], sizes = [10, 8, 128], strides = [1, 1, 1]} : vector<14x8x128xf32> to vector<10x8x128xf32>
    %63 = vector.shape_cast %62 : vector<10x8x128xf32> to vector<80x128xf32>
    %c3_32 = arith.constant 3 : index
    %c0_33 = arith.constant 0 : index
    %c0_34 = arith.constant 0 : index
    %64 = vector.load %arg4[%c3_32, %c0_33, %c0_34] : memref<5x128x256xf32, #tpu.memory_space<vmem>>, vector<1x128x256xf32>
    %65 = vector.shape_cast %64 : vector<1x128x256xf32> to vector<128x256xf32>
    %cst_35 = arith.constant dense<0.000000e+00> : vector<80x256xf32>
    %66 = tpu.matmul %63, %65, %cst_35 {dimension_numbers = #tpu.dot_dimension_numbers<[1], [0], [0], [1], [0, 0, 1, 1], [], []>} : vector<80x128xf32>, vector<128x256xf32>, vector<80x256xf32> -> vector<80x256xf32>
    %67 = arith.addf %61, %66 : vector<80x256xf32>
    %68 = vector.extract_strided_slice %44 {offsets = [4, 0, 0], sizes = [10, 8, 128], strides = [1, 1, 1]} : vector<14x8x128xf32> to vector<10x8x128xf32>
    %69 = vector.shape_cast %68 : vector<10x8x128xf32> to vector<80x128xf32>
    %c4_36 = arith.constant 4 : index
    %c0_37 = arith.constant 0 : index
    %c0_38 = arith.constant 0 : index
    %70 = vector.load %arg4[%c4_36, %c0_37, %c0_38] : memref<5x128x256xf32, #tpu.memory_space<vmem>>, vector<1x128x256xf32>
    %71 = vector.shape_cast %70 : vector<1x128x256xf32> to vector<128x256xf32>
    %cst_39 = arith.constant dense<0.000000e+00> : vector<80x256xf32>
    %72 = tpu.matmul %69, %71, %cst_39 {dimension_numbers = #tpu.dot_dimension_numbers<[1], [0], [0], [1], [0, 0, 1, 1], [], []>} : vector<80x128xf32>, vector<128x256xf32>, vector<80x256xf32> -> vector<80x256xf32>
    %73 = arith.addf %67, %72 : vector<80x256xf32>
    %74 = vector.extract_strided_slice %73 {offsets = [0, 0], sizes = [80, 128], strides = [1, 1]} : vector<80x256xf32> to vector<80x128xf32>
    %75 = vector.extract_strided_slice %73 {offsets = [0, 128], sizes = [80, 128], strides = [1, 1]} : vector<80x256xf32> to vector<80x128xf32>
    %76 = arith.maximumf %74, %75 : vector<80x128xf32>
    %77 = vector.shape_cast %76 : vector<80x128xf32> to vector<5x2x8x128xf32>
    %78 = vector.extract_strided_slice %77 {offsets = [0, 0, 0, 0], sizes = [5, 1, 8, 128], strides = [1, 1, 1, 1]} : vector<5x2x8x128xf32> to vector<5x1x8x128xf32>
    %79 = vector.shape_cast %78 : vector<5x1x8x128xf32> to vector<5x8x128xf32>
    %80 = vector.extract_strided_slice %77 {offsets = [0, 1, 0, 0], sizes = [5, 1, 8, 128], strides = [1, 1, 1, 1]} : vector<5x2x8x128xf32> to vector<5x1x8x128xf32>
    %81 = vector.shape_cast %80 : vector<5x1x8x128xf32> to vector<5x8x128xf32>
    %82 = arith.maximumf %79, %81 : vector<5x8x128xf32>
    %c0_40 = arith.constant 0 : index
    %c0_41 = arith.constant 0 : index
    %83 = vector.load %arg5[%c0_40, %c0_41] : memref<1x128xf32, #tpu.memory_space<vmem>>, vector<1x128xf32>
    %84 = vector.shape_cast %83 : vector<1x128xf32> to vector<1x1x128xf32>
    %85 = vector.broadcast %84 : vector<1x1x128xf32> to vector<5x8x128xf32>
    %86 = arith.addf %82, %85 : vector<5x8x128xf32>
    %cst_42 = arith.constant 0.000000e+00 : f32
    %87 = vector.broadcast %cst_42 : f32 to vector<5x8x128xf32>
    %88 = arith.maximumf %86, %87 : vector<5x8x128xf32>
    %89 = vector.extract_strided_slice %88 {offsets = [0, 0, 0], sizes = [1, 8, 128], strides = [1, 1, 1]} : vector<5x8x128xf32> to vector<1x8x128xf32>
    %90 = vector.shape_cast %89 : vector<1x8x128xf32> to vector<8x128xf32>
    %c0_43 = arith.constant 0 : index
    %c0_44 = arith.constant 0 : index
    %c0_45 = arith.constant 0 : index
    %91 = vector.load %arg6[%c0_43, %c0_44, %c0_45] : memref<5x128x128xf32, #tpu.memory_space<vmem>>, vector<1x128x128xf32>
    %92 = vector.shape_cast %91 : vector<1x128x128xf32> to vector<128x128xf32>
    %cst_46 = arith.constant dense<0.000000e+00> : vector<8x128xf32>
    %93 = tpu.matmul %90, %92, %cst_46 {dimension_numbers = #tpu.dot_dimension_numbers<[1], [0], [0], [1], [0, 0, 1, 1], [], []>} : vector<8x128xf32>, vector<128x128xf32>, vector<8x128xf32> -> vector<8x128xf32>
    %94 = vector.extract_strided_slice %88 {offsets = [1, 0, 0], sizes = [1, 8, 128], strides = [1, 1, 1]} : vector<5x8x128xf32> to vector<1x8x128xf32>
    %95 = vector.shape_cast %94 : vector<1x8x128xf32> to vector<8x128xf32>
    %c1_47 = arith.constant 1 : index
    %c0_48 = arith.constant 0 : index
    %c0_49 = arith.constant 0 : index
    %96 = vector.load %arg6[%c1_47, %c0_48, %c0_49] : memref<5x128x128xf32, #tpu.memory_space<vmem>>, vector<1x128x128xf32>
    %97 = vector.shape_cast %96 : vector<1x128x128xf32> to vector<128x128xf32>
    %cst_50 = arith.constant dense<0.000000e+00> : vector<8x128xf32>
    %98 = tpu.matmul %95, %97, %cst_50 {dimension_numbers = #tpu.dot_dimension_numbers<[1], [0], [0], [1], [0, 0, 1, 1], [], []>} : vector<8x128xf32>, vector<128x128xf32>, vector<8x128xf32> -> vector<8x128xf32>
    %99 = arith.addf %93, %98 : vector<8x128xf32>
    %100 = vector.extract_strided_slice %88 {offsets = [2, 0, 0], sizes = [1, 8, 128], strides = [1, 1, 1]} : vector<5x8x128xf32> to vector<1x8x128xf32>
    %101 = vector.shape_cast %100 : vector<1x8x128xf32> to vector<8x128xf32>
    %c2_51 = arith.constant 2 : index
    %c0_52 = arith.constant 0 : index
    %c0_53 = arith.constant 0 : index
    %102 = vector.load %arg6[%c2_51, %c0_52, %c0_53] : memref<5x128x128xf32, #tpu.memory_space<vmem>>, vector<1x128x128xf32>
    %103 = vector.shape_cast %102 : vector<1x128x128xf32> to vector<128x128xf32>
    %cst_54 = arith.constant dense<0.000000e+00> : vector<8x128xf32>
    %104 = tpu.matmul %101, %103, %cst_54 {dimension_numbers = #tpu.dot_dimension_numbers<[1], [0], [0], [1], [0, 0, 1, 1], [], []>} : vector<8x128xf32>, vector<128x128xf32>, vector<8x128xf32> -> vector<8x128xf32>
    %105 = arith.addf %99, %104 : vector<8x128xf32>
    %106 = vector.extract_strided_slice %88 {offsets = [3, 0, 0], sizes = [1, 8, 128], strides = [1, 1, 1]} : vector<5x8x128xf32> to vector<1x8x128xf32>
    %107 = vector.shape_cast %106 : vector<1x8x128xf32> to vector<8x128xf32>
    %c3_55 = arith.constant 3 : index
    %c0_56 = arith.constant 0 : index
    %c0_57 = arith.constant 0 : index
    %108 = vector.load %arg6[%c3_55, %c0_56, %c0_57] : memref<5x128x128xf32, #tpu.memory_space<vmem>>, vector<1x128x128xf32>
    %109 = vector.shape_cast %108 : vector<1x128x128xf32> to vector<128x128xf32>
    %cst_58 = arith.constant dense<0.000000e+00> : vector<8x128xf32>
    %110 = tpu.matmul %107, %109, %cst_58 {dimension_numbers = #tpu.dot_dimension_numbers<[1], [0], [0], [1], [0, 0, 1, 1], [], []>} : vector<8x128xf32>, vector<128x128xf32>, vector<8x128xf32> -> vector<8x128xf32>
    %111 = arith.addf %105, %110 : vector<8x128xf32>
    %112 = vector.extract_strided_slice %88 {offsets = [4, 0, 0], sizes = [1, 8, 128], strides = [1, 1, 1]} : vector<5x8x128xf32> to vector<1x8x128xf32>
    %113 = vector.shape_cast %112 : vector<1x8x128xf32> to vector<8x128xf32>
    %c4_59 = arith.constant 4 : index
    %c0_60 = arith.constant 0 : index
    %c0_61 = arith.constant 0 : index
    %114 = vector.load %arg6[%c4_59, %c0_60, %c0_61] : memref<5x128x128xf32, #tpu.memory_space<vmem>>, vector<1x128x128xf32>
    %115 = vector.shape_cast %114 : vector<1x128x128xf32> to vector<128x128xf32>
    %cst_62 = arith.constant dense<0.000000e+00> : vector<8x128xf32>
    %116 = tpu.matmul %113, %115, %cst_62 {dimension_numbers = #tpu.dot_dimension_numbers<[1], [0], [0], [1], [0, 0, 1, 1], [], []>} : vector<8x128xf32>, vector<128x128xf32>, vector<8x128xf32> -> vector<8x128xf32>
    %117 = arith.addf %111, %116 : vector<8x128xf32>
    %c0_63 = arith.constant 0 : index
    %c0_64 = arith.constant 0 : index
    %118 = vector.load %arg7[%c0_63, %c0_64] : memref<1x128xf32, #tpu.memory_space<vmem>>, vector<1x128xf32>
    %119 = vector.broadcast %118 : vector<1x128xf32> to vector<8x128xf32>
    %120 = arith.addf %117, %119 : vector<8x128xf32>
    %cst_65 = arith.constant 0.000000e+00 : f32
    %121 = vector.broadcast %cst_65 : f32 to vector<8x128xf32>
    %122 = arith.maximumf %120, %121 : vector<8x128xf32>
    %c0_66 = arith.constant 0 : index
    %c0_67 = arith.constant 0 : index
    %123 = vector.load %arg8[%c0_66, %c0_67] : memref<128x128xf32, #tpu.memory_space<vmem>>, vector<128x128xf32>
    %cst_68 = arith.constant dense<0.000000e+00> : vector<8x128xf32>
    %124 = tpu.matmul %122, %123, %cst_68 {dimension_numbers = #tpu.dot_dimension_numbers<[1], [0], [0], [1], [0, 0, 1, 1], [], []>} : vector<8x128xf32>, vector<128x128xf32>, vector<8x128xf32> -> vector<8x128xf32>
    %c0_69 = arith.constant 0 : index
    %c0_70 = arith.constant 0 : index
    %125 = vector.load %arg9[%c0_69, %c0_70] : memref<1x128xf32, #tpu.memory_space<vmem>>, vector<1x128xf32>
    %126 = vector.broadcast %125 : vector<1x128xf32> to vector<8x128xf32>
    %127 = arith.addf %124, %126 : vector<8x128xf32>
    %cst_71 = arith.constant 0.000000e+00 : f32
    %128 = vector.broadcast %cst_71 : f32 to vector<8x128xf32>
    %129 = arith.maximumf %127, %128 : vector<8x128xf32>
    %c0_72 = arith.constant 0 : index
    %c0_73 = arith.constant 0 : index
    %130 = vector.load %arg10[%c0_72, %c0_73] : memref<128x128xf32, #tpu.memory_space<vmem>>, vector<128x128xf32>
    %cst_74 = arith.constant dense<0.000000e+00> : vector<8x128xf32>
    %131 = tpu.matmul %129, %130, %cst_74 {dimension_numbers = #tpu.dot_dimension_numbers<[1], [0], [0], [1], [0, 0, 1, 1], [], []>} : vector<8x128xf32>, vector<128x128xf32>, vector<8x128xf32> -> vector<8x128xf32>
    %c0_75 = arith.constant 0 : index
    %c0_76 = arith.constant 0 : index
    %132 = vector.load %arg11[%c0_75, %c0_76] : memref<1x128xf32, #tpu.memory_space<vmem>>, vector<1x128xf32>
    %133 = vector.broadcast %132 : vector<1x128xf32> to vector<8x128xf32>
    %134 = arith.addf %131, %133 : vector<8x128xf32>
    %c0_77 = arith.constant 0 : index
    %c0_78 = arith.constant 0 : index
    %135 = vector.load %arg12[%c0_77, %c0_78] : memref<8x128xf32, #tpu.memory_space<vmem>>, vector<8x128xf32>
    tpu.vector_store %arg12[%c0_77, %c0_78], %134 {strides = array<i32>} : memref<8x128xf32, #tpu.memory_space<vmem>>, vector<8x128xf32>,
    return
  }
  func.func @transform_0(%arg0: i32) -> (i32, i32, i32) {
    %c0_i32 = arith.constant 0 : i32
    %c0_i32_0 = arith.constant 0 : i32
    %c0_i32_1 = arith.constant 0 : i32
    return %c0_i32, %arg0, %c0_i32_0 : i32, i32, i32
  }
  func.func @transform_1(%arg0: i32) -> (i32, i32, i32) {
    %c0_i32 = arith.constant 0 : i32
    %c0_i32_0 = arith.constant 0 : i32
    %c0_i32_1 = arith.constant 0 : i32
    %c0_i32_2 = arith.constant 0 : i32
    return %c0_i32, %c0_i32_0, %c0_i32_1 : i32, i32, i32
  }
  func.func @transform_2(%arg0: i32) -> (i32, i32) {
    %c0_i32 = arith.constant 0 : i32
    %c0_i32_0 = arith.constant 0 : i32
    %c0_i32_1 = arith.constant 0 : i32
    return %c0_i32, %c0_i32_0 : i32, i32
  }
  func.func @transform_3(%arg0: i32) -> (i32, i32, i32) {
    %c0_i32 = arith.constant 0 : i32
    %c0_i32_0 = arith.constant 0 : i32
    %c0_i32_1 = arith.constant 0 : i32
    %c0_i32_2 = arith.constant 0 : i32
    return %c0_i32, %c0_i32_0, %c0_i32_1 : i32, i32, i32
  }
  func.func @transform_4(%arg0: i32) -> (i32, i32) {
    %c0_i32 = arith.constant 0 : i32
    %c0_i32_0 = arith.constant 0 : i32
    %c0_i32_1 = arith.constant 0 : i32
    return %c0_i32, %c0_i32_0 : i32, i32
  }
  func.func @transform_5(%arg0: i32) -> (i32, i32, i32) {
    %c0_i32 = arith.constant 0 : i32
    %c0_i32_0 = arith.constant 0 : i32
    %c0_i32_1 = arith.constant 0 : i32
    %c0_i32_2 = arith.constant 0 : i32
    return %c0_i32, %c0_i32_0, %c0_i32_1 : i32, i32, i32
  }
  func.func @transform_6(%arg0: i32) -> (i32, i32) {
    %c0_i32 = arith.constant 0 : i32
    %c0_i32_0 = arith.constant 0 : i32
    %c0_i32_1 = arith.constant 0 : i32
    return %c0_i32, %c0_i32_0 : i32, i32
  }
  func.func @transform_7(%arg0: i32) -> (i32, i32) {
    %c0_i32 = arith.constant 0 : i32
    %c0_i32_0 = arith.constant 0 : i32
    %c0_i32_1 = arith.constant 0 : i32
    return %c0_i32, %c0_i32_0 : i32, i32
  }
  func.func @transform_8(%arg0: i32) -> (i32, i32) {
    %c0_i32 = arith.constant 0 : i32
    %c0_i32_0 = arith.constant 0 : i32
    %c0_i32_1 = arith.constant 0 : i32
    return %c0_i32, %c0_i32_0 : i32, i32
  }
  func.func @transform_9(%arg0: i32) -> (i32, i32) {
    %c0_i32 = arith.constant 0 : i32
    %c0_i32_0 = arith.constant 0 : i32
    %c0_i32_1 = arith.constant 0 : i32
    return %c0_i32, %c0_i32_0 : i32, i32
  }
  func.func @transform_10(%arg0: i32) -> (i32, i32) {
    %c0_i32 = arith.constant 0 : i32
    %c0_i32_0 = arith.constant 0 : i32
    %c0_i32_1 = arith.constant 0 : i32
    return %c0_i32, %c0_i32_0 : i32, i32
  }
  func.func @transform_11(%arg0: i32) -> (i32, i32) {
    %c0_i32 = arith.constant 0 : i32
    %c0_i32_0 = arith.constant 0 : i32
    return %arg0, %c0_i32 : i32, i32
  }
}

</mosaic_0001>

<bundles_post_ra>
// kernel: _lambda_.1
= control target key start
LH: loop header
LB: loop body
LE: loop exit
PB: predicated region body
PF: predicated region fallthrough
CT: control target
= control target key end

     0   :  { %16 = vsyncpa [#allocation3], 0  ;;  %s5955_s0 = inlined_call_operand.vmem [shape: f32[32,8,96], index: 0, kind: input, shape index: {}]   ;;  %s5956_s1 = inlined_call_operand.vmem [shape: f32[5,96,256], index: 1, kind: input, shape index: {}]   ;;  %s5957_s2 = inlined_call_operand.vmem [shape: f32[1,128], index: 2, kind: input, shape index: {}]   ;;  %s5958_s3 = inlined_call_operand.hbm [shape: f32[5,128,256], index: 3, kind: input, shape index: {}]   ;;  %s5959_s4 = inlined_call_operand.vmem [shape: f32[1,128], index: 4, kind: input, shape index: {}]   ;;  %s5960_s5 = inlined_call_operand.hbm [shape: f32[5,128,128], index: 5, kind: input, shape index: {}]   ;;  %s5961_s6 = inlined_call_operand.vmem [shape: f32[1,128], index: 6, kind: input, shape index: {}]   ;;  %s5962_s7 = inlined_call_operand.hbm [shape: f32[128,128], index: 7, kind: input, shape index: {}]   ;;  %s5963_s8 = inlined_call_operand.vmem [shape: f32[1,128], index: 8, kind: input, shape index: {}]   ;;  %s5964_s9 = inlined_call_operand.hbm [shape: f32[128,128], index: 9, kind: input, shape index: {}]   ;;  %s5965_s10 = inlined_call_operand.vmem [shape: f32[1,128], index: 10, kind: input, shape index: {}]   ;;  %s5966_s11 = inlined_call_operand.vmem [shape: f32[8,128], index: 11, kind: output, shape index: {}]  }
   0x1   :  { %17 = vsyncpa [#allocation5], 0 }
   0x2   :  { %18 = vsyncpa [#allocation8], 0  ;;  %s3980_s17 = smov [#allocation4]  }
   0x3   :  { %s44_s18 = sshll.u32 %s3980_s17, 4  ;;  %s45_s18 = int_to_ptr.vmem [resolvable:$true] %s44_s18 }
   0x4   :  { %s3902_s19 = scalar_lea.vmem %s45_s18, 10240  ;;  %p3907_p1 = scmp.lt.s32.totalorder %s45_s18, %s45_s18 }
   0x5   :  { %p3903_p0 = scmp.ne.s32.totalorder %s45_s18, %s3902_s19  ;;  %p3908_p2 = scmp.lt.s32.totalorder %s3902_s19, %s3902_s19 }
   0x7   :  { %p3909_p3 = por %p3908_p2, %p3907_p1 }
   0x9   :  { %p3910_p4 = pnand %p3909_p3, %p3903_p0 }
   0xb   :  { %3913 = shalt.err (!%p3910_p4)
}
   0xc   :  { %s3981_s20 = smov 128   ;;  %s3982_s21 = smov 8  }
   0xd   :  { %50 = dma.hbm_to_vmem [thread:$0]  %s5960_s5, 10240, %s45_s18, [#allocation5], %s3981_s20, %s3981_s20, %s3982_s21  }
   0xe   :  { %s3983_s24 = smov [#allocation2]  }
   0xf   :  { %s30_s25 = sshll.u32 %s3983_s24, 4  ;;  %s31_s25 = int_to_ptr.vmem [resolvable:$true] %s30_s25 }
  0x10   :  { %s3922_s26 = scalar_lea.vmem %s31_s25, 20480  ;;  %p3927_p6 = scmp.lt.s32.totalorder %s31_s25, %s31_s25 }
  0x11   :  { %p3923_p5 = scmp.ne.s32.totalorder %s31_s25, %s3922_s26  ;;  %p3928_p7 = scmp.lt.s32.totalorder %s3922_s26, %s3922_s26 }
  0x13   :  { %p3929_p8 = por %p3928_p7, %p3927_p6 }
  0x15   :  { %p3930_p9 = pnand %p3929_p8, %p3923_p5 }
  0x17   :  { %3933 = shalt.err (!%p3930_p9)
}
  0x18   :  { %s3984_s27 = smov 256   ;;  %s3985_s28 = smov 16  }
  0x19   :  { %36 = dma.hbm_to_vmem [thread:$0]  %s5958_s3, 20480, %s31_s25, [#allocation3], %s3984_s27, %s3984_s27, %s3985_s28  }
  0x1a   :  { %s3986_s12 = smov [#allocation6]   ;;  %s3987_s14 = smov [#allocation7]  }
  0x1b   :  { %s58_s13 = sshll.u32 %s3986_s12, 4  ;;  %s72_s5 = sshll.u32 %s3987_s14, 4  ;;  %s59_s13 = int_to_ptr.vmem [resolvable:$true] %s58_s13  ;;  %s73_s5 = int_to_ptr.vmem [resolvable:$true] %s72_s5 }
  0x1c   :  { %s3942_s15 = scalar_lea.vmem %s59_s13, 2048  ;;  %p3947_p11 = scmp.lt.s32.totalorder %s59_s13, %s59_s13 }
  0x1d   :  { %p3943_p10 = scmp.ne.s32.totalorder %s59_s13, %s3942_s15  ;;  %p3948_p12 = scmp.lt.s32.totalorder %s3942_s15, %s3942_s15 }
  0x1f   :  { %p3949_p13 = por %p3948_p12, %p3947_p11 }
  0x21   :  { %p3950_p0 = pnand %p3949_p13, %p3943_p10 }
  0x23   :  { %3953 = shalt.err (!%p3950_p0)
}
  0x24   :  { %64 = dma.hbm_to_vmem [thread:$0]  %s5962_s7, 2048, %s59_s13, [#allocation5], %s3981_s20, %s3981_s20, %s3982_s21  }
  0x25   :  { %s3962_s3 = scalar_lea.vmem %s73_s5, 2048  ;;  %p3967_p2 = scmp.lt.s32.totalorder %s73_s5, %s73_s5 }
  0x26   :  { %p3963_p1 = scmp.ne.s32.totalorder %s73_s5, %s3962_s3  ;;  %p3968_p3 = scmp.lt.s32.totalorder %s3962_s3, %s3962_s3 }
  0x28   :  { %p3969_p4 = por %p3968_p3, %p3967_p2 }
  0x2a   :  { %p3970_p5 = pnand %p3969_p4, %p3963_p1 }
  0x2c   :  { %3973 = shalt.err (!%p3970_p5)
}
  0x2d   :  { %78 = dma.hbm_to_vmem [thread:$0]  %s5964_s9, 2048, %s73_s5, [#allocation8], %s3981_s20, %s3981_s20, %s3982_s21  }
  0x2e   :  { %3974 = dma.done.wait [#allocation3], 20480  }
  0x2f   :  { %3975 = vsyncadd [#allocation3], 4294946816 }
  0x30   :  { %3976 = dma.done.wait [#allocation5], 12288  }
  0x31   :  { %3977 = vsyncadd [#allocation5], 4294955008 }
  0x32   :  { %3978 = dma.done.wait [#allocation8], 2048  }
  0x33   :  { %3979 = vsyncadd [#allocation8], 4294965248  ;;  %v5967_v0 = vmov 0.0   ;;  %v3301_v1 = vld [vmem:[%s5956_s1 + $0x178] sm:$0xff]  ;;  %v3300_v3 = vld [vmem:[%s5956_s1 + $0x170] sm:$0xff]  ;;  %vm174_vm0 = vcmask 785408  }
  0x34   :  { %323 = vmatprep.mubr.f32.mxu0 %v5967_v0  ;;  %559 = vmatprep.mubr.f32.mxu1 %v5967_v0  ;;  %v148_v2 = vld [vmem:[%s5956_s1 + $0xb8] sm:$0xff]  ;;  %v147_v4 = vld [vmem:[%s5956_s1 + $0xb0] sm:$0xff]  ;;  %v3299_v5 = vld [vmem:[%s5956_s1 + $0x168] sm:$0xff]  ;;  %vm3989_vm1 = vmmov 0  }
  0x35   :  { %267 = vmatprep.subr.mxu0 %v3301_v1  ;;  %503 = vmatprep.subr.mxu1 %v148_v2  ;;  %v146_v6 = vld [vmem:[%s5956_s1 + $0xa8] sm:$0xff]  ;;  %v3298_v7 = vld [vmem:[%s5956_s1 + $0x160] sm:$0xff]  ;;  %v3297_v9 = vld [vmem:[%s5956_s1 + $0x158] sm:$0xff] }
  0x36   :  { %268 = vmatpush1.msra.mxu0 %v3300_v3  ;;  %504 = vmatpush1.msra.mxu1 %v147_v4  ;;  %v145_v8 = vld [vmem:[%s5956_s1 + $0xa0] sm:$0xff]  ;;  %v144_v10 = vld [vmem:[%s5956_s1 + $0x98] sm:$0xff]  ;;  %v3296_v11 = vld [vmem:[%s5956_s1 + $0x150] sm:$0xff] }
  0x37   :  { %269 = vmatprep.subr.mxu0 %v3299_v5  ;;  %505 = vmatprep.subr.mxu1 %v146_v6  ;;  %v143_v12 = vld [vmem:[%s5956_s1 + $0x90] sm:$0xff]  ;;  %v3295_v13 = vld [vmem:[%s5956_s1 + $0x148] sm:$0xff]  ;;  %v3294_v15 = vld [vmem:[%s5956_s1 + $0x140] sm:$0xff] }
  0x38   :  { %270 = vmatpush1.msra.mxu0 %v3298_v7  ;;  %506 = vmatpush1.msra.mxu1 %v145_v8  ;;  %v142_v14 = vld [vmem:[%s5956_s1 + $0x88] sm:$0xff]  ;;  %v141_v16 = vld [vmem:[%s5956_s1 + $0x80] sm:$0xff]  ;;  %v3293_v17 = vld [vmem:[%s5956_s1 + $0x138] sm:$0xff] }
  0x39   :  { %271 = vmatprep.subr.mxu0 %v3297_v9  ;;  %507 = vmatprep.subr.mxu1 %v144_v10  ;;  %v140_v18 = vld [vmem:[%s5956_s1 + $0x78] sm:$0xff]  ;;  %v3292_v19 = vld [vmem:[%s5956_s1 + $0x130] sm:$0xff]  ;;  %v3291_v21 = vld [vmem:[%s5956_s1 + $0x128] sm:$0xff] }
  0x3a   :  { %272 = vmatpush1.msra.mxu0 %v3296_v11  ;;  %508 = vmatpush1.msra.mxu1 %v143_v12  ;;  %v139_v20 = vld [vmem:[%s5956_s1 + $0x70] sm:$0xff]  ;;  %v138_v22 = vld [vmem:[%s5956_s1 + $0x68] sm:$0xff]  ;;  %v3290_v23 = vld [vmem:[%s5956_s1 + $0x120] sm:$0xff] }
  0x3b   :  { %273 = vmatprep.subr.mxu0 %v3295_v13  ;;  %509 = vmatprep.subr.mxu1 %v142_v14  ;;  %v137_v24 = vld [vmem:[%s5956_s1 + $0x60] sm:$0xff]  ;;  %v3289_v25 = vld [vmem:[%s5956_s1 + $0x118] sm:$0xff]  ;;  %v3288_v27 = vld [vmem:[%s5956_s1 + $0x110] sm:$0xff] }
  0x3c   :  { %274 = vmatpush1.msra.mxu0 %v3294_v15  ;;  %510 = vmatpush1.msra.mxu1 %v141_v16  ;;  %v136_v26 = vld [vmem:[%s5956_s1 + $0x58] sm:$0xff]  ;;  %v135_v28 = vld [vmem:[%s5956_s1 + $0x50] sm:$0xff]  ;;  %v3287_v29 = vld [vmem:[%s5956_s1 + $0x108] sm:$0xff] }
  0x3d   :  { %275 = vmatprep.subr.mxu0 %v3293_v17  ;;  %511 = vmatprep.subr.mxu1 %v140_v18  ;;  %v134_v30 = vld [vmem:[%s5956_s1 + $0x48] sm:$0xff]  ;;  %v3286_v31 = vld [vmem:[%s5956_s1 + $0x100] sm:$0xff]  ;;  %v3285_v33 = vld [vmem:[%s5956_s1 + $0xf8] sm:$0xff] }
  0x3e   :  { %276 = vmatpush1.msra.mxu0 %v3292_v19  ;;  %512 = vmatpush1.msra.mxu1 %v139_v20  ;;  %v133_v32 = vld [vmem:[%s5956_s1 + $0x40] sm:$0xff]  ;;  %v132_v34 = vld [vmem:[%s5956_s1 + $0x38] sm:$0xff]  ;;  %v3284_v35 = vld [vmem:[%s5956_s1 + $0xf0] sm:$0xff] }
  0x3f   :  { %277 = vmatprep.subr.mxu0 %v3291_v21  ;;  %513 = vmatprep.subr.mxu1 %v138_v22  ;;  %v131_v36 = vld [vmem:[%s5956_s1 + $0x30] sm:$0xff]  ;;  %v3283_v37 = vld [vmem:[%s5956_s1 + $0xe8] sm:$0xff]  ;;  %v3282_v39 = vld [vmem:[%s5956_s1 + $0xe0] sm:$0xff] }
  0x40   :  { %278 = vmatpush1.msra.mxu0 %v3290_v23  ;;  %514 = vmatpush1.msra.mxu1 %v137_v24  ;;  %v130_v38 = vld [vmem:[%s5956_s1 + $0x28] sm:$0xff]  ;;  %v129_v40 = vld [vmem:[%s5956_s1 + $0x20] sm:$0xff]  ;;  %v3281_v41 = vld [vmem:[%s5956_s1 + $0xd8] sm:$0xff] }
  0x41   :  { %279 = vmatprep.subr.mxu0 %v3289_v25  ;;  %515 = vmatprep.subr.mxu1 %v136_v26  ;;  %v128_v42 = vld [vmem:[%s5956_s1 + $0x18] sm:$0xff]  ;;  %v3280_v43 = vld [vmem:[%s5956_s1 + $0xd0] sm:$0xff]  ;;  %v3279_v45 = vld [vmem:[%s5956_s1 + $0xc8] sm:$0xff] }
  0x42   :  { %280 = vmatpush1.msra.mxu0 %v3288_v27  ;;  %516 = vmatpush1.msra.mxu1 %v135_v28  ;;  %v127_v44 = vld [vmem:[%s5956_s1 + $0x10] sm:$0xff]  ;;  %v126_v46 = vld [vmem:[%s5956_s1 + $0x8] sm:$0xff]  ;;  %v3278_v47 = vld [vmem:[%s5956_s1 + $0xc0] sm:$0xff] }
  0x43   :  { %281 = vmatprep.subr.mxu0 %v3287_v29  ;;  %517 = vmatprep.subr.mxu1 %v134_v30  ;;  %v125_v48 = vld [vmem:[%s5956_s1] sm:$0xff]  ;;  %v94_v49 = vld [vmem:[%s5955_s0 + $0x8] sm:$0xff]  ;;  %v3381_v51 = vld [vmem:[%s5956_s1 + $0x238] sm:$0xff] }
  0x44   :  { %282 = vmatpush1.msra.mxu0 %v3286_v31  ;;  %518 = vmatpush1.msra.mxu1 %v133_v32  ;;  %v93_v50 = vld [vmem:[%s5955_s0] sm:$0xff]  ;;  %v3380_v52 = vld [vmem:[%s5956_s1 + $0x230] sm:$0xff]  ;;  %v3379_v53 = vld [vmem:[%s5956_s1 + $0x228] sm:$0xff] }
  0x45   :  { %283 = vmatprep.subr.mxu0 %v3285_v33  ;;  %519 = vmatprep.subr.mxu1 %v132_v34  ;;  %v4238_v54 = vld [vmem:[%s5955_s0 + $0x10] sm:$0xff]  ;;  %v3378_v55 = vld [vmem:[%s5956_s1 + $0x220] sm:$0xff]  ;;  %v3377_v56 = vld [vmem:[%s5956_s1 + $0x218] sm:$0xff] }
  0x46   :  { %284 = vmatpush1.msra.mxu0 %v3284_v35  ;;  %520 = vmatpush1.msra.mxu1 %v131_v36  ;;  %v4255_v57 = vld [vmem:[%s5955_s0 + $0x18] sm:$0xff]  ;;  %v3432_v59 = vld [vmem:[%s5956_s1 + $0x2f0] sm:$0xff]  ;;  %v3431_v61 = vld [vmem:[%s5956_s1 + $0x2e8] sm:$0xff] }
  0x47   :  { %285 = vmatprep.subr.mxu0 %v3283_v37  ;;  %521 = vmatprep.subr.mxu1 %v130_v38  ;;  %v3433_v58 = vld [vmem:[%s5956_s1 + $0x2f8] sm:$0xff]  ;;  %v3376_v60 = vld [vmem:[%s5956_s1 + $0x210] sm:$0xff]  ;;  %v3375_v62 = vld [vmem:[%s5956_s1 + $0x208] sm:$0xff] }
  0x48   :  { %286 = vmatpush1.msra.mxu0 %v3282_v39  ;;  %522 = vmatpush1.msra.mxu1 %v129_v40  ;;  %v3430_v63 = vld [vmem:[%s5956_s1 + $0x2e0] sm:$0xff]  ;;  %v3429_v3 = vld [vmem:[%s5956_s1 + $0x2d8] sm:$0xff]  ;;  %v3428_v5 = vld [vmem:[%s5956_s1 + $0x2d0] sm:$0xff] }
  0x49   :  { %287 = vmatprep.subr.mxu0 %v3281_v41  ;;  %523 = vmatprep.subr.mxu1 %v128_v42  ;;  %v4284_v1 = vld [vmem:[%s5955_s0 + $0x20] sm:$0xff]  ;;  %v3373_v4 = vld [vmem:[%s5956_s1 + $0x1f8] sm:$0xff]  ;;  %v4307_v6 = vld [vmem:[%s5955_s0 + $0x28] sm:$0xff] }
  0x4a   :  { %288 = vmatpush1.msra.mxu0 %v3280_v43  ;;  %524 = vmatpush1.msra.mxu1 %v127_v44  ;;  %v3374_v2 = vld [vmem:[%s5956_s1 + $0x200] sm:$0xff]  ;;  %v3372_v7 = vld [vmem:[%s5956_s1 + $0x1f0] sm:$0xff]  ;;  %v3427_v8 = vld [vmem:[%s5956_s1 + $0x2c8] sm:$0xff] }
  0x4b   :  { %289 = vmatprep.subr.mxu0 %v3279_v45  ;;  %525 = vmatprep.subr.mxu1 %v126_v46  ;;  %v3371_v9 = vld [vmem:[%s5956_s1 + $0x1e8] sm:$0xff]  ;;  %v3426_v10 = vld [vmem:[%s5956_s1 + $0x2c0] sm:$0xff]  ;;  %v4330_v11 = vld [vmem:[%s5955_s0 + $0x30] sm:$0xff] }
  0x4c   :  { %290 = vmatpush1.msra.mxu0 %v3278_v47  ;;  %526 = vmatpush1.msra.mxu1 %v125_v48  ;;  %v3370_v12 = vld [vmem:[%s5956_s1 + $0x1e0] sm:$0xff]  ;;  %v3425_v13 = vld [vmem:[%s5956_s1 + $0x2b8] sm:$0xff]  ;;  %v3424_v15 = vld [vmem:[%s5956_s1 + $0x2b0] sm:$0xff] }
  0x4d   :  { %3302 = vmatmul.mubr.msk.f32.vlgmr.msra.gmra.mxu0 %vm174_vm0, %v94_v49  ;;  %3330 = vmatmul.mubr.msk.f32.vlgmr.msra.gmra.mxu1 %vm174_vm0, %v93_v50  ;;  %v3369_v14 = vld [vmem:[%s5956_s1 + $0x1d8] sm:$0xff]  ;;  %v3368_v17 = vld [vmem:[%s5956_s1 + $0x1d0] sm:$0xff]  ;;  %v3423_v18 = vld [vmem:[%s5956_s1 + $0x2a8] sm:$0xff] }
  0x4e   :  { %764 = vmatprep.subr.mxu0 %v3381_v51  ;;  %329 = vmatprep.mubr.f32.mxu0 %v5967_v0  ;;  %v4353_v16 = vld [vmem:[%s5955_s0 + $0x38] sm:$0xff]  ;;  %v3367_v19 = vld [vmem:[%s5956_s1 + $0x1c8] sm:$0xff]  ;;  %v3422_v20 = vld [vmem:[%s5956_s1 + $0x2a0] sm:$0xff] }
  0x4f   :  { %765 = vmatpush1.msra.mxu0 %v3380_v52  ;;  %565 = vmatprep.mubr.f32.mxu1 %v5967_v0  ;;  %v4376_v21 = vld [vmem:[%s5955_s0 + $0x40] sm:$0xff]  ;;  %v3421_v23 = vld [vmem:[%s5956_s1 + $0x298] sm:$0xff]  ;;  %v3420_v25 = vld [vmem:[%s5956_s1 + $0x290] sm:$0xff] }
  0x50   :  { %766 = vmatprep.subr.mxu0 %v3379_v53  ;;  %1081 = vmatprep.subr.mxu1 %v3433_v58  ;;  %v3366_v22 = vld [vmem:[%s5956_s1 + $0x1c0] sm:$0xff]  ;;  %v3365_v24 = vld [vmem:[%s5956_s1 + $0x1b8] sm:$0xff]  ;;  %v4399_v26 = vld [vmem:[%s5955_s0 + $0x48] sm:$0xff] }
  0x51   :  { %3303 = vmatmul.mubr.msk.f32.gmra.mxu0 %vm174_vm0, %v4238_v54  ;;  %3331 = vmatmul.mubr.msk.f32.gmra.mxu1 %vm174_vm0, %v94_v49  ;;  %v3364_v27 = vld [vmem:[%s5956_s1 + $0x1b0] sm:$0xff]  ;;  %v3419_v28 = vld [vmem:[%s5956_s1 + $0x288] sm:$0xff]  ;;  %v3418_v30 = vld [vmem:[%s5956_s1 + $0x280] sm:$0xff] }
  0x52   :  { %335 = vmatprep.mubr.f32.mxu0 %v5967_v0  ;;  %571 = vmatprep.mubr.f32.mxu1 %v5967_v0  ;;  %v3363_v29 = vld [vmem:[%s5956_s1 + $0x1a8] sm:$0xff]  ;;  %v4422_v31 = vld [vmem:[%s5955_s0 + $0x50] sm:$0xff]  ;;  %v3362_v32 = vld [vmem:[%s5956_s1 + $0x1a0] sm:$0xff] }
  0x53   :  { %767 = vmatpush1.msra.mxu0 %v3378_v55  ;;  %1082 = vmatpush1.msra.mxu1 %v3432_v59  ;;  %v3417_v33 = vld [vmem:[%s5956_s1 + $0x278] sm:$0xff]  ;;  %v3416_v35 = vld [vmem:[%s5956_s1 + $0x270] sm:$0xff]  ;;  %v3415_v38 = vld [vmem:[%s5956_s1 + $0x268] sm:$0xff] }
  0x54   :  { %768 = vmatprep.subr.mxu0 %v3377_v56  ;;  %1083 = vmatprep.subr.mxu1 %v3431_v61  ;;  %v3361_v34 = vld [vmem:[%s5956_s1 + $0x198] sm:$0xff]  ;;  %v3360_v37 = vld [vmem:[%s5956_s1 + $0x190] sm:$0xff]  ;;  %v3359_v39 = vld [vmem:[%s5956_s1 + $0x188] sm:$0xff] }
  0x55   :  { %3304 = vmatmul.mubr.msk.f32.gmra.mxu0 %vm174_vm0, %v4255_v57  ;;  %3332 = vmatmul.mubr.msk.f32.gmra.mxu1 %vm174_vm0, %v4238_v54  ;;  %v4445_v36 = vld [vmem:[%s5955_s0 + $0x58] sm:$0xff]  ;;  %v3414_v40 = vld [vmem:[%s5956_s1 + $0x260] sm:$0xff]  ;;  %v3412_v44 = vld [vmem:[%s5956_s1 + $0x250] sm:$0xff] }
  0x56   :  { %341 = vmatprep.mubr.f32.mxu0 %v5967_v0  ;;  %577 = vmatprep.mubr.f32.mxu1 %v5967_v0  ;;  %v4468_v41 = vld [vmem:[%s5955_s0 + $0x60] sm:$0xff]  ;;  %v3413_v43 = vld [vmem:[%s5956_s1 + $0x258] sm:$0xff]  ;;  %v4491_v46 = vld [vmem:[%s5955_s0 + $0x68] sm:$0xff] }
  0x57   :  { %769 = vmatpush1.msra.mxu0 %v3376_v60  ;;  %1084 = vmatpush1.msra.mxu1 %v3430_v63  ;;  %v3358_v42 = vld [vmem:[%s5956_s1 + $0x180] sm:$0xff]  ;;  %v3485_v45 = vld [vmem:[%s5956_s1 + $0x3b8] sm:$0xff]  ;;  %v3411_v47 = vld [vmem:[%s5956_s1 + $0x248] sm:$0xff] }
  0x58   :  { %770 = vmatprep.subr.mxu0 %v3375_v62  ;;  %1085 = vmatprep.subr.mxu1 %v3429_v3  ;;  %v3410_v48 = vld [vmem:[%s5956_s1 + $0x240] sm:$0xff]  ;;  %v4508_v49 = vld [vmem:[%s5955_s0 + $0x70] sm:$0xff]  ;;  %v4519_v50 = vld [vmem:[%s5955_s0 + $0x78] sm:$0xff] }
  0x59   :  { %3305 = vmatmul.mubr.msk.f32.gmra.mxu0 %vm174_vm0, %v4284_v1  ;;  %3333 = vmatmul.mubr.msk.f32.gmra.mxu1 %vm174_vm0, %v4255_v57  ;;  %v4530_v51 = vld [vmem:[%s5955_s0 + $0x80] sm:$0xff]  ;;  %v4541_v52 = vld [vmem:[%s5955_s0 + $0x88] sm:$0xff]  ;;  %v4552_v53 = vld [vmem:[%s5955_s0 + $0x90] sm:$0xff] }
  0x5a   :  { %347 = vmatprep.mubr.f32.mxu0 %v5967_v0  ;;  %583 = vmatprep.mubr.f32.mxu1 %v5967_v0  ;;  %v4563_v55 = vld [vmem:[%s5955_s0 + $0x98] sm:$0xff]  ;;  %v4574_v56 = vld [vmem:[%s5955_s0 + $0xa0] sm:$0xff]  ;;  %v4585_v58 = vld [vmem:[%s5955_s0 + $0xa8] sm:$0xff] }
  0x5b   :  { %771 = vmatpush1.msra.mxu0 %v3374_v2  ;;  %1086 = vmatpush1.msra.mxu1 %v3428_v5  ;;  %v4596_v59 = vld [vmem:[%s5955_s0 + $0xb0] sm:$0xff]  ;;  %v4607_v60 = vld [vmem:[%s5955_s0 + $0xb8] sm:$0xff]  ;;  %v4618_v61 = vld [vmem:[%s5955_s0 + $0xc0] sm:$0xff] }
  0x5c   :  { %772 = vmatprep.subr.mxu0 %v3373_v4  ;;  %1087 = vmatprep.subr.mxu1 %v3427_v8  ;;  %v4629_v62 = vld [vmem:[%s5955_s0 + $0xc8] sm:$0xff]  ;;  %v4640_v63 = vld [vmem:[%s5955_s0 + $0xd0] sm:$0xff]  ;;  %v4651_v2 = vld [vmem:[%s5955_s0 + $0xd8] sm:$0xff] }
  0x5d   :  { %3306 = vmatmul.mubr.msk.f32.gmra.mxu0 %vm174_vm0, %v4307_v6  ;;  %3334 = vmatmul.mubr.msk.f32.gmra.mxu1 %vm174_vm0, %v4284_v1  ;;  %v4662_v3 = vld [vmem:[%s5955_s0 + $0xe0] sm:$0xff]  ;;  %v3484_v4 = vld [vmem:[%s5956_s1 + $0x3b0] sm:$0xff]  ;;  %v3483_v5 = vld [vmem:[%s5956_s1 + $0x3a8] sm:$0xff] }
  0x5e   :  { %353 = vmatprep.mubr.f32.mxu0 %v5967_v0  ;;  %589 = vmatprep.mubr.f32.mxu1 %v5967_v0  ;;  %v3481_v8 = vld [vmem:[%s5956_s1 + $0x398] sm:$0xff] }
  0x5f   :  { %773 = vmatpush1.msra.mxu0 %v3372_v7  ;;  %1088 = vmatpush1.msra.mxu1 %v3426_v10  ;;  %v3482_v7 = vld [vmem:[%s5956_s1 + $0x3a0] sm:$0xff]  ;;  %v3477_v10 = vld [vmem:[%s5956_s1 + $0x378] sm:$0xff] }
  0x60   :  { %774 = vmatprep.subr.mxu0 %v3371_v9  ;;  %1089 = vmatprep.subr.mxu1 %v3425_v13  ;;  %v3479_v9 = vld [vmem:[%s5956_s1 + $0x388] sm:$0xff] }
  0x61   :  { %3307 = vmatmul.mubr.msk.f32.gmra.mxu0 %vm174_vm0, %v4330_v11  ;;  %3335 = vmatmul.mubr.msk.f32.gmra.mxu1 %vm174_vm0, %v4307_v6  ;;  %v3475_v13 = vld [vmem:[%s5956_s1 + $0x368] sm:$0xff] }
  0x62   :  { %359 = vmatprep.mubr.f32.mxu0 %v5967_v0  ;;  %595 = vmatprep.mubr.f32.mxu1 %v5967_v0 }
  0x63   :  { %775 = vmatpush1.msra.mxu0 %v3370_v12  ;;  %1090 = vmatpush1.msra.mxu1 %v3424_v15  ;;  %v3476_v12 = vld [vmem:[%s5956_s1 + $0x370] sm:$0xff]  ;;  %v3473_v15 = vld [vmem:[%s5956_s1 + $0x358] sm:$0xff] }
  0x64   :  { %776 = vmatprep.subr.mxu0 %v3369_v14  ;;  %1091 = vmatprep.subr.mxu1 %v3423_v18  ;;  %v3474_v14 = vld [vmem:[%s5956_s1 + $0x360] sm:$0xff]  ;;  %v3471_v18 = vld [vmem:[%s5956_s1 + $0x348] sm:$0xff] }
  0x65   :  { %3308 = vmatmul.mubr.msk.f32.gmra.mxu0 %vm174_vm0, %v4353_v16  ;;  %3336 = vmatmul.mubr.msk.f32.gmra.mxu1 %vm174_vm0, %v4330_v11 }
  0x66   :  { %365 = vmatprep.mubr.f32.mxu0 %v5967_v0  ;;  %601 = vmatprep.mubr.f32.mxu1 %v5967_v0 }
  0x67   :  { %777 = vmatpush1.msra.mxu0 %v3368_v17  ;;  %1092 = vmatpush1.msra.mxu1 %v3422_v20  ;;  %v3472_v17 = vld [vmem:[%s5956_s1 + $0x350] sm:$0xff]  ;;  %v3469_v20 = vld [vmem:[%s5956_s1 + $0x338] sm:$0xff] }
  0x68   :  { %778 = vmatprep.subr.mxu0 %v3367_v19  ;;  %1093 = vmatprep.subr.mxu1 %v3421_v23  ;;  %v3470_v19 = vld [vmem:[%s5956_s1 + $0x340] sm:$0xff]  ;;  %v3467_v23 = vld [vmem:[%s5956_s1 + $0x328] sm:$0xff] }
  0x69   :  { %3309 = vmatmul.mubr.msk.f32.gmra.mxu0 %vm174_vm0, %v4376_v21  ;;  %3337 = vmatmul.mubr.msk.f32.gmra.mxu1 %vm174_vm0, %v4353_v16 }
  0x6a   :  { %371 = vmatprep.mubr.f32.mxu0 %v5967_v0  ;;  %607 = vmatprep.mubr.f32.mxu1 %v5967_v0 }
  0x6b   :  { %779 = vmatpush1.msra.mxu0 %v3366_v22  ;;  %1094 = vmatpush1.msra.mxu1 %v3420_v25  ;;  %v3468_v22 = vld [vmem:[%s5956_s1 + $0x330] sm:$0xff]  ;;  %v3465_v25 = vld [vmem:[%s5956_s1 + $0x318] sm:$0xff] }
  0x6c   :  { %780 = vmatprep.subr.mxu0 %v3365_v24  ;;  %1095 = vmatprep.subr.mxu1 %v3419_v28  ;;  %v3466_v24 = vld [vmem:[%s5956_s1 + $0x320] sm:$0xff]  ;;  %v3463_v28 = vld [vmem:[%s5956_s1 + $0x308] sm:$0xff] }
  0x6d   :  { %3310 = vmatmul.mubr.msk.f32.gmra.mxu0 %vm174_vm0, %v4399_v26  ;;  %3338 = vmatmul.mubr.msk.f32.gmra.mxu1 %vm174_vm0, %v4376_v21 }
  0x6e   :  { %377 = vmatprep.mubr.f32.mxu0 %v5967_v0  ;;  %613 = vmatprep.mubr.f32.mxu1 %v5967_v0 }
  0x6f   :  { %781 = vmatpush1.msra.mxu0 %v3364_v27  ;;  %1096 = vmatpush1.msra.mxu1 %v3418_v30  ;;  %v3464_v27 = vld [vmem:[%s5956_s1 + $0x310] sm:$0xff] }
  0x70   :  { %782 = vmatprep.subr.mxu0 %v3363_v29  ;;  %1097 = vmatprep.subr.mxu1 %v3417_v33  ;;  %v3462_v29 = vld [vmem:[%s5956_s1 + $0x300] sm:$0xff] }
  0x71   :  { %3311 = vmatmul.mubr.msk.f32.gmra.mxu0 %vm174_vm0, %v4422_v31  ;;  %3339 = vmatmul.mubr.msk.f32.gmra.mxu1 %vm174_vm0, %v4399_v26 }
  0x72   :  { %383 = vmatprep.mubr.f32.mxu0 %v5967_v0  ;;  %619 = vmatprep.mubr.f32.mxu1 %v5967_v0 }
  0x73   :  { %783 = vmatpush1.msra.mxu0 %v3362_v32  ;;  %1098 = vmatpush1.msra.mxu1 %v3416_v35 }
  0x74   :  { %784 = vmatprep.subr.mxu0 %v3361_v34  ;;  %1099 = vmatprep.subr.mxu1 %v3415_v38 }
  0x75   :  { %3312 = vmatmul.mubr.msk.f32.gmra.mxu0 %vm174_vm0, %v4445_v36  ;;  %3340 = vmatmul.mubr.msk.f32.gmra.mxu1 %vm174_vm0, %v4422_v31 }
  0x76   :  { %389 = vmatprep.mubr.f32.mxu0 %v5967_v0  ;;  %625 = vmatprep.mubr.f32.mxu1 %v5967_v0 }
  0x77   :  { %785 = vmatpush1.msra.mxu0 %v3360_v37  ;;  %1100 = vmatpush1.msra.mxu1 %v3414_v40 }
  0x78   :  { %786 = vmatprep.subr.mxu0 %v3359_v39  ;;  %1101 = vmatprep.subr.mxu1 %v3413_v43 }
  0x79   :  { %3313 = vmatmul.mubr.msk.f32.gmra.mxu0 %vm174_vm0, %v4468_v41  ;;  %3341 = vmatmul.mubr.msk.f32.gmra.mxu1 %vm174_vm0, %v4445_v36 }
  0x7a   :  { %395 = vmatprep.mubr.f32.mxu0 %v5967_v0  ;;  %631 = vmatprep.mubr.f32.mxu1 %v5967_v0 }
  0x7b   :  { %787 = vmatpush1.msra.mxu0 %v3358_v42  ;;  %1102 = vmatpush1.msra.mxu1 %v3412_v44 }
  0x7c   :  { %1398 = vmatprep.subr.mxu0 %v3485_v45  ;;  %1103 = vmatprep.subr.mxu1 %v3411_v47 }
  0x7d   :  { %3314 = vmatmul.mubr.msk.f32.gmra.mxu0 %vm174_vm0, %v4491_v46  ;;  %3342 = vmatmul.mubr.msk.f32.gmra.mxu1 %vm174_vm0, %v4468_v41 }
  0x7e   :  { %401 = vmatprep.mubr.f32.mxu0 %v5967_v0  ;;  %637 = vmatprep.mubr.f32.mxu1 %v5967_v0 }
  0x7f   :  { %1104 = vmatpush1.msra.mxu1 %v3410_v48 }
  0x81   :  { %3315 = vmatmul.mubr.msk.f32.gmra.mxu0 %vm174_vm0, %v4508_v49  ;;  %3343 = vmatmul.mubr.msk.f32.gmra.mxu1 %vm174_vm0, %v4491_v46 }
  0x82   :  { %407 = vmatprep.mubr.f32.mxu0 %v5967_v0  ;;  %643 = vmatprep.mubr.f32.mxu1 %v5967_v0 }
  0x85   :  { %3316 = vmatmul.mubr.msk.f32.gmra.mxu0 %vm174_vm0, %v4519_v50  ;;  %3344 = vmatmul.mubr.msk.f32.gmra.mxu1 %vm174_vm0, %v4508_v49 }
  0x86   :  { %413 = vmatprep.mubr.f32.mxu0 %v5967_v0  ;;  %649 = vmatprep.mubr.f32.mxu1 %v5967_v0 }
  0x89   :  { %3317 = vmatmul.mubr.msk.f32.gmra.mxu0 %vm174_vm0, %v4530_v51  ;;  %3345 = vmatmul.mubr.msk.f32.gmra.mxu1 %vm174_vm0, %v4519_v50 }
  0x8a   :  { %419 = vmatprep.mubr.f32.mxu0 %v5967_v0  ;;  %655 = vmatprep.mubr.f32.mxu1 %v5967_v0 }
  0x8d   :  { %3318 = vmatmul.mubr.msk.f32.gmra.mxu0 %vm174_vm0, %v4541_v52  ;;  %3346 = vmatmul.mubr.msk.f32.gmra.mxu1 %vm174_vm0, %v4530_v51 }
  0x8e   :  { %425 = vmatprep.mubr.f32.mxu0 %v5967_v0  ;;  %661 = vmatprep.mubr.f32.mxu1 %v5967_v0 }
  0x91   :  { %3319 = vmatmul.mubr.msk.f32.gmra.mxu0 %vm174_vm0, %v4552_v53  ;;  %3347 = vmatmul.mubr.msk.f32.gmra.mxu1 %vm174_vm0, %v4541_v52 }
  0x92   :  { %431 = vmatprep.mubr.f32.mxu0 %v5967_v0  ;;  %667 = vmatprep.mubr.f32.mxu1 %v5967_v0 }
  0x95   :  { %3320 = vmatmul.mubr.msk.f32.gmra.mxu0 %vm174_vm0, %v4563_v55  ;;  %3348 = vmatmul.mubr.msk.f32.gmra.mxu1 %vm174_vm0, %v4552_v53 }
  0x96   :  { %437 = vmatprep.mubr.f32.mxu0 %v5967_v0  ;;  %673 = vmatprep.mubr.f32.mxu1 %v5967_v0 }
  0x99   :  { %3321 = vmatmul.mubr.msk.f32.gmra.mxu0 %vm174_vm0, %v4574_v56  ;;  %3349 = vmatmul.mubr.msk.f32.gmra.mxu1 %vm174_vm0, %v4563_v55 }
  0x9a   :  { %443 = vmatprep.mubr.f32.mxu0 %v5967_v0  ;;  %679 = vmatprep.mubr.f32.mxu1 %v5967_v0 }
  0x9d   :  { %3322 = vmatmul.mubr.msk.f32.gmra.mxu0 %vm174_vm0, %v4585_v58  ;;  %3350 = vmatmul.mubr.msk.f32.gmra.mxu1 %vm174_vm0, %v4574_v56 }
  0x9e   :  { %449 = vmatprep.mubr.f32.mxu0 %v5967_v0  ;;  %685 = vmatprep.mubr.f32.mxu1 %v5967_v0 }
  0xa1   :  { %3323 = vmatmul.mubr.msk.f32.gmra.mxu0 %vm174_vm0, %v4596_v59  ;;  %3351 = vmatmul.mubr.msk.f32.gmra.mxu1 %vm174_vm0, %v4585_v58 }
  0xa2   :  { %455 = vmatprep.mubr.f32.mxu0 %v5967_v0  ;;  %691 = vmatprep.mubr.f32.mxu1 %v5967_v0 }
  0xa5   :  { %3324 = vmatmul.mubr.msk.f32.gmra.mxu0 %vm174_vm0, %v4607_v60  ;;  %3352 = vmatmul.mubr.msk.f32.gmra.mxu1 %vm174_vm0, %v4596_v59 }
  0xa6   :  { %461 = vmatprep.mubr.f32.mxu0 %v5967_v0  ;;  %697 = vmatprep.mubr.f32.mxu1 %v5967_v0 }
  0xa9   :  { %3325 = vmatmul.mubr.msk.f32.gmra.mxu0 %vm174_vm0, %v4618_v61  ;;  %3353 = vmatmul.mubr.msk.f32.gmra.mxu1 %vm174_vm0, %v4607_v60 }
  0xaa   :  { %467 = vmatprep.mubr.f32.mxu0 %v5967_v0  ;;  %703 = vmatprep.mubr.f32.mxu1 %v5967_v0 }
  0xad   :  { %3326 = vmatmul.mubr.msk.f32.gmra.mxu0 %vm174_vm0, %v4629_v62  ;;  %3354 = vmatmul.mubr.msk.f32.gmra.mxu1 %vm174_vm0, %v4618_v61 }
  0xae   :  { %473 = vmatprep.mubr.f32.mxu0 %v5967_v0  ;;  %709 = vmatprep.mubr.f32.mxu1 %v5967_v0 }
  0xb1   :  { %3327 = vmatmul.mubr.msk.f32.gmra.mxu0 %vm174_vm0, %v4640_v63  ;;  %3355 = vmatmul.mubr.msk.f32.gmra.mxu1 %vm174_vm0, %v4629_v62 }
  0xb2   :  { %479 = vmatprep.mubr.f32.mxu0 %v5967_v0  ;;  %715 = vmatprep.mubr.f32.mxu1 %v5967_v0 }
  0xb5   :  { %3328 = vmatmul.mubr.msk.f32.gmra.mxu0 %vm174_vm0, %v4651_v2  ;;  %3356 = vmatmul.mubr.msk.f32.gmra.mxu1 %vm174_vm0, %v4640_v63 }
  0xb6   :  { %485 = vmatprep.mubr.f32.mxu0 %v5967_v0  ;;  %721 = vmatprep.mubr.f32.mxu1 %v5967_v0 }
  0xb9   :  { %3329 = vmatmul.mubr.msk.f32.gmra.mxu0 %vm174_vm0, %v4662_v3  ;;  %3357 = vmatmul.mubr.msk.f32.gmra.mxu1 %vm174_vm0, %v4651_v2 }
  0xba   :  { %820 = vmatprep.mubr.f32.mxu0 %v5967_v0  ;;  %1137 = vmatprep.mubr.f32.mxu1 %v5967_v0 }
  0xbd   :  { %3382 = vmatmul.mubr.msk.f32.vlgmr.msra.gmra.mxu0 %vm174_vm0, %v4238_v54  ;;  %3434 = vmatmul.mubr.msk.f32.vlgmr.msra.gmra.mxu1 %vm174_vm0, %v4255_v57  ;;  %v3480_v54 = vld [vmem:[%s5956_s1 + $0x390] sm:$0xff] }
  0xbe   :  { %1399 = vmatpush1.msra.mxu0 %v3484_v4  ;;  %826 = vmatprep.mubr.f32.mxu0 %v5967_v0 }
  0xbf   :  { %1143 = vmatprep.mubr.f32.mxu1 %v5967_v0  ;;  %1400 = vmatprep.subr.mxu0 %v3483_v5 }
  0xc0   :  { %1401 = vmatpush1.msra.mxu0 %v3482_v7 }
  0xc1   :  { %3383 = vmatmul.mubr.msk.f32.gmra.mxu0 %vm174_vm0, %v4255_v57  ;;  %3435 = vmatmul.mubr.msk.f32.gmra.mxu1 %vm174_vm0, %v4284_v1  ;;  %v3478_v57 = vld [vmem:[%s5956_s1 + $0x380] sm:$0xff] }
  0xc2   :  { %832 = vmatprep.mubr.f32.mxu0 %v5967_v0  ;;  %1149 = vmatprep.mubr.f32.mxu1 %v5967_v0 }
  0xc3   :  { %1402 = vmatprep.subr.mxu0 %v3481_v8 }
  0xc4   :  { %1403 = vmatpush1.msra.mxu0 %v3480_v54 }
  0xc5   :  { %3384 = vmatmul.mubr.msk.f32.gmra.mxu0 %vm174_vm0, %v4284_v1  ;;  %3436 = vmatmul.mubr.msk.f32.gmra.mxu1 %vm174_vm0, %v4307_v6 }
  0xc6   :  { %838 = vmatprep.mubr.f32.mxu0 %v5967_v0  ;;  %1155 = vmatprep.mubr.f32.mxu1 %v5967_v0 }
  0xc7   :  { %1404 = vmatprep.subr.mxu0 %v3479_v9 }
  0xc8   :  { %1405 = vmatpush1.msra.mxu0 %v3478_v57 }
  0xc9   :  { %3385 = vmatmul.mubr.msk.f32.gmra.mxu0 %vm174_vm0, %v4307_v6  ;;  %3437 = vmatmul.mubr.msk.f32.gmra.mxu1 %vm174_vm0, %v4330_v11 }
  0xca   :  { %844 = vmatprep.mubr.f32.mxu0 %v5967_v0  ;;  %1161 = vmatprep.mubr.f32.mxu1 %v5967_v0 }
  0xcb   :  { %1406 = vmatprep.subr.mxu0 %v3477_v10 }
  0xcc   :  { %1407 = vmatpush1.msra.mxu0 %v3476_v12 }
  0xcd   :  { %3386 = vmatmul.mubr.msk.f32.gmra.mxu0 %vm174_vm0, %v4330_v11  ;;  %3438 = vmatmul.mubr.msk.f32.gmra.mxu1 %vm174_vm0, %v4353_v16 }
  0xce   :  { %850 = vmatprep.mubr.f32.mxu0 %v5967_v0  ;;  %1167 = vmatprep.mubr.f32.mxu1 %v5967_v0 }
  0xcf   :  { %1408 = vmatprep.subr.mxu0 %v3475_v13 }
  0xd0   :  { %1409 = vmatpush1.msra.mxu0 %v3474_v14 }
  0xd1   :  { %3387 = vmatmul.mubr.msk.f32.gmra.mxu0 %vm174_vm0, %v4353_v16  ;;  %3439 = vmatmul.mubr.msk.f32.gmra.mxu1 %vm174_vm0, %v4376_v21 }
  0xd2   :  { %856 = vmatprep.mubr.f32.mxu0 %v5967_v0  ;;  %1173 = vmatprep.mubr.f32.mxu1 %v5967_v0 }
  0xd3   :  { %1410 = vmatprep.subr.mxu0 %v3473_v15 }
  0xd4   :  { %1411 = vmatpush1.msra.mxu0 %v3472_v17 }
  0xd5   :  { %3388 = vmatmul.mubr.msk.f32.gmra.mxu0 %vm174_vm0, %v4376_v21  ;;  %3440 = vmatmul.mubr.msk.f32.gmra.mxu1 %vm174_vm0, %v4399_v26 }
  0xd6   :  { %862 = vmatprep.mubr.f32.mxu0 %v5967_v0  ;;  %1179 = vmatprep.mubr.f32.mxu1 %v5967_v0 }
  0xd7   :  { %1412 = vmatprep.subr.mxu0 %v3471_v18  ;;  %v4930_v18 = vld [vmem:[%s5955_s0 + $0xe8] sm:$0xff] }
  0xd8   :  { %1413 = vmatpush1.msra.mxu0 %v3470_v19 }
  0xd9   :  { %3389 = vmatmul.mubr.msk.f32.gmra.mxu0 %vm174_vm0, %v4399_v26  ;;  %3441 = vmatmul.mubr.msk.f32.gmra.mxu1 %vm174_vm0, %v4422_v31 }
  0xda   :  { %868 = vmatprep.mubr.f32.mxu0 %v5967_v0  ;;  %1185 = vmatprep.mubr.f32.mxu1 %v5967_v0 }
  0xdb   :  { %1414 = vmatprep.subr.mxu0 %v3469_v20 }
  0xdc   :  { %1415 = vmatpush1.msra.mxu0 %v3468_v22 }
  0xdd   :  { %3390 = vmatmul.mubr.msk.f32.gmra.mxu0 %vm174_vm0, %v4422_v31  ;;  %3442 = vmatmul.mubr.msk.f32.gmra.mxu1 %vm174_vm0, %v4445_v36 }
  0xde   :  { %874 = vmatprep.mubr.f32.mxu0 %v5967_v0  ;;  %1191 = vmatprep.mubr.f32.mxu1 %v5967_v0 }
  0xdf   :  { %1416 = vmatprep.subr.mxu0 %v3467_v23 }
  0xe0   :  { %1417 = vmatpush1.msra.mxu0 %v3466_v24 }
  0xe1   :  { %3391 = vmatmul.mubr.msk.f32.gmra.mxu0 %vm174_vm0, %v4445_v36  ;;  %3443 = vmatmul.mubr.msk.f32.gmra.mxu1 %vm174_vm0, %v4468_v41 }
  0xe2   :  { %880 = vmatprep.mubr.f32.mxu0 %v5967_v0  ;;  %1197 = vmatprep.mubr.f32.mxu1 %v5967_v0 }
  0xe3   :  { %1418 = vmatprep.subr.mxu0 %v3465_v25  ;;  %v4947_v25 = vld [vmem:[%s5955_s0 + $0xf0] sm:$0xff] }
  0xe4   :  { %1419 = vmatpush1.msra.mxu0 %v3464_v27 }
  0xe5   :  { %3392 = vmatmul.mubr.msk.f32.gmra.mxu0 %vm174_vm0, %v4468_v41  ;;  %3444 = vmatmul.mubr.msk.f32.gmra.mxu1 %vm174_vm0, %v4491_v46 }
  0xe6   :  { %886 = vmatprep.mubr.f32.mxu0 %v5967_v0  ;;  %1203 = vmatprep.mubr.f32.mxu1 %v5967_v0 }
  0xe7   :  { %1420 = vmatprep.subr.mxu0 %v3463_v28 }
  0xe8   :  { %1421 = vmatpush1.msra.mxu0 %v3462_v29 }
  0xe9   :  { %3393 = vmatmul.mubr.msk.f32.gmra.mxu0 %vm174_vm0, %v4491_v46  ;;  %3445 = vmatmul.mubr.msk.f32.gmra.mxu1 %vm174_vm0, %v4508_v49 }
  0xea   :  { %892 = vmatprep.mubr.f32.mxu0 %v5967_v0  ;;  %1209 = vmatprep.mubr.f32.mxu1 %v5967_v0 }
  0xed   :  { %3394 = vmatmul.mubr.msk.f32.gmra.mxu0 %vm174_vm0, %v4508_v49  ;;  %3446 = vmatmul.mubr.msk.f32.gmra.mxu1 %vm174_vm0, %v4519_v50 }
  0xee   :  { %898 = vmatprep.mubr.f32.mxu0 %v5967_v0  ;;  %1215 = vmatprep.mubr.f32.mxu1 %v5967_v0 }
  0xf1   :  { %3395 = vmatmul.mubr.msk.f32.gmra.mxu0 %vm174_vm0, %v4519_v50  ;;  %3447 = vmatmul.mubr.msk.f32.gmra.mxu1 %vm174_vm0, %v4530_v51 }
  0xf2   :  { %904 = vmatprep.mubr.f32.mxu0 %v5967_v0  ;;  %1221 = vmatprep.mubr.f32.mxu1 %v5967_v0 }
  0xf5   :  { %3396 = vmatmul.mubr.msk.f32.gmra.mxu0 %vm174_vm0, %v4530_v51  ;;  %3448 = vmatmul.mubr.msk.f32.gmra.mxu1 %vm174_vm0, %v4541_v52 }
  0xf6   :  { %910 = vmatprep.mubr.f32.mxu0 %v5967_v0  ;;  %1227 = vmatprep.mubr.f32.mxu1 %v5967_v0 }
  0xf9   :  { %3397 = vmatmul.mubr.msk.f32.gmra.mxu0 %vm174_vm0, %v4541_v52  ;;  %3449 = vmatmul.mubr.msk.f32.gmra.mxu1 %vm174_vm0, %v4552_v53 }
  0xfa   :  { %916 = vmatprep.mubr.f32.mxu0 %v5967_v0  ;;  %1233 = vmatprep.mubr.f32.mxu1 %v5967_v0 }
  0xfd   :  { %3398 = vmatmul.mubr.msk.f32.gmra.mxu0 %vm174_vm0, %v4552_v53  ;;  %3450 = vmatmul.mubr.msk.f32.gmra.mxu1 %vm174_vm0, %v4563_v55 }
  0xfe   :  { %922 = vmatprep.mubr.f32.mxu0 %v5967_v0  ;;  %1239 = vmatprep.mubr.f32.mxu1 %v5967_v0 }
 0x101   :  { %3399 = vmatmul.mubr.msk.f32.gmra.mxu0 %vm174_vm0, %v4563_v55  ;;  %3451 = vmatmul.mubr.msk.f32.gmra.mxu1 %vm174_vm0, %v4574_v56 }
 0x102   :  { %928 = vmatprep.mubr.f32.mxu0 %v5967_v0  ;;  %1245 = vmatprep.mubr.f32.mxu1 %v5967_v0 }
 0x105   :  { %3400 = vmatmul.mubr.msk.f32.gmra.mxu0 %vm174_vm0, %v4574_v56  ;;  %3452 = vmatmul.mubr.msk.f32.gmra.mxu1 %vm174_vm0, %v4585_v58 }
 0x106   :  { %934 = vmatprep.mubr.f32.mxu0 %v5967_v0  ;;  %1251 = vmatprep.mubr.f32.mxu1 %v5967_v0 }
 0x109   :  { %3401 = vmatmul.mubr.msk.f32.gmra.mxu0 %vm174_vm0, %v4585_v58  ;;  %3453 = vmatmul.mubr.msk.f32.gmra.mxu1 %vm174_vm0, %v4596_v59 }
 0x10a   :  { %940 = vmatprep.mubr.f32.mxu0 %v5967_v0  ;;  %1257 = vmatprep.mubr.f32.mxu1 %v5967_v0 }
 0x10d   :  { %v325_v30 = vpop.f32.mrf.mxu0  ;;  %v561_v32 = vpop.f32.mrf.mxu1  ;;  %3402 = vmatmul.mubr.msk.f32.gmra.mxu0 %vm174_vm0, %v4596_v59  ;;  %3454 = vmatmul.mubr.msk.f32.gmra.mxu1 %vm174_vm0, %v4607_v60 }
 0x10e   :  { %v4863_v33 = vadd.f32 %v561_v32, %v325_v30  ;;  %946 = vmatprep.mubr.f32.mxu0 %v5967_v0  ;;  %1263 = vmatprep.mubr.f32.mxu1 %v5967_v0 }
 0x10f   :  { %v4867_v34 = vpop.f32.mrf.mxu0  ;;  %v4869_v35 = vpop.f32.mrf.mxu1 }
 0x110   :  { %5970 = vst [vmem:[#allocation12_spill] sm:$0xff] %v4867_v34  ;;  %5971 = vst [vmem:[#allocation13_spill] sm:$0xff] %v4869_v35 }
 0x111   :  { %v331_v37 = vpop.f32.mrf.mxu0  ;;  %v567_v38 = vpop.f32.mrf.mxu1  ;;  %3403 = vmatmul.mubr.msk.f32.gmra.mxu0 %vm174_vm0, %v4607_v60  ;;  %3455 = vmatmul.mubr.msk.f32.gmra.mxu1 %vm174_vm0, %v4618_v61 }
 0x112   :  { %v4875_v39 = vadd.f32 %v567_v38, %v331_v37  ;;  %952 = vmatprep.mubr.f32.mxu0 %v5967_v0  ;;  %1269 = vmatprep.mubr.f32.mxu1 %v5967_v0 }
 0x113   :  { %v4879_v40 = vpop.f32.mrf.mxu0  ;;  %v4881_v42 = vpop.f32.mrf.mxu1 }
 0x114   :  { %5972 = vst [vmem:[#allocation14_spill] sm:$0xff] %v4879_v40  ;;  %5973 = vst [vmem:[#allocation15_spill] sm:$0xff] %v4881_v42 }
 0x115   :  { %v337_v43 = vpop.f32.mrf.mxu0  ;;  %v573_v44 = vpop.f32.mrf.mxu1  ;;  %3404 = vmatmul.mubr.msk.f32.gmra.mxu0 %vm174_vm0, %v4618_v61  ;;  %3456 = vmatmul.mubr.msk.f32.gmra.mxu1 %vm174_vm0, %v4629_v62 }
 0x116   :  { %v4887_v45 = vadd.f32 %v573_v44, %v337_v43  ;;  %958 = vmatprep.mubr.f32.mxu0 %v5967_v0  ;;  %1275 = vmatprep.mubr.f32.mxu1 %v5967_v0 }
 0x117   :  { %v4891_v47 = vpop.f32.mrf.mxu0  ;;  %v4893_v48 = vpop.f32.mrf.mxu1 }
 0x118   :  { %5974 = vst [vmem:[#allocation16_spill] sm:$0xff] %v4891_v47  ;;  %5975 = vst [vmem:[#allocation17_spill] sm:$0xff] %v4893_v48 }
 0x119   :  { %v343_v4 = vpop.f32.mrf.mxu0  ;;  %v579_v5 = vpop.f32.mrf.mxu1  ;;  %3405 = vmatmul.mubr.msk.f32.gmra.mxu0 %vm174_vm0, %v4629_v62  ;;  %3457 = vmatmul.mubr.msk.f32.gmra.mxu1 %vm174_vm0, %v4640_v63 }
 0x11a   :  { %v4899_v7 = vadd.f32 %v579_v5, %v343_v4  ;;  %964 = vmatprep.mubr.f32.mxu0 %v5967_v0  ;;  %1281 = vmatprep.mubr.f32.mxu1 %v5967_v0 }
 0x11b   :  { %v4903_v8 = vpop.f32.mrf.mxu0  ;;  %v4905_v54 = vpop.f32.mrf.mxu1 }
 0x11c   :  { %5976 = vst [vmem:[#allocation18_spill] sm:$0xff] %v4903_v8  ;;  %5977 = vst [vmem:[#allocation19_spill] sm:$0xff] %v4905_v54 }
 0x11d   :  { %v349_v9 = vpop.f32.mrf.mxu0  ;;  %v585_v57 = vpop.f32.mrf.mxu1  ;;  %3406 = vmatmul.mubr.msk.f32.gmra.mxu0 %vm174_vm0, %v4640_v63  ;;  %3458 = vmatmul.mubr.msk.f32.gmra.mxu1 %vm174_vm0, %v4651_v2 }
 0x11e   :  { %v4911_v10 = vadd.f32 %v585_v57, %v349_v9  ;;  %970 = vmatprep.mubr.f32.mxu0 %v5967_v0  ;;  %1287 = vmatprep.mubr.f32.mxu1 %v5967_v0 }
 0x11f   :  { %v4915_v12 = vpop.f32.mrf.mxu0  ;;  %v4917_v13 = vpop.f32.mrf.mxu1 }
 0x120   :  { %5978 = vst [vmem:[#allocation20_spill] sm:$0xff] %v4915_v12  ;;  %5979 = vst [vmem:[#allocation21_spill] sm:$0xff] %v4917_v13  ;;  %v1810_v12 = vld [vmem:[#allocation2 + $0x1a8] sm:$0xff] }
 0x121   :  { %v355_v14 = vpop.f32.mrf.mxu0  ;;  %v591_v15 = vpop.f32.mrf.mxu1  ;;  %3407 = vmatmul.mubr.msk.f32.gmra.mxu0 %vm174_vm0, %v4651_v2  ;;  %3459 = vmatmul.mubr.msk.f32.gmra.mxu1 %vm174_vm0, %v4662_v3 }
 0x122   :  { %v4923_v17 = vadd.f32 %v591_v15, %v355_v14  ;;  %976 = vmatprep.mubr.f32.mxu0 %v5967_v0  ;;  %1293 = vmatprep.mubr.f32.mxu1 %v5967_v0 }
 0x123   :  { %v4932_v19 = vpop.f32.mrf.mxu0  ;;  %v4934_v20 = vpop.f32.mrf.mxu1 }
 0x124   :  { %5980 = vst [vmem:[#allocation22_spill] sm:$0xff] %v4932_v19  ;;  %5981 = vst [vmem:[#allocation23_spill] sm:$0xff] %v4934_v20 }
 0x125   :  { %v361_v22 = vpop.f32.mrf.mxu0  ;;  %v597_v23 = vpop.f32.mrf.mxu1  ;;  %3408 = vmatmul.mubr.msk.f32.gmra.mxu0 %vm174_vm0, %v4662_v3  ;;  %3460 = vmatmul.mubr.msk.f32.gmra.mxu1 %vm174_vm0, %v4930_v18 }
 0x126   :  { %v4940_v24 = vadd.f32 %v597_v23, %v361_v22  ;;  %982 = vmatprep.mubr.f32.mxu0 %v5967_v0  ;;  %1299 = vmatprep.mubr.f32.mxu1 %v5967_v0 }
 0x127   :  { %v4949_v27 = vpop.f32.mrf.mxu0  ;;  %v4951_v28 = vpop.f32.mrf.mxu1 }
 0x128   :  { %5982 = vst [vmem:[#allocation24_spill] sm:$0xff] %v4949_v27  ;;  %5983 = vst [vmem:[#allocation25_spill] sm:$0xff] %v4951_v28 }
 0x129   :  { %v367_v29 = vpop.f32.mrf.mxu0  ;;  %v603_v30 = vpop.f32.mrf.mxu1  ;;  %3409 = vmatmul.mubr.msk.f32.gmra.mxu0 %vm174_vm0, %v4930_v18  ;;  %3461 = vmatmul.mubr.msk.f32.gmra.mxu1 %vm174_vm0, %v4947_v25 }
 0x12a   :  { %v4957_v32 = vadd.f32 %v603_v30, %v367_v29  ;;  %1454 = vmatprep.mubr.f32.mxu0 %v5967_v0  ;;  %1885 = vmatprep.mubr.f32.mxu1 %v5967_v0 }
 0x12b   :  { %v4961_v37 = vpop.f32.mrf.mxu0  ;;  %v4963_v38 = vpop.f32.mrf.mxu1 }
 0x12c   :  { %5984 = vst [vmem:[#allocation26_spill] sm:$0xff] %v4961_v37  ;;  %5985 = vst [vmem:[#allocation27_spill] sm:$0xff] %v4963_v38 }
 0x12d   :  { %v373_v43 = vpop.f32.mrf.mxu0  ;;  %v609_v44 = vpop.f32.mrf.mxu1  ;;  %3486 = vmatmul.mubr.msk.f32.vlgmr.msra.gmra.mxu0 %vm174_vm0, %v4284_v1 }
 0x12e   :  { %v4967_v4 = vadd.f32 %v609_v44, %v373_v43  ;;  %1460 = vmatprep.mubr.f32.mxu0 %v5967_v0 }
 0x12f   :  { %v4970_v5 = vpop.f32.mrf.mxu0  ;;  %v4972_v9 = vpop.f32.mrf.mxu1 }
 0x130   :  { %5986 = vst [vmem:[#allocation28_spill] sm:$0xff] %v4970_v5  ;;  %5987 = vst [vmem:[#allocation29_spill] sm:$0xff] %v4972_v9 }
 0x131   :  { %v379_v57 = vpop.f32.mrf.mxu0  ;;  %v615_v14 = vpop.f32.mrf.mxu1  ;;  %3487 = vmatmul.mubr.msk.f32.gmra.mxu0 %vm174_vm0, %v4307_v6 }
 0x132   :  { %v4976_v15 = vadd.f32 %v615_v14, %v379_v57  ;;  %1466 = vmatprep.mubr.f32.mxu0 %v5967_v0 }
 0x133   :  { %v4979_v22 = vpop.f32.mrf.mxu0  ;;  %v4981_v1 = vpop.f32.mrf.mxu1 }
 0x134   :  { %5988 = vst [vmem:[#allocation30_spill] sm:$0xff] %v4979_v22  ;;  %5989 = vst [vmem:[#allocation31_spill] sm:$0xff] %v4981_v1  ;;  %v1820_v1 = vld [vmem:[#allocation2 + $0x1f8] sm:$0xff] }
 0x135   :  { %v385_v23 = vpop.f32.mrf.mxu0  ;;  %v621_v29 = vpop.f32.mrf.mxu1  ;;  %3488 = vmatmul.mubr.msk.f32.gmra.mxu0 %vm174_vm0, %v4330_v11  ;;  %1821 = vmatprep.subr.mxu1 %v1820_v1 }
 0x136   :  { %v4985_v30 = vadd.f32 %v621_v29, %v385_v23  ;;  %1472 = vmatprep.mubr.f32.mxu0 %v5967_v0  ;;  %v1819_v23 = vld [vmem:[#allocation2 + $0x1f0] sm:$0xff] }
 0x137   :  { %v4988_v43 = vpop.f32.mrf.mxu0  ;;  %v4990_v6 = vpop.f32.mrf.mxu1  ;;  %1822 = vmatpush1.msra.mxu1 %v1819_v23 }
 0x138   :  { %5990 = vst [vmem:[#allocation32_spill] sm:$0xff] %v4988_v43  ;;  %5991 = vst [vmem:[#allocation33_spill] sm:$0xff] %v4990_v6 }
 0x139   :  { %v391_v44 = vpop.f32.mrf.mxu0  ;;  %v627_v57 = vpop.f32.mrf.mxu1  ;;  %3489 = vmatmul.mubr.msk.f32.gmra.mxu0 %vm174_vm0, %v4353_v16 }
 0x13a   :  { %v4994_v14 = vadd.f32 %v627_v57, %v391_v44  ;;  %1478 = vmatprep.mubr.f32.mxu0 %v5967_v0 }
 0x13b   :  { %v4997_v22 = vpop.f32.mrf.mxu0  ;;  %v4999_v11 = vpop.f32.mrf.mxu1 }
 0x13c   :  { %5992 = vst [vmem:[#allocation34_spill] sm:$0xff] %v4997_v22  ;;  %5993 = vst [vmem:[#allocation35_spill] sm:$0xff] %v4999_v11  ;;  %v1818_v11 = vld [vmem:[#allocation2 + $0x1e8] sm:$0xff] }
 0x13d   :  { %v397_v29 = vpop.f32.mrf.mxu0  ;;  %v633_v43 = vpop.f32.mrf.mxu1  ;;  %3490 = vmatmul.mubr.msk.f32.gmra.mxu0 %vm174_vm0, %v4376_v21  ;;  %v1817_v21 = vld [vmem:[#allocation2 + $0x1e0] sm:$0xff]  ;;  %1823 = vmatprep.subr.mxu1 %v1818_v11 }
 0x13e   :  { %v5003_v6 = vadd.f32 %v633_v43, %v397_v29  ;;  %1484 = vmatprep.mubr.f32.mxu0 %v5967_v0  ;;  %1824 = vmatpush1.msra.mxu1 %v1817_v21 }
 0x13f   :  { %v5006_v16 = vpop.f32.mrf.mxu0  ;;  %v5008_v44 = vpop.f32.mrf.mxu1 }
 0x140   :  { %5994 = vst [vmem:[#allocation36_spill] sm:$0xff] %v5006_v16  ;;  %5995 = vst [vmem:[#allocation37_spill] sm:$0xff] %v5008_v44 }
 0x141   :  { %v403_v57 = vpop.f32.mrf.mxu0  ;;  %v639_v22 = vpop.f32.mrf.mxu1  ;;  %3491 = vmatmul.mubr.msk.f32.gmra.mxu0 %vm174_vm0, %v4399_v26 }
 0x142   :  { %v5012_v1 = vadd.f32 %v639_v22, %v403_v57  ;;  %1490 = vmatprep.mubr.f32.mxu0 %v5967_v0  ;;  %v1816_v57 = vld [vmem:[#allocation2 + $0x1d8] sm:$0xff] }
 0x143   :  { %v5015_v23 = vpop.f32.mrf.mxu0  ;;  %v5017_v43 = vpop.f32.mrf.mxu1  ;;  %1825 = vmatprep.subr.mxu1 %v1816_v57  ;;  %v1813_v57 = vld [vmem:[#allocation2 + $0x1c0] sm:$0xff] }
 0x144   :  { %5996 = vst [vmem:[#allocation38_spill] sm:$0xff] %v5015_v23  ;;  %5997 = vst [vmem:[#allocation39_spill] sm:$0xff] %v5017_v43 }
 0x145   :  { %v409_v29 = vpop.f32.mrf.mxu0  ;;  %v645_v16 = vpop.f32.mrf.mxu1  ;;  %3492 = vmatmul.mubr.msk.f32.gmra.mxu0 %vm174_vm0, %v4422_v31  ;;  %v1815_v31 = vld [vmem:[#allocation2 + $0x1d0] sm:$0xff] }
 0x146   :  { %v5021_v44 = vadd.f32 %v645_v16, %v409_v29  ;;  %1496 = vmatprep.mubr.f32.mxu0 %v5967_v0  ;;  %1826 = vmatpush1.msra.mxu1 %v1815_v31 }
 0x147   :  { %v5024_v26 = vpop.f32.mrf.mxu0  ;;  %v5026_v22 = vpop.f32.mrf.mxu1 }
 0x149   :  { %v415_v9 = vpop.f32.mrf.mxu0  ;;  %v651_v23 = vpop.f32.mrf.mxu1  ;;  %3493 = vmatmul.mubr.msk.f32.gmra.mxu0 %vm174_vm0, %v4445_v36 }
 0x14a   :  { %v5030_v11 = vadd.f32 %v651_v23, %v415_v9  ;;  %1502 = vmatprep.mubr.f32.mxu0 %v5967_v0  ;;  %v1814_v23 = vld [vmem:[#allocation2 + $0x1c8] sm:$0xff] }
 0x14b   :  { %v5033_v16 = vpop.f32.mrf.mxu0  ;;  %v5035_v21 = vpop.f32.mrf.mxu1  ;;  %1827 = vmatprep.subr.mxu1 %v1814_v23 }
 0x14c   :  { %1828 = vmatpush1.msra.mxu1 %v1813_v57 }
 0x14d   :  { %v421_v29 = vpop.f32.mrf.mxu0  ;;  %v657_v43 = vpop.f32.mrf.mxu1  ;;  %3494 = vmatmul.mubr.msk.f32.gmra.mxu0 %vm174_vm0, %v4468_v41 }
 0x14e   :  { %v5039_v5 = vadd.f32 %v657_v43, %v421_v29  ;;  %1508 = vmatprep.mubr.f32.mxu0 %v5967_v0 }
 0x14f   :  { %v5042_v36 = vpop.f32.mrf.mxu0  ;;  %v5044_v9 = vpop.f32.mrf.mxu1 }
 0x151   :  { %v427_v38 = vpop.f32.mrf.mxu0  ;;  %v663_v37 = vpop.f32.mrf.mxu1  ;;  %3495 = vmatmul.mubr.msk.f32.gmra.mxu0 %vm174_vm0, %v4491_v46  ;;  %v1812_v46 = vld [vmem:[#allocation2 + $0x1b8] sm:$0xff] }
 0x152   :  { %v5048_v31 = vadd.f32 %v663_v37, %v427_v38  ;;  %1514 = vmatprep.mubr.f32.mxu0 %v5967_v0  ;;  %1829 = vmatprep.subr.mxu1 %v1812_v46  ;;  %v1811_v38 = vld [vmem:[#allocation2 + $0x1b0] sm:$0xff] }
 0x153   :  { %v5051_v41 = vpop.f32.mrf.mxu0  ;;  %v5053_v43 = vpop.f32.mrf.mxu1  ;;  %1830 = vmatpush1.msra.mxu1 %v1811_v38 }
 0x154   :  { %1831 = vmatprep.subr.mxu1 %v1810_v12 }
 0x155   :  { %v433_v29 = vpop.f32.mrf.mxu0  ;;  %v669_v28 = vpop.f32.mrf.mxu1  ;;  %3496 = vmatmul.mubr.msk.f32.gmra.mxu0 %vm174_vm0, %v4508_v49 }
 0x156   :  { %v5057_v27 = vadd.f32 %v669_v28, %v433_v29  ;;  %1520 = vmatprep.mubr.f32.mxu0 %v5967_v0 }
 0x157   :  { %v5060_v23 = vpop.f32.mrf.mxu0  ;;  %v5062_v37 = vpop.f32.mrf.mxu1 }
 0x159   :  { %v439_v57 = vpop.f32.mrf.mxu0  ;;  %v675_v20 = vpop.f32.mrf.mxu1  ;;  %3497 = vmatmul.mubr.msk.f32.gmra.mxu0 %vm174_vm0, %v4519_v50  ;;  %v1809_v50 = vld [vmem:[#allocation2 + $0x1a0] sm:$0xff] }
 0x15a   :  { %v5066_v19 = vadd.f32 %v675_v20, %v439_v57  ;;  %1526 = vmatprep.mubr.f32.mxu0 %v5967_v0  ;;  %1832 = vmatpush1.msra.mxu1 %v1809_v50 }
 0x15b   :  { %v5069_v49 = vpop.f32.mrf.mxu0  ;;  %v5071_v28 = vpop.f32.mrf.mxu1 }
 0x15d   :  { %v445_v29 = vpop.f32.mrf.mxu0  ;;  %v681_v13 = vpop.f32.mrf.mxu1  ;;  %3498 = vmatmul.mubr.msk.f32.gmra.mxu0 %vm174_vm0, %v4530_v51 }
 0x15e   :  { %v5075_v46 = vadd.f32 %v681_v13, %v445_v29  ;;  %1532 = vmatprep.mubr.f32.mxu0 %v5967_v0  ;;  %v1808_v29 = vld [vmem:[#allocation2 + $0x198] sm:$0xff] }
 0x15f   :  { %v5078_v38 = vpop.f32.mrf.mxu0  ;;  %v5080_v20 = vpop.f32.mrf.mxu1  ;;  %1833 = vmatprep.subr.mxu1 %v1808_v29  ;;  %v1805_v29 = vld [vmem:[#allocation2 + $0x180] sm:$0xff] }
 0x161   :  { %v451_v57 = vpop.f32.mrf.mxu0  ;;  %v687_v54 = vpop.f32.mrf.mxu1  ;;  %3499 = vmatmul.mubr.msk.f32.gmra.mxu0 %vm174_vm0, %v4541_v52  ;;  %v1807_v52 = vld [vmem:[#allocation2 + $0x190] sm:$0xff] }
 0x162   :  { %v5084_v8 = vadd.f32 %v687_v54, %v451_v57  ;;  %1538 = vmatprep.mubr.f32.mxu0 %v5967_v0  ;;  %1834 = vmatpush1.msra.mxu1 %v1807_v52 }
 0x163   :  { %v5087_v51 = vpop.f32.mrf.mxu0  ;;  %v5089_v13 = vpop.f32.mrf.mxu1 }
 0x165   :  { %v457_v48 = vpop.f32.mrf.mxu0  ;;  %v693_v47 = vpop.f32.mrf.mxu1  ;;  %3500 = vmatmul.mubr.msk.f32.gmra.mxu0 %vm174_vm0, %v4552_v53 }
 0x166   :  { %v5093_v12 = vadd.f32 %v693_v47, %v457_v48  ;;  %1544 = vmatprep.mubr.f32.mxu0 %v5967_v0  ;;  %v1806_v48 = vld [vmem:[#allocation2 + $0x188] sm:$0xff] }
 0x167   :  { %v5096_v54 = vpop.f32.mrf.mxu0  ;;  %v5098_v50 = vpop.f32.mrf.mxu1  ;;  %1835 = vmatprep.subr.mxu1 %v1806_v48 }
 0x168   :  { %1836 = vmatpush1.msra.mxu1 %v1805_v29 }
 0x169   :  { %v463_v57 = vpop.f32.mrf.mxu0  ;;  %v699_v42 = vpop.f32.mrf.mxu1  ;;  %3501 = vmatmul.mubr.msk.f32.gmra.mxu0 %vm174_vm0, %v4563_v55 }
 0x16a   :  { %v5102_v40 = vadd.f32 %v699_v42, %v463_v57  ;;  %1550 = vmatprep.mubr.f32.mxu0 %v5967_v0 }
 0x16b   :  { %v5105_v53 = vpop.f32.mrf.mxu0  ;;  %v5107_v47 = vpop.f32.mrf.mxu1 }
 0x16c   :  { %5998 = vst [vmem:[#allocation40_spill] sm:$0xff] %v5102_v40  ;;  %5999 = vst [vmem:[#allocation41_spill] sm:$0xff] %v5105_v53 }
 0x16d   :  { %6000 = vst [vmem:[#allocation42_spill] sm:$0xff] %v5107_v47  ;;  %v469_v35 = vpop.f32.mrf.mxu0  ;;  %v705_v34 = vpop.f32.mrf.mxu1  ;;  %3502 = vmatmul.mubr.msk.f32.gmra.mxu0 %vm174_vm0, %v4574_v56  ;;  %v1804_v56 = vld [vmem:[#allocation2 + $0x178] sm:$0xff] }
 0x16e   :  { %v5111_v52 = vadd.f32 %v705_v34, %v469_v35  ;;  %1556 = vmatprep.mubr.f32.mxu0 %v5967_v0  ;;  %1837 = vmatprep.subr.mxu1 %v1804_v56  ;;  %v1802_v56 = vld [vmem:[#allocation2 + $0x168] sm:$0xff] }
 0x16f   :  { %v5114_v55 = vpop.f32.mrf.mxu0  ;;  %v5116_v42 = vpop.f32.mrf.mxu1 }
 0x170   :  { %6001 = vst [vmem:[#allocation43_spill] sm:$0xff] %v5111_v52  ;;  %6002 = vst [vmem:[#allocation44_spill] sm:$0xff] %v5114_v55  ;;  %v2281_v52 = vld [vmem:[#allocation2 + $0x3f8] sm:$0xff] }
 0x171   :  { %6003 = vst [vmem:[#allocation45_spill] sm:$0xff] %v5116_v42  ;;  %v475_v57 = vpop.f32.mrf.mxu0  ;;  %v711_v40 = vpop.f32.mrf.mxu1  ;;  %3503 = vmatmul.mubr.msk.f32.gmra.mxu0 %vm174_vm0, %v4585_v58  ;;  %v1803_v58 = vld [vmem:[#allocation2 + $0x170] sm:$0xff]  ;;  %2282 = vmatprep.subr.mxu0 %v2281_v52  ;;  %v1800_v52 = vld [vmem:[#allocation2 + $0x158] sm:$0xff] }
 0x172   :  { %v5120_v47 = vadd.f32 %v711_v40, %v475_v57  ;;  %1562 = vmatprep.mubr.f32.mxu0 %v5967_v0  ;;  %v2280_v40 = vld [vmem:[#allocation2 + $0x3f0] sm:$0xff]  ;;  %1838 = vmatpush1.msra.mxu1 %v1803_v58 }
 0x173   :  { %v5123_v48 = vpop.f32.mrf.mxu0  ;;  %v5125_v34 = vpop.f32.mrf.mxu1  ;;  %2283 = vmatpush1.msra.mxu0 %v2280_v40  ;;  %1839 = vmatprep.subr.mxu1 %v1802_v56  ;;  %v1799_v58 = vld [vmem:[#allocation2 + $0x150] sm:$0xff]  ;;  %v1798_v56 = vld [vmem:[#allocation2 + $0x148] sm:$0xff] }
 0x174   :  { %6004 = vst [vmem:[#allocation46_spill] sm:$0xff] %v5120_v47  ;;  %6005 = vst [vmem:[#allocation47_spill] sm:$0xff] %v5123_v48  ;;  %v1801_v48 = vld [vmem:[#allocation2 + $0x160] sm:$0xff]  ;;  %v2276_v40 = vld [vmem:[#allocation2 + $0x3d0] sm:$0xff] }
 0x175   :  { %6006 = vst [vmem:[#allocation48_spill] sm:$0xff] %v5125_v34  ;;  %v481_v35 = vpop.f32.mrf.mxu0  ;;  %v717_v29 = vpop.f32.mrf.mxu1  ;;  %3504 = vmatmul.mubr.msk.f32.gmra.mxu0 %vm174_vm0, %v4596_v59  ;;  %v2279_v34 = vld [vmem:[#allocation2 + $0x3e8] sm:$0xff]  ;;  %v2278_v59 = vld [vmem:[#allocation2 + $0x3e0] sm:$0xff]  ;;  %1840 = vmatpush1.msra.mxu1 %v1801_v48 }
 0x176   :  { %v5129_v42 = vadd.f32 %v717_v29, %v481_v35  ;;  %1568 = vmatprep.mubr.f32.mxu0 %v5967_v0  ;;  %2284 = vmatprep.subr.mxu0 %v2279_v34  ;;  %v2277_v29 = vld [vmem:[#allocation2 + $0x3d8] sm:$0xff]  ;;  %v2274_v48 = vld [vmem:[#allocation2 + $0x3c0] sm:$0xff] }
 0x177   :  { %v5132_v57 = vpop.f32.mrf.mxu0  ;;  %v5134_v47 = vpop.f32.mrf.mxu1  ;;  %2285 = vmatpush1.msra.mxu0 %v2278_v59  ;;  %1841 = vmatprep.subr.mxu1 %v1800_v52  ;;  %v1796_v59 = vld [vmem:[#allocation2 + $0x138] sm:$0xff]  ;;  %v1795_v52 = vld [vmem:[#allocation2 + $0x130] sm:$0xff] }
 0x178   :  { %6007 = vst [vmem:[#allocation49_spill] sm:$0xff] %v5129_v42  ;;  %6008 = vst [vmem:[#allocation50_spill] sm:$0xff] %v5132_v57  ;;  %v6011_v42 = vmov 0.0   ;;  %2286 = vmatprep.subr.mxu0 %v2277_v29  ;;  %v2275_v57 = vld [vmem:[#allocation2 + $0x3c8] sm:$0xff]  ;;  %1842 = vmatpush1.msra.mxu1 %v1799_v58 }
 0x179   :  { %6009 = vst [vmem:[#allocation51_spill] sm:$0xff] %v5134_v47  ;;  %v487_v55 = vpop.f32.mrf.mxu0  ;;  %v723_v35 = vpop.f32.mrf.mxu1  ;;  %3505 = vmatmul.mubr.msk.f32.gmra.mxu0 %vm174_vm0, %v4607_v60  ;;  %v1797_v60 = vld [vmem:[#allocation2 + $0x140] sm:$0xff]  ;;  %1843 = vmatprep.subr.mxu1 %v1798_v56  ;;  %v2271_v56 = vld [vmem:[#allocation2 + $0x3a8] sm:$0xff] }
 0x17a   :  { %v5138_v0 = vadd.f32 %v723_v35, %v487_v55  ;;  %1574 = vmatprep.mubr.f32.mxu0 %v6011_v42  ;;  %2287 = vmatpush1.msra.mxu0 %v2276_v40  ;;  %v2273_v35 = vld [vmem:[#allocation2 + $0x3b8] sm:$0xff]  ;;  %v2272_v40 = vld [vmem:[#allocation2 + $0x3b0] sm:$0xff] }
 0x17b   :  { %v5141_v47 = vpop.f32.mrf.mxu0  ;;  %v5143_v34 = vpop.f32.mrf.mxu1  ;;  %2288 = vmatprep.subr.mxu0 %v2275_v57  ;;  %1844 = vmatpush1.msra.mxu1 %v1797_v60  ;;  %v2270_v57 = vld [vmem:[#allocation2 + $0x3a0] sm:$0xff]  ;;  %v1792_v60 = vld [vmem:[#allocation2 + $0x118] sm:$0xff] }
 0x17c   :  { %6010 = vst [vmem:[#allocation52_spill] sm:$0xff] %v5138_v0  ;;  %6012 = vst [vmem:[#allocation53_spill] sm:$0xff] %v5141_v47  ;;  %2289 = vmatpush1.msra.mxu0 %v2274_v48  ;;  %1845 = vmatprep.subr.mxu1 %v1796_v59  ;;  %v2269_v48 = vld [vmem:[#allocation2 + $0x398] sm:$0xff]  ;;  %v2268_v59 = vld [vmem:[#allocation2 + $0x390] sm:$0xff] }
 0x17d   :  { %6013 = vst [vmem:[#allocation54_spill] sm:$0xff] %v5143_v34  ;;  %v822_v53 = vpop.f32.mrf.mxu0  ;;  %3506 = vmatmul.mubr.msk.f32.gmra.mxu0 %vm174_vm0, %v4618_v61  ;;  %v1139_v55 = vpop.f32.mrf.mxu1  ;;  %2290 = vmatprep.subr.mxu0 %v2273_v35  ;;  %v1794_v61 = vld [vmem:[#allocation2 + $0x128] sm:$0xff] }
 0x17e   :  { %v989_v0 = vadd.f32 %v822_v53, %v4863_v33  ;;  %1580 = vmatprep.mubr.f32.mxu0 %v6011_v42  ;;  %1846 = vmatpush1.msra.mxu1 %v1795_v52  ;;  %v1793_v53 = vld [vmem:[#allocation2 + $0x120] sm:$0xff] }
 0x17f   :  { %v5149_v29 = vpop.f32.mrf.mxu0  ;;  %v5151_v58 = vpop.f32.mrf.mxu1  ;;  %2291 = vmatpush1.msra.mxu0 %v2272_v40  ;;  %1847 = vmatprep.subr.mxu1 %v1794_v61  ;;  %v1789_v40 = vld [vmem:[#allocation2 + $0x100] sm:$0xff] }
 0x180   :  { %6014 = vst [vmem:[#allocation55_spill] sm:$0xff] %v5149_v29  ;;  %v5153_v34 = vadd.f32 %v1139_v55, %v989_v0  ;;  %2292 = vmatprep.subr.mxu0 %v2271_v56  ;;  %1848 = vmatpush1.msra.mxu1 %v1793_v53  ;;  %v2266_v56 = vld [vmem:[#allocation2 + $0x380] sm:$0xff] }
 0x181   :  { %v828_v47 = vpop.f32.mrf.mxu0  ;;  %3507 = vmatmul.mubr.msk.f32.gmra.mxu0 %vm174_vm0, %v4629_v62  ;;  %v1145_v33 = vpop.f32.mrf.mxu1  ;;  %v1791_v62 = vld [vmem:[#allocation2 + $0x110] sm:$0xff]  ;;  %1849 = vmatprep.subr.mxu1 %v1792_v60 }
 0x182   :  { %v991_v29 = vadd.f32 %v828_v47, %v4875_v39  ;;  %1586 = vmatprep.mubr.f32.mxu0 %v6011_v42  ;;  %2293 = vmatpush1.msra.mxu0 %v2270_v57  ;;  %v1790_v39 = vld [vmem:[#allocation2 + $0x108] sm:$0xff] }
 0x183   :  { %v5159_v0 = vpop.f32.mrf.mxu0  ;;  %v2267_v47 = vld [vmem:[#allocation2 + $0x388] sm:$0xff]  ;;  %2294 = vmatprep.subr.mxu0 %v2269_v48  ;;  %1850 = vmatpush1.msra.mxu1 %v1791_v62  ;;  %v2262_v62 = vld [vmem:[#allocation2 + $0x360] sm:$0xff] }
 0x184   :  { %v5161_v55 = vadd.f32 %v1145_v33, %v991_v29  ;;  %v5169_v29 = vpop.f32.mrf.mxu1  ;;  %2295 = vmatpush1.msra.mxu0 %v2268_v59  ;;  %1851 = vmatprep.subr.mxu1 %v1790_v39  ;;  %v2263_v57 = vld [vmem:[#allocation2 + $0x368] sm:$0xff]  ;;  %v2261_v59 = vld [vmem:[#allocation2 + $0x358] sm:$0xff] }
 0x185   :  { %v834_v35 = vpop.f32.mrf.mxu0  ;;  %3508 = vmatmul.mubr.msk.f32.gmra.mxu0 %vm174_vm0, %v4640_v63  ;;  %2296 = vmatprep.subr.mxu0 %v2267_v47  ;;  %v2265_v63 = vld [vmem:[#allocation2 + $0x378] sm:$0xff]  ;;  %v2259_v39 = vld [vmem:[#allocation2 + $0x348] sm:$0xff] }
 0x186   :  { %v5166_v52 = vadd.f32 %v834_v35, %v4887_v45  ;;  %1592 = vmatprep.mubr.f32.mxu0 %v6011_v42  ;;  %1852 = vmatpush1.msra.mxu1 %v1789_v40  ;;  %v2264_v45 = vld [vmem:[#allocation2 + $0x370] sm:$0xff]  ;;  %v5179_v60 = vpop.f32.mrf.mxu1 }
 0x187   :  { %v5171_v61 = vpop.f32.mrf.mxu0  ;;  %2297 = vmatpush1.msra.mxu0 %v2266_v56  ;;  %v2258_v56 = vld [vmem:[#allocation2 + $0x340] sm:$0xff] }
 0x188   :  { %2298 = vmatprep.subr.mxu0 %v2265_v63  ;;  %v5189_v47 = vpop.f32.mrf.mxu1  ;;  %v2257_v63 = vld [vmem:[#allocation2 + $0x338] sm:$0xff] }
 0x189   :  { %v840_v33 = vpop.f32.mrf.mxu0  ;;  %3509 = vmatmul.mubr.msk.f32.gmra.mxu0 %vm174_vm0, %v4651_v2  ;;  %v2260_v2 = vld [vmem:[#allocation2 + $0x350] sm:$0xff] }
 0x18a   :  { %v5176_v53 = vadd.f32 %v840_v33, %v4899_v7  ;;  %1598 = vmatprep.mubr.f32.mxu0 %v6011_v42  ;;  %2299 = vmatpush1.msra.mxu0 %v2264_v45  ;;  %v2255_v45 = vld [vmem:[#allocation2 + $0x328] sm:$0xff] }
 0x18b   :  { %v5181_v48 = vpop.f32.mrf.mxu0  ;;  %2300 = vmatprep.subr.mxu0 %v2263_v57  ;;  %v5199_v57 = vpop.f32.mrf.mxu1 }
 0x18c   :  { %2301 = vmatpush1.msra.mxu0 %v2262_v62 }
 0x18d   :  { %v846_v35 = vpop.f32.mrf.mxu0  ;;  %3510 = vmatmul.mubr.msk.f32.gmra.mxu0 %vm174_vm0, %v4662_v3  ;;  %2302 = vmatprep.subr.mxu0 %v2261_v59  ;;  %v2256_v3 = vld [vmem:[#allocation2 + $0x330] sm:$0xff]  ;;  %v2254_v59 = vld [vmem:[#allocation2 + $0x320] sm:$0xff] }
 0x18e   :  { %v5186_v7 = vadd.f32 %v846_v35, %v4911_v10  ;;  %1604 = vmatprep.mubr.f32.mxu0 %v6011_v42  ;;  %2303 = vmatpush1.msra.mxu0 %v2260_v2  ;;  %v2253_v35 = vld [vmem:[#allocation2 + $0x318] sm:$0xff] }
 0x18f   :  { %v5191_v40 = vpop.f32.mrf.mxu0  ;;  %2304 = vmatprep.subr.mxu0 %v2259_v39  ;;  %v124_v39 = vld [vmem:[%s5955_s0 + $0xf8] sm:$0xff] }
 0x190   :  { %2305 = vmatpush1.msra.mxu0 %v2258_v56  ;;  %v2251_v56 = vld [vmem:[#allocation2 + $0x308] sm:$0xff] }
 0x191   :  { %v852_v33 = vpop.f32.mrf.mxu0  ;;  %3511 = vmatmul.mubr.msk.f32.gmra.mxu0 %vm174_vm0, %v4930_v18  ;;  %2306 = vmatprep.subr.mxu0 %v2257_v63  ;;  %v2252_v18 = vld [vmem:[#allocation2 + $0x310] sm:$0xff]  ;;  %v5212_v63 = vpop.f32.mrf.mxu1 }
 0x192   :  { %v5196_v10 = vadd.f32 %v852_v33, %v4923_v17  ;;  %1610 = vmatprep.mubr.f32.mxu0 %v6011_v42  ;;  %2307 = vmatpush1.msra.mxu0 %v2256_v3  ;;  %v2250_v3 = vld [vmem:[#allocation2 + $0x300] sm:$0xff] }
 0x193   :  { %v5201_v62 = vpop.f32.mrf.mxu0  ;;  %2308 = vmatprep.subr.mxu0 %v2255_v45  ;;  %v5221_v45 = vpop.f32.mrf.mxu1 }
 0x194   :  { %2309 = vmatpush1.msra.mxu0 %v2254_v59 }
 0x195   :  { %v858_v2 = vpop.f32.mrf.mxu0  ;;  %3512 = vmatmul.mubr.msk.f32.gmra.mxu0 %vm174_vm0, %v4947_v25  ;;  %2310 = vmatprep.subr.mxu0 %v2253_v35 }
 0x196   :  { %v5206_v17 = vadd.f32 %v858_v2, %v4940_v24  ;;  %1616 = vmatprep.mubr.f32.mxu0 %v6011_v42  ;;  %2311 = vmatpush1.msra.mxu0 %v2252_v18  ;;  %v5229_v18 = vpop.f32.mrf.mxu1 }
 0x197   :  { %v5214_v33 = vpop.f32.mrf.mxu0  ;;  %2312 = vmatprep.subr.mxu0 %v2251_v56 }
 0x198   :  { %2313 = vmatpush1.msra.mxu0 %v2250_v3  ;;  %v5236_v3 = vpop.f32.mrf.mxu1 }
 0x199   :  { %v864_v25 = vpop.f32.mrf.mxu0  ;;  %3513 = vmatmul.mubr.msk.f32.gmra.mxu0 %vm174_vm0, %v124_v39  ;;  %3638 = vmatprep.subr.mxu0 %v6011_v42 }
 0x19a   :  { %v5218_v24 = vadd.f32 %v864_v25, %v4957_v32  ;;  %2346 = vmatprep.mubr.f32.mxu0 %v6011_v42  ;;  %v5243_v42 = vpop.f32.mrf.mxu1 }
 0x19b   :  { %v5223_v59 = vpop.f32.mrf.mxu0 }
 0x19c   :  { %6015 = vst [vmem:[#allocation56_spill] sm:$0xff] %v5218_v24  ;;  %6016 = vst [vmem:[#allocation57_spill] sm:$0xff] %v5223_v59 }
 0x19d   :  { %v870_v2 = vpop.f32.mrf.mxu0 }
 0x19e   :  { %v5227_v35 = vadd.f32 %v870_v2, %v4967_v4 }
 0x19f   :  { %v5231_v39 = vpop.f32.mrf.mxu0 }
 0x1a0   :  { %6017 = vst [vmem:[#allocation58_spill] sm:$0xff] %v5227_v35  ;;  %6018 = vst [vmem:[#allocation59_spill] sm:$0xff] %v5231_v39  ;;  %v5250_v39 = vpop.f32.mrf.mxu1 }
 0x1a1   :  { %v876_v56 = vpop.f32.mrf.mxu0 }
 0x1a2   :  { %v5234_v32 = vadd.f32 %v876_v56, %v4976_v15  ;;  %v1787_v56 = vld [vmem:[#allocation2 + $0xf8] sm:$0xff] }
 0x1a3   :  { %v5238_v25 = vpop.f32.mrf.mxu0  ;;  %1946 = vmatprep.subr.mxu1 %v1787_v56 }
 0x1a4   :  { %6019 = vst [vmem:[#allocation60_spill] sm:$0xff] %v5234_v32  ;;  %6020 = vst [vmem:[#allocation61_spill] sm:$0xff] %v5238_v25 }
 0x1a5   :  { %v882_v24 = vpop.f32.mrf.mxu0 }
 0x1a6   :  { %v5241_v59 = vadd.f32 %v882_v24, %v4985_v30  ;;  %v5257_v30 = vpop.f32.mrf.mxu1 }
 0x1a7   :  { %v5245_v4 = vpop.f32.mrf.mxu0 }
 0x1a8   :  { %6021 = vst [vmem:[#allocation62_spill] sm:$0xff] %v5241_v59  ;;  %6022 = vst [vmem:[#allocation63_spill] sm:$0xff] %v5245_v4 }
 0x1a9   :  { %v888_v2 = vpop.f32.mrf.mxu0 }
 0x1aa   :  { %v5248_v35 = vadd.f32 %v888_v2, %v4994_v14  ;;  %v5264_v14 = vpop.f32.mrf.mxu1 }
 0x1ab   :  { %v5252_v15 = vpop.f32.mrf.mxu0  ;;  %6028 = vst [vmem:[#allocation69_spill] sm:$0xff] %v5264_v14 }
 0x1ac   :  { %6023 = vst [vmem:[#allocation64_spill] sm:$0xff] %v5248_v35  ;;  %6024 = vst [vmem:[#allocation65_spill] sm:$0xff] %v5252_v15  ;;  %v648_v15 = vadd.f32 %v5026_v22, %v5024_v26 }
 0x1ad   :  { %v894_v32 = vpop.f32.mrf.mxu0 }
 0x1ae   :  { %v5255_v25 = vadd.f32 %v894_v32, %v5003_v6  ;;  %v5273_v6 = vpop.f32.mrf.mxu1 }
 0x1af   :  { %v5259_v24 = vpop.f32.mrf.mxu0 }
 0x1b0   :  { %6025 = vst [vmem:[#allocation66_spill] sm:$0xff] %v5255_v25  ;;  %6026 = vst [vmem:[#allocation67_spill] sm:$0xff] %v5259_v24 }
 0x1b1   :  { %v900_v59 = vpop.f32.mrf.mxu0 }
 0x1b2   :  { %v5262_v4 = vadd.f32 %v900_v59, %v5012_v1  ;;  %v654_v1 = vadd.f32 %v5035_v21, %v5033_v16 }
 0x1b3   :  { %v5266_v2 = vpop.f32.mrf.mxu0 }
 0x1b4   :  { %6027 = vst [vmem:[#allocation68_spill] sm:$0xff] %v5262_v4  ;;  %6029 = vst [vmem:[#allocation70_spill] sm:$0xff] %v5266_v2  ;;  %v5282_v4 = vpop.f32.mrf.mxu1 }
 0x1b5   :  { %v906_v35 = vpop.f32.mrf.mxu0 }
 0x1b6   :  { %v5271_v56 = vadd.f32 %v906_v35, %v5021_v44  ;;  %v660_v44 = vadd.f32 %v5044_v9, %v5042_v36  ;;  %v5291_v35 = vpop.f32.mrf.mxu1 }
 0x1b7   :  { %v908_v32 = vpop.f32.mrf.mxu0 }
 0x1b8   :  { %v5275_v25 = vadd.f32 %v908_v32, %v648_v15 }
 0x1b9   :  { %v912_v24 = vpop.f32.mrf.mxu0 }
 0x1ba   :  { %v5280_v59 = vadd.f32 %v912_v24, %v5030_v11  ;;  %v666_v11 = vadd.f32 %v5053_v43, %v5051_v41  ;;  %v5300_v24 = vpop.f32.mrf.mxu1 }
 0x1bb   :  { %v914_v2 = vpop.f32.mrf.mxu0 }
 0x1bc   :  { %v5284_v14 = vadd.f32 %v914_v2, %v654_v1 }
 0x1bd   :  { %v918_v26 = vpop.f32.mrf.mxu0 }
 0x1be   :  { %v5289_v22 = vadd.f32 %v918_v26, %v5039_v5  ;;  %v672_v5 = vadd.f32 %v5062_v37, %v5060_v23  ;;  %v5309_v26 = vpop.f32.mrf.mxu1 }
 0x1bf   :  { %v920_v15 = vpop.f32.mrf.mxu0 }
 0x1c0   :  { %v5293_v32 = vadd.f32 %v920_v15, %v660_v44 }
 0x1c1   :  { %v924_v16 = vpop.f32.mrf.mxu0 }
 0x1c2   :  { %v5298_v21 = vadd.f32 %v924_v16, %v5048_v31  ;;  %v678_v31 = vadd.f32 %v5071_v28, %v5069_v49  ;;  %v5318_v16 = vpop.f32.mrf.mxu1 }
 0x1c3   :  { %v926_v2 = vpop.f32.mrf.mxu0 }
 0x1c4   :  { %6030 = vst [vmem:[#allocation71_spill] sm:$0xff] %v5298_v21  ;;  %v5302_v1 = vadd.f32 %v926_v2, %v666_v11 }
 0x1c5   :  { %v930_v36 = vpop.f32.mrf.mxu0 }
 0x1c6   :  { %6031 = vst [vmem:[#allocation72_spill] sm:$0xff] %v5302_v1  ;;  %v5307_v9 = vadd.f32 %v930_v36, %v5057_v27  ;;  %v684_v27 = vadd.f32 %v5080_v20, %v5078_v38  ;;  %v5327_v36 = vpop.f32.mrf.mxu1 }
 0x1c7   :  { %v932_v44 = vpop.f32.mrf.mxu0 }
 0x1c8   :  { %6032 = vst [vmem:[#allocation73_spill] sm:$0xff] %v5307_v9  ;;  %v5311_v15 = vadd.f32 %v932_v44, %v672_v5  ;;  %v6067_v9 = vld [vmem:[#allocation52_spill] sm:$0xff] }
 0x1c9   :  { %v936_v41 = vpop.f32.mrf.mxu0 }
 0x1ca   :  { %6033 = vst [vmem:[#allocation74_spill] sm:$0xff] %v5311_v15  ;;  %v5316_v43 = vadd.f32 %v936_v41, %v5066_v19  ;;  %v690_v19 = vadd.f32 %v5089_v13, %v5087_v51  ;;  %v5336_v41 = vpop.f32.mrf.mxu1  ;;  %v6043_v13 = vld [vmem:[#allocation42_spill] sm:$0xff] }
 0x1cb   :  { %v938_v11 = vpop.f32.mrf.mxu0  ;;  %v6065_v15 = vld [vmem:[#allocation54_spill] sm:$0xff] }
 0x1cc   :  { %6034 = vst [vmem:[#allocation75_spill] sm:$0xff] %v5316_v43  ;;  %v5320_v2 = vadd.f32 %v938_v11, %v678_v31 }
 0x1cd   :  { %v942_v23 = vpop.f32.mrf.mxu0 }
 0x1ce   :  { %6035 = vst [vmem:[#allocation76_spill] sm:$0xff] %v5320_v2  ;;  %v5325_v37 = vadd.f32 %v942_v23, %v5075_v46  ;;  %v696_v46 = vadd.f32 %v5098_v50, %v5096_v54  ;;  %v5345_v23 = vpop.f32.mrf.mxu1  ;;  %v6048_v50 = vld [vmem:[#allocation45_spill] sm:$0xff] }
 0x1cf   :  { %v944_v5 = vpop.f32.mrf.mxu0 }
 0x1d0   :  { %6036 = vst [vmem:[#allocation77_spill] sm:$0xff] %v5325_v37  ;;  %v5329_v44 = vadd.f32 %v944_v5, %v684_v27 }
 0x1d1   :  { %v948_v49 = vpop.f32.mrf.mxu0 }
 0x1d2   :  { %6037 = vst [vmem:[#allocation78_spill] sm:$0xff] %v5329_v44  ;;  %v5334_v28 = vadd.f32 %v948_v49, %v5084_v8  ;;  %v6042_v8 = vld [vmem:[#allocation41_spill] sm:$0xff] }
 0x1d3   :  { %v950_v31 = vpop.f32.mrf.mxu0  ;;  %v702_v49 = vadd.f32 %v6043_v13, %v6042_v8 }
 0x1d4   :  { %6038 = vst [vmem:[#allocation79_spill] sm:$0xff] %v5334_v28  ;;  %v5338_v11 = vadd.f32 %v950_v31, %v690_v19  ;;  %v6044_v28 = vld [vmem:[#allocation40_spill] sm:$0xff]  ;;  %v5354_v19 = vpop.f32.mrf.mxu1 }
 0x1d5   :  { %v954_v38 = vpop.f32.mrf.mxu0 }
 0x1d6   :  { %6039 = vst [vmem:[#allocation80_spill] sm:$0xff] %v5338_v11  ;;  %v5343_v20 = vadd.f32 %v954_v38, %v5093_v12  ;;  %v6047_v12 = vld [vmem:[#allocation44_spill] sm:$0xff] }
 0x1d7   :  { %v956_v27 = vpop.f32.mrf.mxu0  ;;  %v708_v38 = vadd.f32 %v6048_v50, %v6047_v12 }
 0x1d8   :  { %6040 = vst [vmem:[#allocation81_spill] sm:$0xff] %v5343_v20  ;;  %v5347_v5 = vadd.f32 %v956_v27, %v696_v46  ;;  %v6049_v20 = vld [vmem:[#allocation43_spill] sm:$0xff]  ;;  %v5363_v46 = vpop.f32.mrf.mxu1 }
 0x1d9   :  { %v960_v51 = vpop.f32.mrf.mxu0 }
 0x1da   :  { %6041 = vst [vmem:[#allocation82_spill] sm:$0xff] %v5347_v5  ;;  %v5352_v44 = vadd.f32 %v960_v51, %v6044_v28  ;;  %v6052_v28 = vld [vmem:[#allocation47_spill] sm:$0xff]  ;;  %v6053_v51 = vld [vmem:[#allocation48_spill] sm:$0xff] }
 0x1db   :  { %v962_v31 = vpop.f32.mrf.mxu0  ;;  %v714_v13 = vadd.f32 %v6053_v51, %v6052_v28  ;;  %v6062_v28 = vld [vmem:[#allocation13_spill] sm:$0xff] }
 0x1dc   :  { %6045 = vst [vmem:[#allocation41_spill] sm:$0xff] %v5352_v44  ;;  %v5356_v11 = vadd.f32 %v962_v31, %v702_v49  ;;  %v6054_v44 = vld [vmem:[#allocation46_spill] sm:$0xff]  ;;  %v5372_v49 = vpop.f32.mrf.mxu1 }
 0x1dd   :  { %v966_v54 = vpop.f32.mrf.mxu0 }
 0x1de   :  { %6046 = vst [vmem:[#allocation42_spill] sm:$0xff] %v5356_v11  ;;  %v5361_v37 = vadd.f32 %v966_v54, %v6049_v20  ;;  %v6057_v20 = vld [vmem:[#allocation50_spill] sm:$0xff]  ;;  %v6058_v54 = vld [vmem:[#allocation51_spill] sm:$0xff] }
 0x1df   :  { %v968_v27 = vpop.f32.mrf.mxu0  ;;  %v720_v50 = vadd.f32 %v6058_v54, %v6057_v20  ;;  %v6070_v54 = vld [vmem:[#allocation15_spill] sm:$0xff] }
 0x1e0   :  { %6050 = vst [vmem:[#allocation40_spill] sm:$0xff] %v5361_v37  ;;  %v5365_v5 = vadd.f32 %v968_v27, %v708_v38  ;;  %v6059_v37 = vld [vmem:[#allocation49_spill] sm:$0xff]  ;;  %v5381_v38 = vpop.f32.mrf.mxu1 }
 0x1e1   :  { %v972_v8 = vpop.f32.mrf.mxu0 }
 0x1e2   :  { %6051 = vst [vmem:[#allocation44_spill] sm:$0xff] %v5365_v5  ;;  %v5370_v2 = vadd.f32 %v972_v8, %v6054_v44  ;;  %v6061_v5 = vld [vmem:[#allocation12_spill] sm:$0xff]  ;;  %v5393_v20 = vpop.f32.mrf.mxu1 }
 0x1e3   :  { %v974_v31 = vpop.f32.mrf.mxu0  ;;  %v564_v51 = vadd.f32 %v6062_v28, %v6061_v5 }
 0x1e4   :  { %6055 = vst [vmem:[#allocation45_spill] sm:$0xff] %v5370_v2  ;;  %v5374_v11 = vadd.f32 %v974_v31, %v714_v13  ;;  %v6064_v2 = vld [vmem:[#allocation53_spill] sm:$0xff]  ;;  %v6066_v31 = vld [vmem:[#allocation55_spill] sm:$0xff] }
 0x1e5   :  { %v978_v12 = vpop.f32.mrf.mxu0  ;;  %v726_v13 = vadd.f32 %v6065_v15, %v6064_v2  ;;  %v5402_v2 = vpop.f32.mrf.mxu1 }
 0x1e6   :  { %6056 = vst [vmem:[#allocation43_spill] sm:$0xff] %v5374_v11  ;;  %v5379_v43 = vadd.f32 %v978_v12, %v6059_v37  ;;  %v990_v11 = vadd.f32 %v6066_v31, %v564_v51  ;;  %v6069_v12 = vld [vmem:[#allocation14_spill] sm:$0xff]  ;;  %v6072_v51 = vld [vmem:[#allocation17_spill] sm:$0xff] }
 0x1e7   :  { %v980_v27 = vpop.f32.mrf.mxu0 }
 0x1e8   :  { %6060 = vst [vmem:[#allocation47_spill] sm:$0xff] %v5379_v43  ;;  %v5385_v44 = vadd.f32 %v980_v27, %v720_v50  ;;  %v570_v43 = vadd.f32 %v6070_v54, %v6069_v12  ;;  %v1307_v50 = vadd.f32 %v5151_v58, %v990_v11  ;;  %v5409_v58 = vpop.f32.mrf.mxu1 }
 0x1e9   :  { %v984_v8 = vpop.f32.mrf.mxu0 }
 0x1ea   :  { %6063 = vst [vmem:[#allocation48_spill] sm:$0xff] %v5385_v44  ;;  %v5391_v1 = vadd.f32 %v984_v8, %v6067_v9  ;;  %v992_v27 = vadd.f32 %v5159_v0, %v570_v43  ;;  %v6071_v9 = vld [vmem:[#allocation16_spill] sm:$0xff]  ;;  %v6073_v43 = vld [vmem:[#allocation18_spill] sm:$0xff] }
 0x1eb   :  { %v986_v37 = vpop.f32.mrf.mxu0  ;;  %v576_v8 = vadd.f32 %v6072_v51, %v6071_v9  ;;  %v1310_v9 = vadd.f32 %v5179_v60, %v5166_v52 }
 0x1ec   :  { %6068 = vst [vmem:[#allocation46_spill] sm:$0xff] %v5391_v1  ;;  %v5397_v21 = vadd.f32 %v986_v37, %v726_v13  ;;  %v1309_v44 = vadd.f32 %v5169_v29, %v992_v27 }
 0x1ed   :  { %v1456_v5 = vpop.f32.mrf.mxu0  ;;  %v994_v13 = vadd.f32 %v5171_v61, %v576_v8  ;;  %v5417_v61 = vpop.f32.mrf.mxu1 }
 0x1ee   :  { %v1623_v15 = vadd.f32 %v1456_v5, %v5153_v34  ;;  %v6074_v34 = vld [vmem:[#allocation19_spill] sm:$0xff] }
 0x1ef   :  { %v1458_v28 = vpop.f32.mrf.mxu0  ;;  %v582_v11 = vadd.f32 %v6074_v34, %v6073_v43  ;;  %v6078_v43 = vld [vmem:[#allocation23_spill] sm:$0xff] }
 0x1f0   :  { %v1624_v31 = vadd.f32 %v1458_v28, %v1307_v50  ;;  %v1311_v50 = vadd.f32 %v5189_v47, %v994_v13  ;;  %v5427_v47 = vpop.f32.mrf.mxu1 }
 0x1f1   :  { %v1462_v1 = vpop.f32.mrf.mxu0  ;;  %v996_v29 = vadd.f32 %v5181_v48, %v582_v11 }
 0x1f2   :  { %v1679_v37 = vmax.f32 %v1623_v15, %v1624_v31  ;;  %v1625_v12 = vadd.f32 %v1462_v1, %v5161_v55  ;;  %v6075_v55 = vld [vmem:[#allocation20_spill] sm:$0xff]  ;;  %v6076_v1 = vld [vmem:[#allocation21_spill] sm:$0xff] }
 0x1f3   :  { %v1464_v0 = vpop.f32.mrf.mxu0  ;;  %v588_v28 = vadd.f32 %v6076_v1, %v6075_v55  ;;  %v1313_v52 = vadd.f32 %v5212_v63, %v996_v29  ;;  %v5435_v63 = vpop.f32.mrf.mxu1  ;;  %v6080_v29 = vld [vmem:[#allocation25_spill] sm:$0xff] }
 0x1f4   :  { %v1626_v54 = vadd.f32 %v1464_v0, %v1309_v44  ;;  %v1312_v0 = vadd.f32 %v5199_v57, %v5176_v53 }
 0x1f5   :  { %v1468_v5 = vpop.f32.mrf.mxu0  ;;  %v998_v60 = vadd.f32 %v5191_v40, %v588_v28  ;;  %v1316_v28 = vadd.f32 %v5236_v3, %v5196_v10 }
 0x1f6   :  { %v1680_v27 = vmax.f32 %v1625_v12, %v1626_v54  ;;  %v1627_v8 = vadd.f32 %v1468_v5, %v1310_v9  ;;  %v6077_v12 = vld [vmem:[#allocation22_spill] sm:$0xff]  ;;  %v1314_v5 = vadd.f32 %v5221_v45, %v5186_v7  ;;  %v5444_v7 = vld [vmem:[%s5957_s2] ss:$0 sm:$0xff] }
 0x1f7   :  { %v1470_v15 = vpop.f32.mrf.mxu0  ;;  %v594_v34 = vadd.f32 %v6078_v43, %v6077_v12  ;;  %v1315_v9 = vadd.f32 %v5229_v18, %v998_v60  ;;  %v6082_v60 = vld [vmem:[#allocation27_spill] sm:$0xff]  ;;  %v1786_v12 = vld [vmem:[#allocation2 + $0xf0] sm:$0xff] }
 0x1f8   :  { %v5421_v51 = vmax.f32 %v1679_v37, %v1680_v27  ;;  %v1628_v31 = vadd.f32 %v1470_v15, %v1311_v50  ;;  %v6079_v50 = vld [vmem:[#allocation24_spill] sm:$0xff] }
 0x1f9   :  { %v1474_v44 = vpop.f32.mrf.mxu0  ;;  %v1000_v53 = vadd.f32 %v5201_v62, %v594_v34  ;;  %v600_v27 = vadd.f32 %v6080_v29, %v6079_v50  ;;  %v1785_v34 = vld [vmem:[#allocation2 + $0xe8] sm:$0xff]  ;;  %v6085_v50 = vld [vmem:[#allocation28_spill] sm:$0xff] }
 0x1fa   :  { %v1681_v48 = vmax.f32 %v1627_v8, %v1628_v31  ;;  %v1629_v11 = vadd.f32 %v1474_v44, %v1312_v0  ;;  %v5451_v44 = vpop.f32.mrf.mxu1  ;;  %v6086_v29 = vld [vmem:[#allocation29_spill] sm:$0xff] }
 0x1fb   :  { %v1476_v13 = vpop.f32.mrf.mxu0  ;;  %v1317_v62 = vadd.f32 %v5243_v42, %v1000_v53  ;;  %v1002_v18 = vadd.f32 %v5214_v33, %v600_v27  ;;  %v1318_v42 = vadd.f32 %v5250_v39, %v5206_v17  ;;  %v612_v27 = vadd.f32 %v6086_v29, %v6085_v50  ;;  %v6093_v29 = vld [vmem:[#allocation61_spill] sm:$0xff] }
 0x1fc   :  { %v1630_v37 = vadd.f32 %v1476_v13, %v1313_v52  ;;  %v6081_v52 = vld [vmem:[#allocation26_spill] sm:$0xff] }
 0x1fd   :  { %v1480_v54 = vpop.f32.mrf.mxu0  ;;  %v606_v10 = vadd.f32 %v6082_v60, %v6081_v52  ;;  %v1319_v33 = vadd.f32 %v5257_v30, %v1002_v18 }
 0x1fe   :  { %v1682_v57 = vmax.f32 %v1629_v11, %v1630_v37  ;;  %v1631_v55 = vadd.f32 %v1480_v54, %v1314_v5  ;;  %v6083_v11 = vld [vmem:[#allocation57_spill] sm:$0xff]  ;;  %v1784_v5 = vld [vmem:[#allocation2 + $0xe0] sm:$0xff] }
 0x1ff   :  { %v1482_v40 = vpop.f32.mrf.mxu0  ;;  %v1004_v37 = vadd.f32 %v6083_v11, %v606_v10 }
 0x200   :  { %v1708_v15 = vmax.f32 %v1681_v48, %v1682_v57  ;;  %v1632_v1 = vadd.f32 %v1482_v40, %v1315_v9  ;;  %v5462_v9 = vpop.f32.mrf.mxu1  ;;  %v6084_v57 = vmov 0.0   ;;  %v1783_v40 = vld [vmem:[#allocation2 + $0xd8] sm:$0xff] }
 0x201   :  { %v1486_v45 = vpop.f32.mrf.mxu0  ;;  %v1321_v18 = vadd.f32 %v5273_v6, %v1004_v37  ;;  %v1778_v6 = vld [vmem:[#allocation2 + $0xb0] sm:$0xff] }
 0x202   :  { %v5449_v8 = vadd.f32 %v5444_v7, %v1708_v15  ;;  %v1683_v31 = vmax.f32 %v1631_v55, %v1632_v1  ;;  %v1633_v48 = vadd.f32 %v1486_v45, %v1316_v28  ;;  %v1782_v15 = vld [vmem:[#allocation2 + $0xd0] sm:$0xff]  ;;  %v6087_v55 = vld [vmem:[#allocation56_spill] sm:$0xff]  ;;  %v6088_v1 = vld [vmem:[#allocation69_spill] sm:$0xff] }
 0x203   :  { %v1488_v0 = vpop.f32.mrf.mxu0  ;;  %v1320_v28 = vadd.f32 %v6088_v1, %v6087_v55  ;;  %v6092_v37 = vld [vmem:[#allocation58_spill] sm:$0xff]  ;;  %v1775_v55 = vld [vmem:[#allocation2 + $0x98] sm:$0xff]  ;;  %v6095_v1 = vld [vmem:[#allocation33_spill] sm:$0xff] }
 0x204   :  { %v1743_v3 = vmax.f32 %v5449_v8, 0.0  ;;  %v1634_v13 = vadd.f32 %v1488_v0, %v1317_v62  ;;  %v1781_v62 = vld [vmem:[#allocation2 + $0xc8] sm:$0xff]  ;;  %v6089_v0 = vld [vmem:[#allocation59_spill] sm:$0xff]  ;;  %v6131_v8 = vld [vmem:[#allocation46_spill] sm:$0xff] }
 0x205   :  { %v1492_v43 = vpop.f32.mrf.mxu0  ;;  %v1006_v52 = vadd.f32 %v6089_v0, %v612_v27  ;;  %v6096_v0 = vld [vmem:[#allocation60_spill] sm:$0xff] }
 0x206   :  { %v1684_v54 = vmax.f32 %v1633_v48, %v1634_v13  ;;  %1886 = vmatmul.mubr.f32.vlgmr.msra.gmra.mxu1 %v1743_v3  ;;  %v1635_v39 = vadd.f32 %v1492_v43, %v1318_v42  ;;  %v1780_v48 = vld [vmem:[#allocation2 + $0xc0] sm:$0xff]  ;;  %v6090_v43 = vld [vmem:[#allocation30_spill] sm:$0xff] }
 0x207   :  { %v1494_v53 = vpop.f32.mrf.mxu0  ;;  %1891 = vmatprep.mubr.f32.mxu1 %v6084_v57  ;;  %1947 = vmatpush1.msra.mxu1 %v1786_v12  ;;  %v1779_v12 = vld [vmem:[#allocation2 + $0xb8] sm:$0xff]  ;;  %v1323_v50 = vadd.f32 %v5291_v35, %v1006_v52  ;;  %v1324_v52 = vadd.f32 %v5300_v24, %v6096_v0 }
 0x208   :  { %v1709_v17 = vmax.f32 %v1683_v31, %v1684_v54  ;;  %v1636_v30 = vadd.f32 %v1494_v53, %v1319_v33  ;;  %1948 = vmatprep.subr.mxu1 %v1785_v34  ;;  %v5472_v31 = vpop.f32.mrf.mxu1  ;;  %v6091_v34 = vld [vmem:[#allocation31_spill] sm:$0xff] }
 0x209   :  { %v1498_v45 = vpop.f32.mrf.mxu0  ;;  %1949 = vmatpush1.msra.mxu1 %v1784_v5  ;;  %v618_v42 = vadd.f32 %v6091_v34, %v6090_v43  ;;  %v1322_v5 = vadd.f32 %v5282_v4, %v6092_v37  ;;  %v6094_v4 = vld [vmem:[#allocation32_spill] sm:$0xff]  ;;  %v6099_v37 = vld [vmem:[#allocation35_spill] sm:$0xff] }
 0x20a   :  { %v1730_v60 = vadd.f32 %v5444_v7, %v1709_v17  ;;  %v1685_v10 = vmax.f32 %v1635_v39, %v1636_v30  ;;  %1950 = vmatprep.subr.mxu1 %v1783_v40  ;;  %v1637_v11 = vadd.f32 %v1498_v45, %v1320_v28  ;;  %v1777_v40 = vld [vmem:[#allocation2 + $0xa8] sm:$0xff]  ;;  %v1776_v39 = vld [vmem:[#allocation2 + $0xa0] sm:$0xff]  ;;  %v5483_v30 = vpop.f32.mrf.mxu1  ;;  %v624_v28 = vadd.f32 %v6095_v1, %v6094_v4  ;;  %v1770_v4 = vld [vmem:[#allocation2 + $0x70] sm:$0xff] }
 0x20b   :  { %v1500_v13 = vpop.f32.mrf.mxu0  ;;  %1951 = vmatpush1.msra.mxu1 %v1782_v15  ;;  %v1008_v27 = vadd.f32 %v6093_v29, %v618_v42 }
 0x20c   :  { %v5476_v33 = vmax.f32 %v1730_v60, 0.0  ;;  %v1638_v54 = vadd.f32 %v1500_v13, %v1321_v18  ;;  %1952 = vmatprep.subr.mxu1 %v1781_v62  ;;  %v1774_v18 = vld [vmem:[#allocation2 + $0x90] sm:$0xff] }
 0x20d   :  { %v1504_v53 = vpop.f32.mrf.mxu0  ;;  %1953 = vmatpush1.msra.mxu1 %v1780_v48  ;;  %v1773_v48 = vld [vmem:[#allocation2 + $0x88] sm:$0xff]  ;;  %v1325_v13 = vadd.f32 %v5309_v26, %v1008_v27  ;;  %v6100_v26 = vld [vmem:[#allocation62_spill] sm:$0xff]  ;;  %v1771_v27 = vld [vmem:[#allocation2 + $0x78] sm:$0xff] }
 0x20e   :  { %v1686_v17 = vmax.f32 %v1637_v11, %v1638_v54  ;;  %1892 = vmatmul.mubr.f32.gmra.mxu1 %v5476_v33  ;;  %1954 = vmatprep.subr.mxu1 %v1779_v12  ;;  %v1639_v62 = vadd.f32 %v1504_v53, %v1322_v5  ;;  %v6097_v12 = vld [vmem:[#allocation63_spill] sm:$0xff]  ;;  %v1772_v11 = vld [vmem:[#allocation2 + $0x80] sm:$0xff] }
 0x20f   :  { %v1506_v15 = vpop.f32.mrf.mxu0  ;;  %1897 = vmatprep.mubr.f32.mxu1 %v6084_v57  ;;  %1955 = vmatpush1.msra.mxu1 %v1778_v6  ;;  %v1010_v43 = vadd.f32 %v6097_v12, %v624_v28  ;;  %v6098_v6 = vld [vmem:[#allocation34_spill] sm:$0xff]  ;;  %v1767_v12 = vld [vmem:[#allocation2 + $0x58] sm:$0xff] }
 0x210   :  { %v1710_v45 = vmax.f32 %v1685_v10, %v1686_v17  ;;  %v1640_v35 = vadd.f32 %v1506_v15, %v1323_v50  ;;  %1956 = vmatprep.subr.mxu1 %v1777_v40  ;;  %v5493_v10 = vpop.f32.mrf.mxu1  ;;  %v630_v5 = vadd.f32 %v6099_v37, %v6098_v6  ;;  %v1326_v50 = vadd.f32 %v5318_v16, %v6100_v26  ;;  %v1769_v16 = vld [vmem:[#allocation2 + $0x68] sm:$0xff]  ;;  %v1766_v37 = vld [vmem:[#allocation2 + $0x50] sm:$0xff] }
 0x211   :  { %v1510_v60 = vpop.f32.mrf.mxu0  ;;  %1957 = vmatpush1.msra.mxu1 %v1776_v39  ;;  %v1327_v17 = vadd.f32 %v5327_v36, %v1010_v43  ;;  %v6101_v39 = vld [vmem:[#allocation65_spill] sm:$0xff] }
 0x212   :  { %v1731_v34 = vadd.f32 %v5444_v7, %v1710_v45  ;;  %v1687_v42 = vmax.f32 %v1639_v62, %v1640_v35  ;;  %1958 = vmatprep.subr.mxu1 %v1775_v55  ;;  %v1641_v53 = vadd.f32 %v1510_v60, %v1324_v52  ;;  %v1012_v15 = vadd.f32 %v6101_v39, %v630_v5  ;;  %v5505_v1 = vpop.f32.mrf.mxu1  ;;  %v6102_v45 = vld [vmem:[#allocation36_spill] sm:$0xff]  ;;  %v6103_v62 = vld [vmem:[#allocation37_spill] sm:$0xff] }
 0x213   :  { %v1512_v54 = vpop.f32.mrf.mxu0  ;;  %1959 = vmatpush1.msra.mxu1 %v1774_v18  ;;  %v636_v35 = vadd.f32 %v6103_v62, %v6102_v45  ;;  %v1768_v52 = vld [vmem:[#allocation2 + $0x60] sm:$0xff]  ;;  %v1765_v39 = vld [vmem:[#allocation2 + $0x48] sm:$0xff] }
 0x214   :  { %v5497_v24 = vmax.f32 %v1731_v34, 0.0  ;;  %v1642_v40 = vadd.f32 %v1512_v54, %v1325_v13  ;;  %1960 = vmatprep.subr.mxu1 %v1773_v48  ;;  %v6104_v60 = vld [vmem:[#allocation64_spill] sm:$0xff]  ;;  %v1329_v43 = vadd.f32 %v5345_v23, %v1012_v15  ;;  %v6105_v34 = vld [vmem:[#allocation67_spill] sm:$0xff]  ;;  %v6108_v23 = vld [vmem:[#allocation66_spill] sm:$0xff] }
 0x215   :  { %v1516_v29 = vpop.f32.mrf.mxu0  ;;  %1961 = vmatpush1.msra.mxu1 %v1772_v11  ;;  %v1328_v48 = vadd.f32 %v5336_v41, %v6104_v60  ;;  %v1014_v11 = vadd.f32 %v6105_v34, %v636_v35  ;;  %v6110_v60 = vld [vmem:[#allocation68_spill] sm:$0xff] }
 0x216   :  { %v1688_v55 = vmax.f32 %v1641_v53, %v1642_v40  ;;  %1898 = vmatmul.mubr.f32.gmra.mxu1 %v5497_v24  ;;  %2347 = vmatmul.mubr.f32.vlgmr.msra.gmra.mxu0 %v5497_v24  ;;  %v1643_v18 = vadd.f32 %v1516_v29, %v1326_v50  ;;  %v6106_v53 = vld [vmem:[#allocation38_spill] sm:$0xff]  ;;  %v6107_v40 = vld [vmem:[#allocation39_spill] sm:$0xff]  ;;  %v1760_v34 = vld [vmem:[#allocation2 + $0x20] sm:$0xff] }
 0x217   :  { %v1518_v28 = vpop.f32.mrf.mxu0  ;;  %1903 = vmatprep.mubr.f32.mxu1 %v6084_v57  ;;  %2352 = vmatprep.mubr.f32.mxu0 %v6084_v57  ;;  %v642_v26 = vadd.f32 %v6107_v40, %v6106_v53  ;;  %v1331_v15 = vadd.f32 %v5363_v46, %v1014_v11  ;;  %v1762_v46 = vld [vmem:[#allocation2 + $0x30] sm:$0xff]  ;;  %v1759_v40 = vld [vmem:[#allocation2 + $0x18] sm:$0xff] }
 0x218   :  { %v1711_v36 = vmax.f32 %v1687_v42, %v1688_v55  ;;  %v1644_v0 = vadd.f32 %v1518_v28, %v1327_v17  ;;  %1962 = vmatprep.subr.mxu1 %v1771_v27  ;;  %v5516_v42 = vpop.f32.mrf.mxu1  ;;  %v1330_v27 = vadd.f32 %v5354_v19, %v6108_v23  ;;  %v6109_v55 = vld [vmem:[#allocation70_spill] sm:$0xff]  ;;  %v1763_v19 = vld [vmem:[#allocation2 + $0x38] sm:$0xff] }
 0x219   :  { %v1522_v13 = vpop.f32.mrf.mxu0  ;;  %1963 = vmatpush1.msra.mxu1 %v1770_v4  ;;  %v1016_v4 = vadd.f32 %v6109_v55, %v642_v26  ;;  %v1337_v55 = vadd.f32 %v5417_v61, %v5284_v14  ;;  %v1339_v14 = vadd.f32 %v5435_v63, %v5293_v32  ;;  %v6112_v32 = vld [vmem:[#allocation72_spill] sm:$0xff] }
 0x21a   :  { %v1732_v54 = vadd.f32 %v5444_v7, %v1711_v36  ;;  %v1689_v6 = vmax.f32 %v1643_v18, %v1644_v0  ;;  %1964 = vmatprep.subr.mxu1 %v1769_v16  ;;  %v1645_v50 = vadd.f32 %v1522_v13, %v1328_v48  ;;  %v1764_v16 = vld [vmem:[#allocation2 + $0x40] sm:$0xff]  ;;  %v5528_v45 = vpop.f32.mrf.mxu1  ;;  %v1332_v48 = vadd.f32 %v5372_v49, %v6110_v60 }
 0x21b   :  { %v1524_v5 = vpop.f32.mrf.mxu0  ;;  %1965 = vmatpush1.msra.mxu1 %v1768_v52  ;;  %v1761_v52 = vld [vmem:[#allocation2 + $0x28] sm:$0xff]  ;;  %v1333_v13 = vadd.f32 %v5381_v38, %v1016_v4  ;;  %v1334_v49 = vadd.f32 %v5393_v20, %v5271_v56  ;;  %v1335_v38 = vadd.f32 %v5402_v2, %v5275_v25  ;;  %v1756_v20 = vld [vmem:[#allocation2] sm:$0xff]  ;;  %v2103_v2 = vld [vmem:[#allocation2 + $0x2f8] sm:$0xff]  ;;  %v1341_v63 = vadd.f32 %v5462_v9, %v6112_v32 }
 0x21c   :  { %v5520_v41 = vmax.f32 %v1732_v54, 0.0  ;;  %v1646_v29 = vadd.f32 %v1524_v5, %v1329_v43  ;;  %1966 = vmatprep.subr.mxu1 %v1767_v12  ;;  %v5536_v11 = vpop.f32.mrf.mxu1 }
 0x21d   :  { %v1528_v17 = vpop.f32.mrf.mxu0  ;;  %1967 = vmatpush1.msra.mxu1 %v1766_v37 }
 0x21e   :  { %v1690_v28 = vmax.f32 %v1645_v50, %v1646_v29  ;;  %1904 = vmatmul.mubr.f32.gmra.mxu1 %v5520_v41  ;;  %2353 = vmatmul.mubr.f32.gmra.mxu0 %v5520_v41  ;;  %v1647_v36 = vadd.f32 %v1528_v17, %v1330_v27  ;;  %v1758_v50 = vld [vmem:[#allocation2 + $0x10] sm:$0xff]  ;;  %v5546_v29 = vpop.f32.mrf.mxu1  ;;  %v1757_v27 = vld [vmem:[#allocation2 + $0x8] sm:$0xff] }
 0x21f   :  { %v1530_v62 = vpop.f32.mrf.mxu0  ;;  %1909 = vmatprep.mubr.f32.mxu1 %v6084_v57  ;;  %2358 = vmatprep.mubr.f32.mxu0 %v6084_v57 }
 0x220   :  { %v1712_v35 = vmax.f32 %v1689_v6, %v1690_v28  ;;  %v1648_v18 = vadd.f32 %v1530_v62, %v1331_v15  ;;  %1968 = vmatprep.subr.mxu1 %v1765_v39  ;;  %v1336_v15 = vadd.f32 %v5409_v58, %v5280_v59  ;;  %v1338_v59 = vadd.f32 %v5427_v47, %v5289_v22  ;;  %v6111_v22 = vld [vmem:[#allocation71_spill] sm:$0xff] }
 0x221   :  { %v1534_v0 = vpop.f32.mrf.mxu0  ;;  %1969 = vmatpush1.msra.mxu1 %v1764_v16  ;;  %v5555_v16 = vpop.f32.mrf.mxu1  ;;  %v1340_v47 = vadd.f32 %v5451_v44, %v6111_v22  ;;  %v6120_v22 = vld [vmem:[#allocation80_spill] sm:$0xff] }
 0x222   :  { %v1733_v12 = vadd.f32 %v5444_v7, %v1712_v35  ;;  %v1691_v43 = vmax.f32 %v1647_v36, %v1648_v18  ;;  %1970 = vmatprep.subr.mxu1 %v1763_v19  ;;  %v1649_v37 = vadd.f32 %v1534_v0, %v1332_v48 }
 0x223   :  { %v1536_v54 = vpop.f32.mrf.mxu0  ;;  %1971 = vmatpush1.msra.mxu1 %v1762_v46  ;;  %v5565_v61 = vpop.f32.mrf.mxu1 }
 0x224   :  { %v5538_v6 = vmax.f32 %v1733_v12, 0.0  ;;  %v1650_v5 = vadd.f32 %v1536_v54, %v1333_v13  ;;  %1972 = vmatprep.subr.mxu1 %v1761_v52 }
 0x225   :  { %v1540_v53 = vpop.f32.mrf.mxu0  ;;  %1973 = vmatpush1.msra.mxu1 %v1760_v34 }
 0x226   :  { %v1692_v26 = vmax.f32 %v1649_v37, %v1650_v5  ;;  %1910 = vmatmul.mubr.f32.gmra.mxu1 %v5538_v6  ;;  %2359 = vmatmul.mubr.f32.gmra.mxu0 %v5538_v6  ;;  %v1651_v39 = vadd.f32 %v1540_v53, %v1334_v49 }
 0x227   :  { %v1542_v23 = vpop.f32.mrf.mxu0  ;;  %1915 = vmatprep.mubr.f32.mxu1 %v6084_v57  ;;  %2364 = vmatprep.mubr.f32.mxu0 %v6084_v57 }
 0x228   :  { %v1713_v17 = vmax.f32 %v1691_v43, %v1692_v26  ;;  %v1652_v56 = vadd.f32 %v1542_v23, %v1335_v38  ;;  %1974 = vmatprep.subr.mxu1 %v1759_v40  ;;  %v5574_v43 = vpop.f32.mrf.mxu1  ;;  %v6113_v40 = vld [vmem:[#allocation73_spill] sm:$0xff]  ;;  %v6114_v38 = vld [vmem:[#allocation74_spill] sm:$0xff] }
 0x229   :  { %v1546_v25 = vpop.f32.mrf.mxu0  ;;  %1975 = vmatpush1.msra.mxu1 %v1758_v50  ;;  %v1342_v49 = vadd.f32 %v5472_v31, %v6113_v40  ;;  %v1343_v44 = vadd.f32 %v5483_v30, %v6114_v38 }
 0x22a   :  { %v1734_v4 = vadd.f32 %v5444_v7, %v1713_v17  ;;  %v1693_v28 = vmax.f32 %v1651_v39, %v1652_v56  ;;  %1976 = vmatprep.subr.mxu1 %v1757_v27  ;;  %v1653_v35 = vadd.f32 %v1546_v25, %v1336_v15  ;;  %v1279_v9 = vpop.f32.mrf.mxu1  ;;  %v6115_v56 = vld [vmem:[#allocation75_spill] sm:$0xff] }
 0x22b   :  { %v1548_v62 = vpop.f32.mrf.mxu0  ;;  %1977 = vmatpush1.msra.mxu1 %v1756_v20  ;;  %v1344_v31 = vadd.f32 %v5493_v10, %v6115_v56  ;;  %v6116_v20 = vld [vmem:[#allocation76_spill] sm:$0xff] }
 0x22c   :  { %v5557_v19 = vmax.f32 %v1734_v4, 0.0  ;;  %v1654_v36 = vadd.f32 %v1548_v62, %v1337_v55  ;;  %2104 = vmatprep.subr.mxu1 %v2103_v2  ;;  %v1345_v30 = vadd.f32 %v5505_v1, %v6116_v20  ;;  %v1283_v15 = vpop.f32.mrf.mxu1 }
 0x22d   :  { %v1552_v18 = vpop.f32.mrf.mxu0 }
 0x22e   :  { %v1694_v58 = vmax.f32 %v1653_v35, %v1654_v36  ;;  %1916 = vmatmul.mubr.f32.gmra.mxu1 %v5557_v19  ;;  %2365 = vmatmul.mubr.f32.gmra.mxu0 %v5557_v19  ;;  %v1655_v52 = vadd.f32 %v1552_v18, %v1338_v59  ;;  %v6117_v36 = vld [vmem:[#allocation77_spill] sm:$0xff]  ;;  %v6118_v59 = vld [vmem:[#allocation78_spill] sm:$0xff]  ;;  %v1285_v1 = vpop.f32.mrf.mxu1 }
 0x22f   :  { %v1554_v46 = vpop.f32.mrf.mxu0  ;;  %1921 = vmatprep.mubr.f32.mxu1 %v6084_v57  ;;  %2370 = vmatprep.mubr.f32.mxu0 %v6084_v57  ;;  %v1346_v18 = vadd.f32 %v5516_v42, %v6117_v36 }
 0x230   :  { %v1714_v0 = vmax.f32 %v1693_v28, %v1694_v58  ;;  %v1656_v60 = vadd.f32 %v1554_v46, %v1339_v14  ;;  %v1347_v14 = vadd.f32 %v5528_v45, %v6118_v59  ;;  %v1349_v45 = vadd.f32 %v5546_v29, %v6120_v22 }
 0x231   :  { %v1558_v48 = vpop.f32.mrf.mxu0 }
 0x232   :  { %v1735_v13 = vadd.f32 %v5444_v7, %v1714_v0  ;;  %v1695_v12 = vmax.f32 %v1655_v52, %v1656_v60  ;;  %v1657_v37 = vadd.f32 %v1558_v48, %v1340_v47  ;;  %v6119_v48 = vld [vmem:[#allocation79_spill] sm:$0xff] }
 0x233   :  { %v1560_v34 = vpop.f32.mrf.mxu0  ;;  %v1348_v42 = vadd.f32 %v5536_v11, %v6119_v48  ;;  %v6128_v48 = vld [vmem:[#allocation43_spill] sm:$0xff] }
 0x234   :  { %v5576_v54 = vmax.f32 %v1735_v13, 0.0  ;;  %v1658_v5 = vadd.f32 %v1560_v34, %v1341_v63  ;;  %v1289_v63 = vpop.f32.mrf.mxu1 }
 0x235   :  { %v1564_v53 = vpop.f32.mrf.mxu0 }
 0x236   :  { %v1696_v26 = vmax.f32 %v1657_v37, %v1658_v5  ;;  %1922 = vmatmul.mubr.f32.gmra.mxu1 %v5576_v54  ;;  %2371 = vmatmul.mubr.f32.gmra.mxu0 %v5576_v54  ;;  %v1659_v27 = vadd.f32 %v1564_v53, %v1342_v49  ;;  %v6121_v53 = vld [vmem:[#allocation81_spill] sm:$0xff]  ;;  %v6122_v49 = vld [vmem:[#allocation82_spill] sm:$0xff]  ;;  %v1291_v29 = vpop.f32.mrf.mxu1 }
 0x237   :  { %v1566_v50 = vpop.f32.mrf.mxu0  ;;  %1927 = vmatprep.mubr.f32.mxu1 %v6084_v57  ;;  %2376 = vmatprep.mubr.f32.mxu0 %v6084_v57  ;;  %v1350_v40 = vadd.f32 %v5555_v16, %v6121_v53  ;;  %v1351_v38 = vadd.f32 %v5565_v61, %v6122_v49  ;;  %v2099_v53 = vld [vmem:[#allocation2 + $0x2d8] sm:$0xff] }
 0x238   :  { %v1715_v23 = vmax.f32 %v1695_v12, %v1696_v26  ;;  %v1660_v17 = vadd.f32 %v1566_v50, %v1343_v44  ;;  %v1295_v20 = vpop.f32.mrf.mxu1  ;;  %v6129_v49 = vld [vmem:[#allocation47_spill] sm:$0xff] }
 0x239   :  { %v1570_v39 = vpop.f32.mrf.mxu0 }
 0x23a   :  { %v1736_v25 = vadd.f32 %v5444_v7, %v1715_v23  ;;  %v1697_v2 = vmax.f32 %v1659_v27, %v1660_v17  ;;  %v1661_v28 = vadd.f32 %v1570_v39, %v1344_v31  ;;  %v6123_v17 = vld [vmem:[#allocation41_spill] sm:$0xff]  ;;  %v6124_v39 = vld [vmem:[#allocation42_spill] sm:$0xff] }
 0x23b   :  { %v1572_v55 = vpop.f32.mrf.mxu0  ;;  %v1352_v16 = vadd.f32 %v5574_v43, %v6123_v17  ;;  %v1353_v61 = vadd.f32 %v1279_v9, %v6124_v39  ;;  %v1297_v9 = vpop.f32.mrf.mxu1  ;;  %v2096_v39 = vld [vmem:[#allocation2 + $0x2c0] sm:$0xff] }
 0x23c   :  { %v5591_v4 = vmax.f32 %v1736_v25, 0.0  ;;  %v1662_v62 = vadd.f32 %v1572_v55, %v1345_v30  ;;  %v1728_v25 = vadd.f32 %v5444_v7, %v5421_v51 }
 0x23d   :  { %v1576_v35 = vpop.f32.mrf.mxu0 }
 0x23e   :  { %v1698_v10 = vmax.f32 %v1661_v28, %v1662_v62  ;;  %1928 = vmatmul.mubr.f32.gmra.mxu1 %v5591_v4  ;;  %2377 = vmatmul.mubr.f32.gmra.mxu0 %v5591_v4  ;;  %v1663_v0 = vadd.f32 %v1576_v35, %v1346_v18  ;;  %v6125_v35 = vld [vmem:[#allocation40_spill] sm:$0xff]  ;;  %v1742_v51 = vmax.f32 %v1728_v25, 0.0  ;;  %v2094_v25 = vld [vmem:[#allocation2 + $0x2b0] sm:$0xff] }
 0x23f   :  { %v1578_v58 = vpop.f32.mrf.mxu0  ;;  %1933 = vmatprep.mubr.f32.mxu1 %v6084_v57  ;;  %2382 = vmatprep.mubr.f32.mxu0 %v6084_v57  ;;  %v1354_v36 = vadd.f32 %v1283_v15, %v6125_v35  ;;  %v6126_v18 = vld [vmem:[#allocation44_spill] sm:$0xff]  ;;  %v2101_v15 = vld [vmem:[#allocation2 + $0x2e8] sm:$0xff] }
 0x240   :  { %v1716_v46 = vmax.f32 %v1697_v2, %v1698_v10  ;;  %v1664_v52 = vadd.f32 %v1578_v58, %v1347_v14  ;;  %v1355_v59 = vadd.f32 %v1285_v1, %v6126_v18  ;;  %v2092_v18 = vld [vmem:[#allocation2 + $0x2a0] sm:$0xff] }
 0x241   :  { %v1582_v60 = vpop.f32.mrf.mxu0 }
 0x242   :  { %v1737_v47 = vadd.f32 %v5444_v7, %v1716_v46  ;;  %v1699_v32 = vmax.f32 %v1663_v0, %v1664_v52  ;;  %v1665_v34 = vadd.f32 %v1582_v60, %v1348_v42  ;;  %v2102_v0 = vld [vmem:[#allocation2 + $0x2f0] sm:$0xff]  ;;  %v6127_v60 = vld [vmem:[#allocation45_spill] sm:$0xff]  ;;  %v1357_v42 = vadd.f32 %v1291_v29, %v6128_v48 }
 0x243   :  { %v1584_v13 = vpop.f32.mrf.mxu0  ;;  %v1356_v1 = vadd.f32 %v1289_v63, %v6127_v60  ;;  %v2098_v63 = vld [vmem:[#allocation2 + $0x2d0] sm:$0xff]  ;;  %v2080_v60 = vld [vmem:[#allocation2 + $0x240] sm:$0xff] }
 0x244   :  { %v5606_v12 = vmax.f32 %v1737_v47, 0.0  ;;  %v1666_v37 = vadd.f32 %v1584_v13, %v1349_v45  ;;  %v2100_v47 = vld [vmem:[#allocation2 + $0x2e0] sm:$0xff]  ;;  %v2078_v48 = vld [vmem:[#allocation2 + $0x230] sm:$0xff] }
 0x245   :  { %v1588_v5 = vpop.f32.mrf.mxu0 }
 0x246   :  { %v1700_v11 = vmax.f32 %v1665_v34, %v1666_v37  ;;  %1934 = vmatmul.mubr.f32.gmra.mxu1 %v5606_v12  ;;  %2383 = vmatmul.mubr.f32.gmra.mxu0 %v5606_v12  ;;  %v1667_v50 = vadd.f32 %v1588_v5, %v1350_v40 }
 0x247   :  { %v1590_v44 = vpop.f32.mrf.mxu0  ;;  %1939 = vmatprep.mubr.f32.mxu1 %v6084_v57  ;;  %2388 = vmatprep.mubr.f32.mxu0 %v6084_v57 }
 0x248   :  { %v1717_v26 = vmax.f32 %v1699_v32, %v1700_v11  ;;  %v1668_v23 = vadd.f32 %v1590_v44, %v1351_v38  ;;  %v1301_v32 = vpop.f32.mrf.mxu1  ;;  %v1358_v38 = vadd.f32 %v1295_v20, %v6129_v49  ;;  %v6130_v11 = vld [vmem:[#allocation48_spill] sm:$0xff]  ;;  %v2454_v49 = vld [vmem:[#allocation2 + $0x4d0] sm:$0xff] }
 0x249   :  { %v1594_v27 = vpop.f32.mrf.mxu0  ;;  %v1359_v29 = vadd.f32 %v1297_v9, %v6130_v11  ;;  %v2089_v9 = vld [vmem:[#allocation2 + $0x288] sm:$0xff]  ;;  %v2452_v11 = vld [vmem:[#allocation2 + $0x4c0] sm:$0xff] }
 0x24a   :  { %v1738_v56 = vadd.f32 %v5444_v7, %v1717_v26  ;;  %v1701_v31 = vmax.f32 %v1667_v50, %v1668_v23  ;;  %v1669_v55 = vadd.f32 %v1594_v27, %v1352_v16  ;;  %v2097_v26 = vld [vmem:[#allocation2 + $0x2c8] sm:$0xff]  ;;  %v1303_v50 = vpop.f32.mrf.mxu1 }
 0x24b   :  { %v1596_v30 = vpop.f32.mrf.mxu0 }
 0x24c   :  { %v5622_v2 = vmax.f32 %v1738_v56, 0.0  ;;  %v1670_v28 = vadd.f32 %v1596_v30, %v1353_v61  ;;  %v2095_v56 = vld [vmem:[#allocation2 + $0x2b8] sm:$0xff] }
 0x24d   :  { %v1600_v62 = vpop.f32.mrf.mxu0 }
 0x24e   :  { %v1702_v43 = vmax.f32 %v1669_v55, %v1670_v28  ;;  %1940 = vmatmul.mubr.f32.gmra.mxu1 %v5622_v2  ;;  %2389 = vmatmul.mubr.f32.gmra.mxu0 %v5622_v2  ;;  %v1671_v58 = vadd.f32 %v1600_v62, %v1354_v36  ;;  %v2093_v36 = vld [vmem:[#allocation2 + $0x2a8] sm:$0xff] }
 0x24f   :  { %v1602_v14 = vpop.f32.mrf.mxu0  ;;  %2010 = vmatprep.mubr.f32.mxu1 %v6084_v57  ;;  %2394 = vmatprep.mubr.f32.mxu0 %v6084_v57 }
 0x250   :  { %v1718_v10 = vmax.f32 %v1701_v31, %v1702_v43  ;;  %v1672_v46 = vadd.f32 %v1602_v14, %v1355_v59  ;;  %v1361_v31 = vadd.f32 %v1303_v50, %v5397_v21  ;;  %v2090_v43 = vld [vmem:[#allocation2 + $0x290] sm:$0xff]  ;;  %v2088_v14 = vld [vmem:[#allocation2 + $0x280] sm:$0xff]  ;;  %v2447_v50 = vld [vmem:[#allocation2 + $0x498] sm:$0xff] }
 0x251   :  { %v1606_v52 = vpop.f32.mrf.mxu0 }
 0x252   :  { %v1739_v22 = vadd.f32 %v5444_v7, %v1718_v10  ;;  %v1703_v45 = vmax.f32 %v1671_v58, %v1672_v46  ;;  %2011 = vmatmul.mubr.f32.vlgmr.msra.gmra.mxu1 %v1742_v51  ;;  %v1673_v37 = vadd.f32 %v1606_v52, %v1356_v1  ;;  %v2087_v51 = vld [vmem:[#allocation2 + $0x278] sm:$0xff]  ;;  %v2086_v10 = vld [vmem:[#allocation2 + $0x270] sm:$0xff]  ;;  %v2085_v58 = vld [vmem:[#allocation2 + $0x268] sm:$0xff] }
 0x253   :  { %v1608_v13 = vpop.f32.mrf.mxu0  ;;  %2105 = vmatpush1.msra.mxu1 %v2102_v0  ;;  %2016 = vmatprep.mubr.f32.mxu1 %v6084_v57  ;;  %v2084_v46 = vld [vmem:[#allocation2 + $0x260] sm:$0xff]  ;;  %v2083_v0 = vld [vmem:[#allocation2 + $0x258] sm:$0xff]  ;;  %v2082_v52 = vld [vmem:[#allocation2 + $0x250] sm:$0xff] }
 0x254   :  { %v5634_v34 = vmax.f32 %v1739_v22, 0.0  ;;  %v1674_v5 = vadd.f32 %v1608_v13, %v1357_v42  ;;  %2106 = vmatprep.subr.mxu1 %v2101_v15  ;;  %v2081_v15 = vld [vmem:[#allocation2 + $0x248] sm:$0xff]  ;;  %v2079_v1 = vld [vmem:[#allocation2 + $0x238] sm:$0xff]  ;;  %v2076_v22 = vld [vmem:[#allocation2 + $0x220] sm:$0xff] }
 0x255   :  { %v1612_v40 = vpop.f32.mrf.mxu0  ;;  %2107 = vmatpush1.msra.mxu1 %v2100_v47  ;;  %v2077_v42 = vld [vmem:[#allocation2 + $0x228] sm:$0xff]  ;;  %v2074_v47 = vld [vmem:[#allocation2 + $0x210] sm:$0xff]  ;;  %v2072_v13 = vld [vmem:[#allocation2 + $0x200] sm:$0xff] }
 0x256   :  { %v1704_v44 = vmax.f32 %v1673_v37, %v1674_v5  ;;  %2017 = vmatmul.mubr.f32.gmra.mxu1 %v1743_v3  ;;  %2395 = vmatmul.mubr.f32.gmra.mxu0 %v5634_v34  ;;  %v1675_v17 = vadd.f32 %v1612_v40, %v1358_v38  ;;  %v1360_v3 = vadd.f32 %v1301_v32, %v6131_v8  ;;  %v2073_v32 = vld [vmem:[#allocation2 + $0x208] sm:$0xff]  ;;  %v2459_v37 = vld [vmem:[#allocation2 + $0x4f8] sm:$0xff]  ;;  %v2458_v5 = vld [vmem:[#allocation2 + $0x4f0] sm:$0xff] }
 0x257   :  { %v1614_v23 = vpop.f32.mrf.mxu0  ;;  %2108 = vmatprep.subr.mxu1 %v2099_v53  ;;  %2022 = vmatprep.mubr.f32.mxu1 %v6084_v57  ;;  %v2457_v53 = vld [vmem:[#allocation2 + $0x4e8] sm:$0xff]  ;;  %v2456_v40 = vld [vmem:[#allocation2 + $0x4e0] sm:$0xff]  ;;  %v2438_v8 = vld [vmem:[#allocation2 + $0x450] sm:$0xff] }
 0x258   :  { %v1719_v27 = vmax.f32 %v1703_v45, %v1704_v44  ;;  %v1676_v16 = vadd.f32 %v1614_v23, %v1359_v29  ;;  %2109 = vmatpush1.msra.mxu1 %v2098_v63  ;;  %2400 = vmatprep.mubr.f32.mxu0 %v6084_v57  ;;  %v2075_v45 = vld [vmem:[#allocation2 + $0x218] sm:$0xff]  ;;  %v2453_v38 = vld [vmem:[#allocation2 + $0x4c8] sm:$0xff]  ;;  %v2450_v44 = vld [vmem:[#allocation2 + $0x4b0] sm:$0xff] }
 0x259   :  { %v1618_v61 = vpop.f32.mrf.mxu0  ;;  %2110 = vmatprep.subr.mxu1 %v2097_v26  ;;  %v2455_v63 = vld [vmem:[#allocation2 + $0x4d8] sm:$0xff]  ;;  %v2448_v26 = vld [vmem:[#allocation2 + $0x4a0] sm:$0xff]  ;;  %v2445_v23 = vld [vmem:[#allocation2 + $0x488] sm:$0xff] }
 0x25a   :  { %v5646_v20 = vadd.f32 %v5444_v7, %v1719_v27  ;;  %v1705_v30 = vmax.f32 %v1675_v17, %v1676_v16  ;;  %2023 = vmatmul.mubr.f32.gmra.mxu1 %v5476_v33  ;;  %v1677_v62 = vadd.f32 %v1618_v61, %v1360_v3  ;;  %v2091_v7 = vld [vmem:[#allocation2 + $0x298] sm:$0xff]  ;;  %v2444_v27 = vld [vmem:[#allocation2 + $0x480] sm:$0xff]  ;;  %v2442_v16 = vld [vmem:[#allocation2 + $0x470] sm:$0xff] }
 0x25b   :  { %v1620_v55 = vpop.f32.mrf.mxu0  ;;  %2111 = vmatpush1.msra.mxu1 %v2096_v39  ;;  %2028 = vmatprep.mubr.f32.mxu1 %v6084_v57  ;;  %v2451_v29 = vld [vmem:[#allocation2 + $0x4b8] sm:$0xff]  ;;  %v2441_v39 = vld [vmem:[#allocation2 + $0x468] sm:$0xff]  ;;  %v2440_v61 = vld [vmem:[#allocation2 + $0x460] sm:$0xff] }
 0x25c   :  { %v1754_v28 = vmax.f32 %v5646_v20, 0.0  ;;  %v1678_v35 = vadd.f32 %v1620_v55, %v1361_v31  ;;  %2112 = vmatprep.subr.mxu1 %v2095_v56  ;;  %v2443_v17 = vld [vmem:[#allocation2 + $0x478] sm:$0xff]  ;;  %v2437_v3 = vld [vmem:[#allocation2 + $0x448] sm:$0xff]  ;;  %v2436_v31 = vld [vmem:[#allocation2 + $0x440] sm:$0xff] }
 0x25d   :  { %2113 = vmatpush1.msra.mxu1 %v2094_v25  ;;  %v2439_v56 = vld [vmem:[#allocation2 + $0x458] sm:$0xff]  ;;  %v2434_v25 = vld [vmem:[#allocation2 + $0x430] sm:$0xff]  ;;  %v2433_v55 = vld [vmem:[#allocation2 + $0x428] sm:$0xff] }
 0x25e   :  { %v1706_v21 = vmax.f32 %v1677_v62, %v1678_v35  ;;  %2029 = vmatmul.mubr.f32.gmra.mxu1 %v5497_v24  ;;  %2401 = vmatmul.mubr.f32.gmra.mxu0 %v1754_v28  ;;  %v2432_v62 = vld [vmem:[#allocation2 + $0x420] sm:$0xff]  ;;  %v2431_v35 = vld [vmem:[#allocation2 + $0x418] sm:$0xff] }
 0x25f   :  { %2114 = vmatprep.subr.mxu1 %v2093_v36  ;;  %2034 = vmatprep.mubr.f32.mxu1 %v6084_v57  ;;  %v2430_v36 = vld [vmem:[#allocation2 + $0x410] sm:$0xff] }
 0x260   :  { %v5655_v59 = vmax.f32 %v1705_v30, %v1706_v21  ;;  %2115 = vmatpush1.msra.mxu1 %v2092_v18  ;;  %v2435_v30 = vld [vmem:[#allocation2 + $0x438] sm:$0xff]  ;;  %v2429_v18 = vld [vmem:[#allocation2 + $0x408] sm:$0xff]  ;;  %v2428_v21 = vld [vmem:[#allocation2 + $0x400] sm:$0xff]  ;;  %3670 = vmatprep.mubr.msk.f32.mxu0 %vm3989_vm1, %v6084_v57 }
 0x261   :  { %2116 = vmatprep.subr.mxu1 %v2091_v7  ;;  %v2667_v7 = vld [vmem:[#allocation4 + $0xe8] sm:$0xff] }
 0x262   :  { %2035 = vmatmul.mubr.f32.gmra.mxu1 %v5520_v41 }
 0x263   :  { %2117 = vmatpush1.msra.mxu1 %v2090_v43  ;;  %2040 = vmatprep.mubr.f32.mxu1 %v6084_v57 }
 0x264   :  { %2118 = vmatprep.subr.mxu1 %v2089_v9  ;;  %v2647_v9 = vld [vmem:[#allocation4 + $0x50] sm:$0xff] }
 0x265   :  { %2119 = vmatpush1.msra.mxu1 %v2088_v14  ;;  %v2666_v14 = vld [vmem:[#allocation4 + $0xe0] sm:$0xff] }
 0x266   :  { %2041 = vmatmul.mubr.f32.gmra.mxu1 %v5538_v6  ;;  %2120 = vmatprep.subr.mxu1 %v2087_v51 }
 0x267   :  { %2121 = vmatpush1.msra.mxu1 %v2086_v10  ;;  %2046 = vmatprep.mubr.f32.mxu1 %v6084_v57  ;;  %v2646_v10 = vld [vmem:[#allocation4 + $0x48] sm:$0xff] }
 0x268   :  { %2122 = vmatprep.subr.mxu1 %v2085_v58  ;;  %v2665_v58 = vld [vmem:[#allocation4 + $0xd8] sm:$0xff] }
 0x269   :  { %2123 = vmatpush1.msra.mxu1 %v2084_v46  ;;  %v2645_v46 = vld [vmem:[#allocation4 + $0x40] sm:$0xff] }
 0x26a   :  { %2047 = vmatmul.mubr.f32.gmra.mxu1 %v5557_v19  ;;  %2124 = vmatprep.subr.mxu1 %v2083_v0  ;;  %v2664_v0 = vld [vmem:[#allocation4 + $0xd0] sm:$0xff] }
 0x26b   :  { %2125 = vmatpush1.msra.mxu1 %v2082_v52  ;;  %2052 = vmatprep.mubr.f32.mxu1 %v6084_v57 }
 0x26c   :  { %2126 = vmatprep.subr.mxu1 %v2081_v15  ;;  %v2644_v15 = vld [vmem:[#allocation4 + $0x38] sm:$0xff] }
 0x26d   :  { %2127 = vmatpush1.msra.mxu1 %v2080_v60  ;;  %v2663_v60 = vld [vmem:[#allocation4 + $0xc8] sm:$0xff] }
 0x26e   :  { %2053 = vmatmul.mubr.f32.gmra.mxu1 %v5576_v54  ;;  %2128 = vmatprep.subr.mxu1 %v2079_v1 }
 0x26f   :  { %2058 = vmatprep.mubr.f32.mxu1 %v6084_v57  ;;  %2129 = vmatpush1.msra.mxu1 %v2078_v48  ;;  %v2643_v48 = vld [vmem:[#allocation4 + $0x30] sm:$0xff] }
 0x270   :  { %2130 = vmatprep.subr.mxu1 %v2077_v42  ;;  %v2642_v42 = vld [vmem:[#allocation4 + $0x28] sm:$0xff] }
 0x271   :  { %2131 = vmatpush1.msra.mxu1 %v2076_v22  ;;  %v2662_v22 = vld [vmem:[#allocation4 + $0xc0] sm:$0xff] }
 0x272   :  { %2059 = vmatmul.mubr.f32.gmra.mxu1 %v5591_v4  ;;  %2132 = vmatprep.subr.mxu1 %v2075_v45 }
 0x273   :  { %2064 = vmatprep.mubr.f32.mxu1 %v6084_v57  ;;  %2133 = vmatpush1.msra.mxu1 %v2074_v47  ;;  %v2641_v47 = vld [vmem:[#allocation4 + $0x20] sm:$0xff] }
 0x274   :  { %2134 = vmatprep.subr.mxu1 %v2073_v32 }
 0x275   :  { %2135 = vmatpush1.msra.mxu1 %v2072_v13  ;;  %v2661_v13 = vld [vmem:[#allocation4 + $0xb8] sm:$0xff] }
 0x276   :  { %2065 = vmatmul.mubr.f32.gmra.mxu1 %v5606_v12  ;;  %2460 = vmatprep.subr.mxu1 %v2459_v37  ;;  %v2640_v37 = vld [vmem:[#allocation4 + $0x18] sm:$0xff] }
 0x277   :  { %2168 = vmatprep.mubr.f32.mxu1 %v6084_v57 }
 0x27a   :  { %2169 = vmatmul.mubr.f32.vlgmr.msra.gmra.mxu1 %v5476_v33  ;;  %v2449_v33 = vld [vmem:[#allocation2 + $0x4a8] sm:$0xff] }
 0x27b   :  { %2461 = vmatpush1.msra.mxu1 %v2458_v5  ;;  %2174 = vmatprep.mubr.f32.mxu1 %v6084_v57  ;;  %v2660_v5 = vld [vmem:[#allocation4 + $0xb0] sm:$0xff] }
 0x27c   :  { %2462 = vmatprep.subr.mxu1 %v2457_v53  ;;  %v2639_v53 = vld [vmem:[#allocation4 + $0x10] sm:$0xff] }
 0x27d   :  { %2463 = vmatpush1.msra.mxu1 %v2456_v40 }
 0x27e   :  { %2175 = vmatmul.mubr.f32.gmra.mxu1 %v5497_v24  ;;  %2464 = vmatprep.subr.mxu1 %v2455_v63  ;;  %v2446_v24 = vld [vmem:[#allocation2 + $0x490] sm:$0xff]  ;;  %v2659_v63 = vld [vmem:[#allocation4 + $0xa8] sm:$0xff] }
 0x27f   :  { %2465 = vmatpush1.msra.mxu1 %v2454_v49  ;;  %2180 = vmatprep.mubr.f32.mxu1 %v6084_v57  ;;  %v2638_v49 = vld [vmem:[#allocation4 + $0x8] sm:$0xff] }
 0x280   :  { %2466 = vmatprep.subr.mxu1 %v2453_v38 }
 0x281   :  { %2467 = vmatpush1.msra.mxu1 %v2452_v11  ;;  %v2658_v11 = vld [vmem:[#allocation4 + $0xa0] sm:$0xff] }
 0x282   :  { %2181 = vmatmul.mubr.f32.gmra.mxu1 %v5520_v41  ;;  %2468 = vmatprep.subr.mxu1 %v2451_v29  ;;  %v2637_v29 = vld [vmem:[#allocation4] sm:$0xff] }
 0x283   :  { %2186 = vmatprep.mubr.f32.mxu1 %v6084_v57  ;;  %2469 = vmatpush1.msra.mxu1 %v2450_v44  ;;  %v2657_v44 = vld [vmem:[#allocation4 + $0x98] sm:$0xff] }
 0x284   :  { %2470 = vmatprep.subr.mxu1 %v2449_v33 }
 0x285   :  { %2471 = vmatpush1.msra.mxu1 %v2448_v26  ;;  %v2656_v26 = vld [vmem:[#allocation4 + $0x90] sm:$0xff] }
 0x286   :  { %2187 = vmatmul.mubr.f32.gmra.mxu1 %v5538_v6  ;;  %2472 = vmatprep.subr.mxu1 %v2447_v50 }
 0x287   :  { %2192 = vmatprep.mubr.f32.mxu1 %v6084_v57  ;;  %2473 = vmatpush1.msra.mxu1 %v2446_v24  ;;  %v2655_v24 = vld [vmem:[#allocation4 + $0x88] sm:$0xff] }
 0x288   :  { %2474 = vmatprep.subr.mxu1 %v2445_v23  ;;  %v2654_v23 = vld [vmem:[#allocation4 + $0x80] sm:$0xff] }
 0x289   :  { %2475 = vmatpush1.msra.mxu1 %v2444_v27 }
 0x28a   :  { %2193 = vmatmul.mubr.f32.gmra.mxu1 %v5557_v19  ;;  %2476 = vmatprep.subr.mxu1 %v2443_v17 }
 0x28b   :  { %2198 = vmatprep.mubr.f32.mxu1 %v6084_v57  ;;  %2477 = vmatpush1.msra.mxu1 %v2442_v16 }
 0x28c   :  { %2478 = vmatprep.subr.mxu1 %v2441_v39 }
 0x28d   :  { %2479 = vmatpush1.msra.mxu1 %v2440_v61 }
 0x28e   :  { %2199 = vmatmul.mubr.f32.gmra.mxu1 %v5576_v54  ;;  %2480 = vmatprep.subr.mxu1 %v2439_v56 }
 0x28f   :  { %2204 = vmatprep.mubr.f32.mxu1 %v6084_v57  ;;  %2481 = vmatpush1.msra.mxu1 %v2438_v8 }
 0x290   :  { %2482 = vmatprep.subr.mxu1 %v2437_v3 }
 0x291   :  { %2483 = vmatpush1.msra.mxu1 %v2436_v31 }
 0x292   :  { %2205 = vmatmul.mubr.f32.gmra.mxu1 %v5591_v4  ;;  %2484 = vmatprep.subr.mxu1 %v2435_v30 }
 0x293   :  { %2210 = vmatprep.mubr.f32.mxu1 %v6084_v57  ;;  %2485 = vmatpush1.msra.mxu1 %v2434_v25 }
 0x294   :  { %2486 = vmatprep.subr.mxu1 %v2433_v55 }
 0x295   :  { %2487 = vmatpush1.msra.mxu1 %v2432_v62 }
 0x296   :  { %2211 = vmatmul.mubr.f32.gmra.mxu1 %v5606_v12  ;;  %2488 = vmatprep.subr.mxu1 %v2431_v35 }
 0x297   :  { %2216 = vmatprep.mubr.f32.mxu1 %v6084_v57  ;;  %2489 = vmatpush1.msra.mxu1 %v2430_v36 }
 0x298   :  { %2490 = vmatprep.subr.mxu1 %v2429_v18 }
 0x299   :  { %2491 = vmatpush1.msra.mxu1 %v2428_v21 }
 0x29a   :  { %2217 = vmatmul.mubr.f32.gmra.mxu1 %v5622_v2  ;;  %3673 = vmatprep.subr.mxu1 %v6084_v57 }
 0x29b   :  { %2222 = vmatprep.mubr.f32.mxu1 %v6084_v57 }
 0x29e   :  { %2223 = vmatmul.mubr.f32.gmra.mxu1 %v5634_v34 }
 0x29f   :  { %2524 = vmatprep.mubr.f32.mxu1 %v6084_v57 }
 0x2a2   :  { %2525 = vmatmul.mubr.f32.vlgmr.msra.gmra.mxu1 %v5520_v41  ;;  %v3893_v41 = vld [vmem:[%s5957_s2] ss:$0 sm:$0xff] }
 0x2a3   :  { %2530 = vmatprep.mubr.f32.mxu1 %v6084_v57 }
 0x2a6   :  { %2531 = vmatmul.mubr.f32.gmra.mxu1 %v5538_v6  ;;  %v1741_v6 = vadd.f32 %v3893_v41, %v5655_v59  ;;  %v2648_v59 = vld [vmem:[#allocation4 + $0x58] sm:$0xff] }
 0x2a7   :  { %2536 = vmatprep.mubr.f32.mxu1 %v6084_v57 }
 0x2aa   :  { %2537 = vmatmul.mubr.f32.gmra.mxu1 %v5557_v19  ;;  %v1755_v19 = vmax.f32 %v1741_v6, 0.0 }
 0x2ab   :  { %2542 = vmatprep.mubr.f32.mxu1 %v6084_v57 }
 0x2ae   :  { %2543 = vmatmul.mubr.f32.gmra.mxu1 %v5576_v54  ;;  %v2652_v54 = vld [vmem:[#allocation4 + $0x78] sm:$0xff] }
 0x2af   :  { %2548 = vmatprep.mubr.f32.mxu1 %v6084_v57  ;;  %3674 = vmatpush3.msra.mxu1 %v2652_v54 }
 0x2b0   :  { %3675 = vmatprep.subr.mxu1 %v6084_v57 }
 0x2b2   :  { %2549 = vmatmul.mubr.f32.gmra.mxu1 %v5591_v4  ;;  %v2651_v4 = vld [vmem:[#allocation4 + $0x70] sm:$0xff] }
 0x2b3   :  { %2554 = vmatprep.mubr.f32.mxu1 %v6084_v57  ;;  %3676 = vmatpush3.msra.mxu1 %v2651_v4 }
 0x2b4   :  { %3677 = vmatprep.subr.mxu1 %v6084_v57 }
 0x2b6   :  { %2555 = vmatmul.mubr.f32.gmra.mxu1 %v5606_v12  ;;  %v2669_v12 = vld [vmem:[#allocation4 + $0xf8] sm:$0xff] }
 0x2b7   :  { %2560 = vmatprep.mubr.f32.mxu1 %v6084_v57  ;;  %3639 = vmatpush3.msra.mxu0 %v2669_v12 }
 0x2b8   :  { %3640 = vmatprep.subr.mxu0 %v6084_v57 }
 0x2ba   :  { %2561 = vmatmul.mubr.f32.gmra.mxu1 %v5622_v2  ;;  %v2650_v2 = vld [vmem:[#allocation4 + $0x68] sm:$0xff] }
 0x2bb   :  { %2566 = vmatprep.mubr.f32.mxu1 %v6084_v57  ;;  %3678 = vmatpush3.msra.mxu1 %v2650_v2 }
 0x2bc   :  { %3679 = vmatprep.subr.mxu1 %v6084_v57 }
 0x2be   :  { %2567 = vmatmul.mubr.f32.gmra.mxu1 %v5634_v34  ;;  %v2668_v34 = vld [vmem:[#allocation4 + $0xf0] sm:$0xff] }
 0x2bf   :  { %2572 = vmatprep.mubr.f32.mxu1 %v6084_v57  ;;  %3641 = vmatpush3.msra.mxu0 %v2668_v34 }
 0x2c0   :  { %3642 = vmatprep.subr.mxu0 %v6084_v57 }
 0x2c1   :  { %3643 = vmatpush3.msra.mxu0 %v2667_v7 }
 0x2c2   :  { %2573 = vmatmul.mubr.f32.gmra.mxu1 %v1754_v28  ;;  %v2649_v28 = vld [vmem:[#allocation4 + $0x60] sm:$0xff]  ;;  %3644 = vmatprep.subr.mxu0 %v6084_v57 }
 0x2c3   :  { %2578 = vmatprep.mubr.f32.mxu1 %v6084_v57  ;;  %3680 = vmatpush3.msra.mxu1 %v2649_v28 }
 0x2c4   :  { %3681 = vmatprep.subr.mxu1 %v6084_v57  ;;  %3645 = vmatpush3.msra.mxu0 %v2666_v14 }
 0x2c5   :  { %3682 = vmatpush3.msra.mxu1 %v2648_v59  ;;  %3646 = vmatprep.subr.mxu0 %v6084_v57 }
 0x2c6   :  { %2579 = vmatmul.mubr.f32.gmra.mxu1 %v1755_v19  ;;  %v5716_v20 = vpop.f32.mrf.mxu1  ;;  %3683 = vmatprep.subr.mxu1 %v6084_v57 }
 0x2c7   :  { %3684 = vmatpush3.msra.mxu1 %v2647_v9  ;;  %3647 = vmatpush3.msra.mxu0 %v2665_v58 }
 0x2c8   :  { %v5722_v43 = vpop.f32.mrf.mxu1  ;;  %3685 = vmatprep.subr.mxu1 %v6084_v57  ;;  %3648 = vmatprep.subr.mxu0 %v6084_v57 }
 0x2c9   :  { %3686 = vmatpush3.msra.mxu1 %v2646_v10  ;;  %3649 = vmatpush3.msra.mxu0 %v2664_v0 }
 0x2ca   :  { %3687 = vmatprep.subr.mxu1 %v6084_v57  ;;  %3650 = vmatprep.subr.mxu0 %v6084_v57 }
 0x2cb   :  { %3688 = vmatpush3.msra.mxu1 %v2645_v46  ;;  %3651 = vmatpush3.msra.mxu0 %v2663_v60 }
 0x2cc   :  { %3689 = vmatprep.subr.mxu1 %v6084_v57  ;;  %3652 = vmatprep.subr.mxu0 %v6084_v57 }
 0x2cd   :  { %3690 = vmatpush3.msra.mxu1 %v2644_v15  ;;  %3653 = vmatpush3.msra.mxu0 %v2662_v22 }
 0x2ce   :  { %v5725_v51 = vpop.f32.mrf.mxu1  ;;  %3691 = vmatprep.subr.mxu1 %v6084_v57  ;;  %3654 = vmatprep.subr.mxu0 %v6084_v57 }
 0x2cf   :  { %3692 = vmatpush3.msra.mxu1 %v2643_v48  ;;  %3655 = vmatpush3.msra.mxu0 %v2661_v13 }
 0x2d0   :  { %v5731_v52 = vpop.f32.mrf.mxu1  ;;  %3693 = vmatprep.subr.mxu1 %v6084_v57  ;;  %3656 = vmatprep.subr.mxu0 %v6084_v57 }
 0x2d1   :  { %3694 = vmatpush3.msra.mxu1 %v2642_v42  ;;  %3657 = vmatpush3.msra.mxu0 %v2660_v5 }
 0x2d2   :  { %3695 = vmatprep.subr.mxu1 %v6084_v57  ;;  %3658 = vmatprep.subr.mxu0 %v6084_v57 }
 0x2d3   :  { %3696 = vmatpush3.msra.mxu1 %v2641_v47  ;;  %3659 = vmatpush3.msra.mxu0 %v2659_v63 }
 0x2d4   :  { %3697 = vmatprep.subr.mxu1 %v6084_v57  ;;  %3660 = vmatprep.subr.mxu0 %v6084_v57 }
 0x2d5   :  { %3698 = vmatpush3.msra.mxu1 %v2640_v37  ;;  %3661 = vmatpush3.msra.mxu0 %v2658_v11 }
 0x2d6   :  { %v5735_v1 = vpop.f32.mrf.mxu1  ;;  %3699 = vmatprep.subr.mxu1 %v6084_v57  ;;  %3662 = vmatprep.subr.mxu0 %v6084_v57 }
 0x2d7   :  { %3700 = vmatpush3.msra.mxu1 %v2639_v53  ;;  %3705 = vmatprep.mubr.msk.f32.mxu1 %vm3989_vm1, %v6084_v57 }
 0x2d8   :  { %v5740_v45 = vpop.f32.mrf.mxu1  ;;  %3701 = vmatprep.subr.mxu1 %v6084_v57  ;;  %3663 = vmatpush3.msra.mxu0 %v2657_v44 }
 0x2d9   :  { %3702 = vmatpush3.msra.mxu1 %v2638_v49  ;;  %3664 = vmatprep.subr.mxu0 %v6084_v57 }
 0x2da   :  { %3703 = vmatprep.subr.mxu1 %v6084_v57  ;;  %3665 = vmatpush3.msra.mxu0 %v2656_v26  ;;  %v2348_v26 = vpop.f32.mrf.mxu0 }
 0x2db   :  { %3704 = vmatpush3.msra.mxu1 %v2637_v29  ;;  %3666 = vmatprep.subr.mxu0 %v6084_v57 }
 0x2dc   :  { %3743 = vmatprep.subr.mxu1 %v6084_v57  ;;  %3667 = vmatpush3.msra.mxu0 %v2655_v24 }
 0x2dd   :  { %3668 = vmatprep.subr.mxu0 %v6084_v57 }
 0x2de   :  { %v1905_v32 = vpop.f32.mrf.mxu1  ;;  %3669 = vmatpush3.msra.mxu0 %v2654_v23 }
 0x2df   :  { %3708 = vmatprep.subr.mxu0 %v6084_v57 }
 0x2e0   :  { %v1907_v40 = vpop.f32.mrf.mxu1 }
 0x2e6   :  { %v1911_v38 = vpop.f32.mrf.mxu1 }
 0x2e8   :  { %v1913_v33 = vpop.f32.mrf.mxu1 }
 0x2ee   :  { %v1917_v50 = vpop.f32.mrf.mxu1 }
 0x2f0   :  { %v1919_v27 = vpop.f32.mrf.mxu1 }
 0x2f6   :  { %v1923_v17 = vpop.f32.mrf.mxu1 }
 0x2f8   :  { %v1925_v16 = vpop.f32.mrf.mxu1 }
 0x2fe   :  { %v1929_v39 = vpop.f32.mrf.mxu1 }
 0x300   :  { %v1931_v61 = vpop.f32.mrf.mxu1 }
 0x306   :  { %v1935_v56 = vpop.f32.mrf.mxu1 }
 0x308   :  { %v1937_v8 = vpop.f32.mrf.mxu1 }
 0x30e   :  { %v1941_v3 = vpop.f32.mrf.mxu1 }
 0x310   :  { %v1943_v31 = vpop.f32.mrf.mxu1 }
 0x312   :  { %v2012_v30 = vpop.f32.mrf.mxu1 }
 0x314   :  { %v2014_v25 = vpop.f32.mrf.mxu1 }
 0x316   :  { %v5761_v55 = vpop.f32.mrf.mxu1 }
 0x318   :  { %v5763_v62 = vpop.f32.mrf.mxu1 }
 0x31a   :  { %v5765_v35 = vpop.f32.mrf.mxu1 }
 0x31c   :  { %v2026_v36 = vpop.f32.mrf.mxu1 }
 0x31d   :  { %v5768_v18 = vadd.f32 %v2026_v36, %v5740_v45 }
 0x31e   :  { %v2030_v21 = vpop.f32.mrf.mxu1 }
 0x31f   :  { %v5770_v41 = vadd.f32 %v2030_v21, %v1905_v32 }
 0x320   :  { %v2032_v6 = vpop.f32.mrf.mxu1 }
 0x321   :  { %v5772_v19 = vadd.f32 %v2032_v6, %v1907_v40 }
 0x322   :  { %v2036_v54 = vpop.f32.mrf.mxu1 }
 0x323   :  { %v2037_v4 = vadd.f32 %v2036_v54, %v1911_v38 }
 0x324   :  { %v2038_v12 = vpop.f32.mrf.mxu1 }
 0x325   :  { %v2039_v2 = vadd.f32 %v2038_v12, %v1913_v33  ;;  %v2015_v12 = vadd.f32 %v2014_v25, %v5722_v43 }
 0x326   :  { %v2042_v34 = vpop.f32.mrf.mxu1 }
 0x327   :  { %v5774_v28 = vadd.f32 %v2042_v34, %v1917_v50 }
 0x328   :  { %v2044_v7 = vpop.f32.mrf.mxu1 }
 0x329   :  { %v5776_v59 = vadd.f32 %v2044_v7, %v1919_v27  ;;  %v2350_v27 = vpop.f32.mrf.mxu0 }
 0x32a   :  { %v2048_v9 = vpop.f32.mrf.mxu1 }
 0x32b   :  { %v5778_v14 = vadd.f32 %v2048_v9, %v1923_v17 }
 0x32c   :  { %v2050_v10 = vpop.f32.mrf.mxu1 }
 0x32d   :  { %v5780_v58 = vadd.f32 %v2050_v10, %v1925_v16  ;;  %v2354_v16 = vpop.f32.mrf.mxu0 }
 0x32e   :  { %v2054_v46 = vpop.f32.mrf.mxu1 }
 0x32f   :  { %v5782_v0 = vadd.f32 %v2054_v46, %v1929_v39 }
 0x330   :  { %v2056_v15 = vpop.f32.mrf.mxu1 }
 0x331   :  { %v5784_v60 = vadd.f32 %v2056_v15, %v1931_v61 }
 0x332   :  { %v2060_v48 = vpop.f32.mrf.mxu1 }
 0x333   :  { %v2061_v42 = vadd.f32 %v2060_v48, %v1935_v56  ;;  %v2356_v56 = vpop.f32.mrf.mxu0  ;;  %v2019_v48 = vadd.f32 %v5761_v55, %v5725_v51 }
 0x334   :  { %v2062_v22 = vpop.f32.mrf.mxu1 }
 0x335   :  { %v2063_v45 = vadd.f32 %v2062_v22, %v1937_v8 }
 0x336   :  { %v2066_v47 = vpop.f32.mrf.mxu1 }
 0x337   :  { %v2067_v32 = vadd.f32 %v2066_v47, %v1941_v3  ;;  %v2360_v3 = vpop.f32.mrf.mxu0 }
 0x338   :  { %v2068_v13 = vpop.f32.mrf.mxu1 }
 0x339   :  { %v2069_v37 = vadd.f32 %v2068_v13, %v1943_v31  ;;  %v2362_v6 = vpop.f32.mrf.mxu0 }
 0x33a   :  { %v2170_v5 = vpop.f32.mrf.mxu1 }
 0x33b   :  { %v2366_v34 = vpop.f32.mrf.mxu0 }
 0x33c   :  { %v2172_v53 = vpop.f32.mrf.mxu1 }
 0x33d   :  { %v2230_v10 = vadd.f32 %v2172_v53, %v2015_v12 }
 0x33e   :  { %v2176_v40 = vpop.f32.mrf.mxu1 }
 0x33f   :  { %v2231_v43 = vadd.f32 %v2176_v40, %v2019_v48  ;;  %v2408_v47 = vadd.f32 %v2350_v27, %v2230_v10 }
 0x340   :  { %v2178_v63 = vpop.f32.mrf.mxu1 }
 0x342   :  { %v2182_v49 = vpop.f32.mrf.mxu1 }
 0x344   :  { %v2184_v38 = vpop.f32.mrf.mxu1 }
 0x345   :  { %v2234_v55 = vadd.f32 %v2184_v38, %v5768_v18  ;;  %v5824_v18 = vld [vmem:[%s5959_s4] ss:$0 sm:$0xff] }
 0x346   :  { %v2188_v11 = vpop.f32.mrf.mxu1 }
 0x347   :  { %v2235_v12 = vadd.f32 %v2188_v11, %v5770_v41 }
 0x348   :  { %v2190_v29 = vpop.f32.mrf.mxu1 }
 0x349   :  { %v2413_v48 = vadd.f32 %v2366_v34, %v2235_v12 }
 0x34a   :  { %v2194_v44 = vpop.f32.mrf.mxu1 }
 0x34b   :  { %v5786_v33 = vadd.f32 %v2194_v44, %v2037_v4  ;;  %v2013_v4 = vadd.f32 %v2012_v30, %v5716_v20  ;;  %v2368_v20 = vpop.f32.mrf.mxu0 }
 0x34c   :  { %v2196_v50 = vpop.f32.mrf.mxu1 }
 0x34d   :  { %v5788_v24 = vadd.f32 %v2196_v50, %v2039_v2  ;;  %v2229_v9 = vadd.f32 %v2170_v5, %v2013_v4  ;;  %v2372_v13 = vpop.f32.mrf.mxu0 }
 0x34e   :  { %v5790_v23 = vpop.f32.mrf.mxu1 }
 0x350   :  { %v5792_v17 = vpop.f32.mrf.mxu1 }
 0x352   :  { %v5794_v39 = vpop.f32.mrf.mxu1 }
 0x354   :  { %v5796_v61 = vpop.f32.mrf.mxu1 }
 0x356   :  { %v5798_v8 = vpop.f32.mrf.mxu1 }
 0x358   :  { %v5800_v31 = vpop.f32.mrf.mxu1 }
 0x35a   :  { %v2218_v36 = vpop.f32.mrf.mxu1 }
 0x35b   :  { %v5802_v21 = vadd.f32 %v2218_v36, %v2061_v42  ;;  %v2021_v42 = vadd.f32 %v5763_v62, %v5731_v52  ;;  %v2409_v62 = vadd.f32 %v2354_v16, %v2231_v43  ;;  %v2374_v36 = vpop.f32.mrf.mxu0  ;;  %v2239_v43 = vadd.f32 %v5790_v23, %v5774_v28  ;;  %v2912_v23 = vld [vmem:[#allocation4 + $0x1e8] sm:$0xff] }
 0x35c   :  { %v2220_v54 = vpop.f32.mrf.mxu1  ;;  %v2416_v34 = vadd.f32 %v2374_v36, %v5788_v24 }
 0x35d   :  { %v5806_v2 = vadd.f32 %v2220_v54, %v2063_v45  ;;  %v2232_v25 = vadd.f32 %v2178_v63, %v2021_v42  ;;  %v2407_v45 = vadd.f32 %v2348_v26, %v2229_v9  ;;  %v2378_v26 = vpop.f32.mrf.mxu0 }
 0x35e   :  { %v2224_v7 = vpop.f32.mrf.mxu1 }
 0x35f   :  { %v5808_v46 = vadd.f32 %v2224_v7, %v2067_v32  ;;  %v2025_v32 = vadd.f32 %v5765_v35, %v5735_v1  ;;  %v2236_v1 = vadd.f32 %v2190_v29, %v5772_v19  ;;  %v2412_v7 = vadd.f32 %v2362_v6, %v2234_v55  ;;  %v2380_v9 = vpop.f32.mrf.mxu0 }
 0x360   :  { %v2226_v15 = vpop.f32.mrf.mxu1 }
 0x361   :  { %v5814_v22 = vadd.f32 %v2226_v15, %v2069_v37  ;;  %v2233_v50 = vadd.f32 %v2182_v49, %v2025_v32  ;;  %v2410_v37 = vadd.f32 %v2356_v56, %v2232_v25  ;;  %v2414_v41 = vadd.f32 %v2368_v20, %v2236_v1  ;;  %v2384_v11 = vpop.f32.mrf.mxu0  ;;  %v2913_v20 = vld [vmem:[#allocation4 + $0x1f0] sm:$0xff] }
 0x362   :  { %v2526_v30 = vpop.f32.mrf.mxu1  ;;  %v2415_v32 = vadd.f32 %v2372_v13, %v5786_v33  ;;  %v2241_v33 = vadd.f32 %v5794_v39, %v5778_v14  ;;  %v2242_v13 = vadd.f32 %v5796_v61, %v5780_v58  ;;  %v2826_v14 = vld [vmem:[#allocation4 + $0x178] sm:$0xff]  ;;  %v2243_v58 = vadd.f32 %v5798_v8, %v5782_v0  ;;  %v2825_v1 = vld [vmem:[#allocation4 + $0x170] sm:$0xff] }
 0x363   :  { %v2585_v53 = vadd.f32 %v2526_v30, %v2407_v45  ;;  %v2411_v27 = vadd.f32 %v2360_v3, %v2233_v50  ;;  %v2914_v30 = vld [vmem:[#allocation4 + $0x1f8] sm:$0xff]  ;;  %v2240_v45 = vadd.f32 %v5792_v17, %v5776_v59  ;;  %v2417_v17 = vadd.f32 %v2378_v26, %v2239_v43 }
 0x364   :  { %v2528_v5 = vpop.f32.mrf.mxu1  ;;  %v2910_v39 = vld [vmem:[#allocation4 + $0x1d8] sm:$0xff]  ;;  %v2419_v61 = vadd.f32 %v2384_v11, %v2241_v33  ;;  %v2819_v33 = vld [vmem:[#allocation4 + $0x140] sm:$0xff] }
 0x365   :  { %v2586_v44 = vadd.f32 %v2528_v5, %v2408_v47  ;;  %v2386_v5 = vpop.f32.mrf.mxu0 }
 0x366   :  { %v2532_v51 = vpop.f32.mrf.mxu1  ;;  %v2420_v12 = vadd.f32 %v2386_v5, %v2242_v13 }
 0x367   :  { %v2605_v52 = vmax.f32 %v2585_v53, %v2586_v44  ;;  %v2587_v40 = vadd.f32 %v2532_v51, %v2409_v62  ;;  %v2390_v59 = vpop.f32.mrf.mxu0  ;;  %v2911_v62 = vld [vmem:[#allocation4 + $0x1e0] sm:$0xff] }
 0x368   :  { %v2534_v54 = vpop.f32.mrf.mxu1 }
 0x369   :  { %v2588_v63 = vadd.f32 %v2534_v54, %v2410_v37 }
 0x36a   :  { %v2538_v4 = vpop.f32.mrf.mxu1 }
 0x36b   :  { %v2606_v35 = vmax.f32 %v2587_v40, %v2588_v63  ;;  %v2589_v16 = vadd.f32 %v2538_v4, %v2411_v27  ;;  %v2392_v63 = vpop.f32.mrf.mxu0  ;;  %v2244_v27 = vadd.f32 %v5800_v31, %v5784_v60  ;;  %v2824_v60 = vld [vmem:[#allocation4 + $0x168] sm:$0xff] }
 0x36c   :  { %v2540_v49 = vpop.f32.mrf.mxu1  ;;  %v2908_v31 = vld [vmem:[#allocation4 + $0x1c8] sm:$0xff] }
 0x36d   :  { %v2615_v38 = vmax.f32 %v2605_v52, %v2606_v35  ;;  %v2590_v56 = vadd.f32 %v2540_v49, %v2412_v7  ;;  %v2418_v52 = vadd.f32 %v2380_v9, %v2240_v45  ;;  %v2909_v35 = vld [vmem:[#allocation4 + $0x1d0] sm:$0xff]  ;;  %v2396_v7 = vpop.f32.mrf.mxu0  ;;  %v2421_v9 = vadd.f32 %v2390_v59, %v2243_v58 }
 0x36e   :  { %v2544_v10 = vpop.f32.mrf.mxu1 }
 0x36f   :  { %v2627_v3 = vadd.f32 %v5824_v18, %v2615_v38  ;;  %v2607_v15 = vmax.f32 %v2589_v16, %v2590_v56  ;;  %v2591_v6 = vadd.f32 %v2544_v10, %v2413_v48  ;;  %v2422_v10 = vadd.f32 %v2392_v63, %v2244_v27  ;;  %v2398_v48 = vpop.f32.mrf.mxu0  ;;  %v2899_v63 = vld [vmem:[#allocation4 + $0x180] sm:$0xff] }
 0x370   :  { %v2546_v19 = vpop.f32.mrf.mxu1  ;;  %v2424_v45 = vadd.f32 %v2398_v48, %v5806_v2  ;;  %v2987_v48 = vld [vmem:[#allocation4 + $0x200] sm:$0xff] }
 0x371   :  { %v2632_v29 = vmax.f32 %v2627_v3, 0.0  ;;  %v2592_v42 = vadd.f32 %v2546_v19, %v2414_v41  ;;  %v2823_v3 = vld [vmem:[#allocation4 + $0x160] sm:$0xff] }
 0x372   :  { %v2550_v25 = vpop.f32.mrf.mxu1 }
 0x373   :  { %v2608_v47 = vmax.f32 %v2591_v6, %v2592_v42  ;;  %3706 = vmatmul.mubr.f32.vlgmr.msra.gmra.mxu1 %v2632_v29  ;;  %v2593_v50 = vadd.f32 %v2550_v25, %v2415_v32  ;;  %v2822_v29 = vld [vmem:[#allocation4 + $0x158] sm:$0xff]  ;;  %v2402_v42 = vpop.f32.mrf.mxu0  ;;  %v2423_v25 = vadd.f32 %v2396_v7, %v5802_v21  ;;  %v2905_v32 = vld [vmem:[#allocation4 + $0x1b0] sm:$0xff]  ;;  %v2904_v21 = vld [vmem:[#allocation4 + $0x1a8] sm:$0xff] }
 0x374   :  { %3744 = vmatpush3.msra.mxu1 %v2914_v30  ;;  %v2552_v53 = vpop.f32.mrf.mxu1  ;;  %3775 = vmatprep.mubr.msk.f32.mxu1 %vm3989_vm1, %v6084_v57  ;;  %v2906_v6 = vld [vmem:[#allocation4 + $0x1b8] sm:$0xff]  ;;  %v2425_v2 = vadd.f32 %v2402_v42, %v5808_v46  ;;  %v3000_v7 = vld [vmem:[#allocation4 + $0x268] sm:$0xff] }
 0x375   :  { %v2616_v44 = vmax.f32 %v2607_v15, %v2608_v47  ;;  %v2594_v28 = vadd.f32 %v2552_v53, %v2416_v34  ;;  %3745 = vmatprep.subr.mxu1 %v6084_v57  ;;  %v2907_v15 = vld [vmem:[#allocation4 + $0x1c0] sm:$0xff]  ;;  %v2821_v47 = vld [vmem:[#allocation4 + $0x150] sm:$0xff]  ;;  %v3094_v42 = vld [vmem:[#allocation6 + $0x58] sm:$0xff] }
 0x376   :  { %3746 = vmatpush3.msra.mxu1 %v2913_v20  ;;  %v2556_v24 = vpop.f32.mrf.mxu1 }
 0x377   :  { %v2628_v51 = vadd.f32 %v5824_v18, %v2616_v44  ;;  %v2609_v55 = vmax.f32 %v2593_v50, %v2594_v28  ;;  %3747 = vmatprep.subr.mxu1 %v6084_v57  ;;  %v2595_v54 = vadd.f32 %v2556_v24, %v2417_v17  ;;  %v2820_v44 = vld [vmem:[#allocation4 + $0x148] sm:$0xff]  ;;  %v2404_v50 = vpop.f32.mrf.mxu0  ;;  %v2903_v17 = vld [vmem:[#allocation4 + $0x1a0] sm:$0xff] }
 0x378   :  { %3748 = vmatpush3.msra.mxu1 %v2912_v23  ;;  %v2558_v37 = vpop.f32.mrf.mxu1  ;;  %v2426_v59 = vadd.f32 %v2404_v50, %v5814_v22  ;;  %v2817_v22 = vld [vmem:[#allocation4 + $0x130] sm:$0xff] }
 0x379   :  { %v2633_v36 = vmax.f32 %v2628_v51, 0.0  ;;  %v2596_v40 = vadd.f32 %v2558_v37, %v2418_v52  ;;  %3749 = vmatprep.subr.mxu1 %v6084_v57  ;;  %v2902_v52 = vld [vmem:[#allocation4 + $0x198] sm:$0xff]  ;;  %v3191_v50 = vld [vmem:[#allocation7 + $0x70] sm:$0xff] }
 0x37a   :  { %3750 = vmatpush3.msra.mxu1 %v2911_v62  ;;  %v2562_v26 = vpop.f32.mrf.mxu1  ;;  %v2901_v62 = vld [vmem:[#allocation4 + $0x190] sm:$0xff] }
 0x37b   :  { %v2610_v4 = vmax.f32 %v2595_v54, %v2596_v40  ;;  %3751 = vmatprep.subr.mxu1 %v6084_v57  ;;  %3671 = vmatmul.mubr.f32.vlgmr.msra.gmra.mxu0 %v2633_v36  ;;  %v2597_v0 = vadd.f32 %v2562_v26, %v2419_v61  ;;  %v2816_v54 = vld [vmem:[#allocation4 + $0x128] sm:$0xff]  ;;  %v2814_v61 = vld [vmem:[#allocation4 + $0x118] sm:$0xff]  ;;  %v2813_v26 = vld [vmem:[#allocation4 + $0x110] sm:$0xff] }
 0x37c   :  { %3709 = vmatpush3.msra.mxu0 %v2826_v14  ;;  %3752 = vmatpush3.msra.mxu1 %v2910_v39  ;;  %v2564_v49 = vpop.f32.mrf.mxu1  ;;  %v2900_v40 = vld [vmem:[#allocation4 + $0x188] sm:$0xff]  ;;  %v2815_v39 = vld [vmem:[#allocation4 + $0x120] sm:$0xff] }
 0x37d   :  { %v5848_v38 = vmax.f32 %v2609_v55, %v2610_v4  ;;  %v2598_v8 = vadd.f32 %v2564_v49, %v2420_v12  ;;  %3710 = vmatprep.subr.mxu0 %v6084_v57  ;;  %3753 = vmatprep.subr.mxu1 %v6084_v57  ;;  %v2818_v55 = vld [vmem:[#allocation4 + $0x138] sm:$0xff]  ;;  %v2812_v4 = vld [vmem:[#allocation4 + $0x108] sm:$0xff]  ;;  %v2811_v12 = vld [vmem:[#allocation4 + $0x100] sm:$0xff] }
 0x37e   :  { %3711 = vmatpush3.msra.mxu0 %v2825_v1  ;;  %3754 = vmatpush3.msra.mxu1 %v2909_v35  ;;  %v2568_v16 = vpop.f32.mrf.mxu1  ;;  %v3002_v35 = vld [vmem:[#allocation4 + $0x278] sm:$0xff]  ;;  %v2999_v49 = vld [vmem:[#allocation4 + $0x260] sm:$0xff] }
 0x37f   :  { %v2611_v56 = vmax.f32 %v2597_v0, %v2598_v8  ;;  %3712 = vmatprep.subr.mxu0 %v6084_v57  ;;  %3755 = vmatprep.subr.mxu1 %v6084_v57  ;;  %v2599_v11 = vadd.f32 %v2568_v16, %v2421_v9  ;;  %v2629_v27 = vadd.f32 %v5824_v18, %v5848_v38  ;;  %v2998_v38 = vld [vmem:[#allocation4 + $0x258] sm:$0xff]  ;;  %v2997_v0 = vld [vmem:[#allocation4 + $0x250] sm:$0xff]  ;;  %v2996_v8 = vld [vmem:[#allocation4 + $0x248] sm:$0xff] }
 0x380   :  { %3713 = vmatpush3.msra.mxu0 %v2824_v60  ;;  %3756 = vmatpush3.msra.mxu1 %v2908_v31  ;;  %v2570_v41 = vpop.f32.mrf.mxu1  ;;  %v2995_v60 = vld [vmem:[#allocation4 + $0x240] sm:$0xff]  ;;  %v2994_v31 = vld [vmem:[#allocation4 + $0x238] sm:$0xff]  ;;  %v2993_v16 = vld [vmem:[#allocation4 + $0x230] sm:$0xff] }
 0x381   :  { %v2600_v19 = vadd.f32 %v2570_v41, %v2422_v10  ;;  %3714 = vmatprep.subr.mxu0 %v6084_v57  ;;  %3757 = vmatprep.subr.mxu1 %v6084_v57  ;;  %v2634_v1 = vmax.f32 %v2629_v27, 0.0  ;;  %v2991_v9 = vld [vmem:[#allocation4 + $0x220] sm:$0xff]  ;;  %v2990_v10 = vld [vmem:[#allocation4 + $0x218] sm:$0xff] }
 0x382   :  { %3715 = vmatpush3.msra.mxu0 %v2823_v3  ;;  %3758 = vmatpush3.msra.mxu1 %v2907_v15  ;;  %v2574_v30 = vpop.f32.mrf.mxu1  ;;  %v2989_v3 = vld [vmem:[#allocation4 + $0x210] sm:$0xff]  ;;  %v2988_v15 = vld [vmem:[#allocation4 + $0x208] sm:$0xff] }
 0x383   :  { %v2612_v43 = vmax.f32 %v2599_v11, %v2600_v19  ;;  %3716 = vmatprep.subr.mxu0 %v6084_v57  ;;  %3759 = vmatprep.subr.mxu1 %v6084_v57  ;;  %v2601_v5 = vadd.f32 %v2574_v30, %v2423_v25  ;;  %v3098_v11 = vld [vmem:[#allocation6 + $0x78] sm:$0xff]  ;;  %v3097_v19 = vld [vmem:[#allocation6 + $0x70] sm:$0xff]  ;;  %v3091_v25 = vld [vmem:[#allocation6 + $0x40] sm:$0xff] }
 0x384   :  { %3717 = vmatpush3.msra.mxu0 %v2822_v29  ;;  %3760 = vmatpush3.msra.mxu1 %v2906_v6  ;;  %v2576_v34 = vpop.f32.mrf.mxu1  ;;  %v3096_v29 = vld [vmem:[#allocation6 + $0x68] sm:$0xff]  ;;  %v3095_v6 = vld [vmem:[#allocation6 + $0x60] sm:$0xff]  ;;  %v3093_v30 = vld [vmem:[#allocation6 + $0x50] sm:$0xff] }
 0x385   :  { %v2618_v20 = vmax.f32 %v2611_v56, %v2612_v43  ;;  %v2602_v53 = vadd.f32 %v2576_v34, %v2424_v45  ;;  %3718 = vmatprep.subr.mxu0 %v6084_v57  ;;  %3761 = vmatprep.subr.mxu1 %v6084_v57  ;;  %v2992_v56 = vld [vmem:[#allocation4 + $0x228] sm:$0xff]  ;;  %v3090_v45 = vld [vmem:[#allocation6 + $0x38] sm:$0xff]  ;;  %v3087_v34 = vld [vmem:[#allocation6 + $0x20] sm:$0xff] }
 0x386   :  { %3719 = vmatpush3.msra.mxu0 %v2821_v47  ;;  %3762 = vmatpush3.msra.mxu1 %v2905_v32  ;;  %v2580_v28 = vpop.f32.mrf.mxu1  ;;  %v3092_v43 = vld [vmem:[#allocation6 + $0x48] sm:$0xff]  ;;  %v3089_v47 = vld [vmem:[#allocation6 + $0x30] sm:$0xff] }
 0x387   :  { %v2613_v23 = vmax.f32 %v2601_v5, %v2602_v53  ;;  %3720 = vmatprep.subr.mxu0 %v6084_v57  ;;  %3763 = vmatprep.subr.mxu1 %v6084_v57  ;;  %v2603_v13 = vadd.f32 %v2580_v28, %v2425_v2  ;;  %v2630_v37 = vadd.f32 %v5824_v18, %v2618_v20  ;;  %v3088_v32 = vld [vmem:[#allocation6 + $0x28] sm:$0xff]  ;;  %v3086_v20 = vld [vmem:[#allocation6 + $0x18] sm:$0xff]  ;;  %v3085_v5 = vld [vmem:[#allocation6 + $0x10] sm:$0xff] }
 0x388   :  { %3721 = vmatpush3.msra.mxu0 %v2820_v44  ;;  %3764 = vmatpush3.msra.mxu1 %v2904_v21  ;;  %v2582_v24 = vpop.f32.mrf.mxu1  ;;  %v3084_v53 = vld [vmem:[#allocation6 + $0x8] sm:$0xff]  ;;  %v3083_v44 = vld [vmem:[#allocation6] sm:$0xff]  ;;  %v3192_v21 = vld [vmem:[#allocation7 + $0x78] sm:$0xff] }
 0x389   :  { %v2604_v51 = vadd.f32 %v2582_v24, %v2426_v59  ;;  %3722 = vmatprep.subr.mxu0 %v6084_v57  ;;  %3765 = vmatprep.subr.mxu1 %v6084_v57  ;;  %v2635_v58 = vmax.f32 %v2630_v37, 0.0  ;;  %v3190_v28 = vld [vmem:[#allocation7 + $0x68] sm:$0xff]  ;;  %v3188_v2 = vld [vmem:[#allocation7 + $0x58] sm:$0xff]  ;;  %v3187_v59 = vld [vmem:[#allocation7 + $0x50] sm:$0xff] }
 0x38a   :  { %3723 = vmatpush3.msra.mxu0 %v2819_v33  ;;  %3766 = vmatpush3.msra.mxu1 %v2903_v17  ;;  %v3186_v33 = vld [vmem:[#allocation7 + $0x48] sm:$0xff]  ;;  %v3185_v17 = vld [vmem:[#allocation7 + $0x40] sm:$0xff]  ;;  %v3184_v24 = vld [vmem:[#allocation7 + $0x38] sm:$0xff] }
 0x38b   :  { %v2614_v46 = vmax.f32 %v2603_v13, %v2604_v51  ;;  %3724 = vmatprep.subr.mxu0 %v6084_v57  ;;  %3767 = vmatprep.subr.mxu1 %v6084_v57  ;;  %v3183_v13 = vld [vmem:[#allocation7 + $0x30] sm:$0xff]  ;;  %v3182_v51 = vld [vmem:[#allocation7 + $0x28] sm:$0xff] }
 0x38c   :  { %3725 = vmatpush3.msra.mxu0 %v2818_v55  ;;  %3768 = vmatpush3.msra.mxu1 %v2902_v52  ;;  %v3181_v55 = vld [vmem:[#allocation7 + $0x20] sm:$0xff]  ;;  %v3180_v52 = vld [vmem:[#allocation7 + $0x18] sm:$0xff] }
 0x38d   :  { %v2619_v36 = vmax.f32 %v2613_v23, %v2614_v46  ;;  %3726 = vmatprep.subr.mxu0 %v6084_v57  ;;  %3769 = vmatprep.subr.mxu1 %v6084_v57  ;;  %v3189_v23 = vld [vmem:[#allocation7 + $0x60] sm:$0xff] }
 0x38e   :  { %3727 = vmatpush3.msra.mxu0 %v2817_v22  ;;  %3770 = vmatpush3.msra.mxu1 %v2901_v62 }
 0x38f   :  { %v5874_v14 = vadd.f32 %v5824_v18, %v2619_v36  ;;  %3728 = vmatprep.subr.mxu0 %v6084_v57  ;;  %3771 = vmatprep.subr.mxu1 %v6084_v57  ;;  %v3001_v18 = vld [vmem:[#allocation4 + $0x270] sm:$0xff] }
 0x390   :  { %3729 = vmatpush3.msra.mxu0 %v2816_v54  ;;  %3772 = vmatpush3.msra.mxu1 %v2900_v40 }
 0x391   :  { %3730 = vmatprep.subr.mxu0 %v6084_v57  ;;  %3773 = vmatprep.subr.mxu1 %v6084_v57  ;;  %v2636_v41 = vmax.f32 %v5874_v14, 0.0 }
 0x392   :  { %3731 = vmatpush3.msra.mxu0 %v2815_v39  ;;  %3774 = vmatpush3.msra.mxu1 %v2899_v63 }
 0x393   :  { %3732 = vmatprep.subr.mxu0 %v6084_v57  ;;  %3776 = vmatmul.mubr.f32.vlgmr.msra.gmra.mxu1 %v2635_v58 }
 0x394   :  { %3733 = vmatpush3.msra.mxu0 %v2814_v61  ;;  %3740 = vmatprep.mubr.msk.f32.mxu0 %vm3989_vm1, %v6084_v57 }
 0x395   :  { %3734 = vmatprep.subr.mxu0 %v6084_v57  ;;  %3813 = vmatprep.subr.mxu1 %v6084_v57 }
 0x396   :  { %3735 = vmatpush3.msra.mxu0 %v2813_v26  ;;  %3845 = vmatprep.mubr.msk.f32.mxu1 %vm3989_vm1, %v6084_v57  ;;  %v3516_v26 = vld [vmem:[%s5961_s6] ss:$0 sm:$0xff] }
 0x397   :  { %3736 = vmatprep.subr.mxu0 %v6084_v57  ;;  %3814 = vmatpush3.msra.mxu1 %v3098_v11 }
 0x398   :  { %3737 = vmatpush3.msra.mxu0 %v2812_v4  ;;  %3815 = vmatprep.subr.mxu1 %v6084_v57 }
 0x399   :  { %3738 = vmatprep.subr.mxu0 %v6084_v57  ;;  %3816 = vmatpush3.msra.mxu1 %v3097_v19 }
 0x39a   :  { %3739 = vmatpush3.msra.mxu0 %v2811_v12  ;;  %3817 = vmatprep.subr.mxu1 %v6084_v57 }
 0x39b   :  { %3741 = vmatmul.mubr.f32.vlgmr.msra.gmra.mxu0 %v2634_v1  ;;  %3778 = vmatprep.subr.mxu0 %v6084_v57 }
 0x39c   :  { %3779 = vmatpush3.msra.mxu0 %v3002_v35  ;;  %3810 = vmatprep.mubr.msk.f32.mxu0 %vm3989_vm1, %v6084_v57  ;;  %v3179_v35 = vld [vmem:[#allocation7 + $0x10] sm:$0xff] }
 0x39d   :  { %3780 = vmatprep.subr.mxu0 %v6084_v57  ;;  %3818 = vmatpush3.msra.mxu1 %v3096_v29 }
 0x39e   :  { %3781 = vmatpush3.msra.mxu0 %v3001_v18  ;;  %3819 = vmatprep.subr.mxu1 %v6084_v57  ;;  %v3178_v18 = vld [vmem:[#allocation7 + $0x8] sm:$0xff] }
 0x39f   :  { %3782 = vmatprep.subr.mxu0 %v6084_v57  ;;  %3820 = vmatpush3.msra.mxu1 %v3095_v6 }
 0x3a0   :  { %3783 = vmatpush3.msra.mxu0 %v3000_v7  ;;  %3821 = vmatprep.subr.mxu1 %v6084_v57  ;;  %v3177_v7 = vld [vmem:[#allocation7] sm:$0xff] }
 0x3a1   :  { %3784 = vmatprep.subr.mxu0 %v6084_v57  ;;  %3822 = vmatpush3.msra.mxu1 %v3094_v42 }
 0x3a2   :  { %3785 = vmatpush3.msra.mxu0 %v2999_v49  ;;  %3823 = vmatprep.subr.mxu1 %v6084_v57  ;;  %v3517_v49 = vld [vmem:[%s5963_s8] ss:$0 sm:$0xff] }
 0x3a3   :  { %3786 = vmatprep.subr.mxu0 %v6084_v57  ;;  %3824 = vmatpush3.msra.mxu1 %v3093_v30 }
 0x3a4   :  { %3787 = vmatpush3.msra.mxu0 %v2998_v38  ;;  %3825 = vmatprep.subr.mxu1 %v6084_v57 }
 0x3a5   :  { %3788 = vmatprep.subr.mxu0 %v6084_v57  ;;  %3826 = vmatpush3.msra.mxu1 %v3092_v43 }
 0x3a6   :  { %3789 = vmatpush3.msra.mxu0 %v2997_v0  ;;  %3827 = vmatprep.subr.mxu1 %v6084_v57 }
 0x3a7   :  { %3790 = vmatprep.subr.mxu0 %v6084_v57  ;;  %3828 = vmatpush3.msra.mxu1 %v3091_v25 }
 0x3a8   :  { %3791 = vmatpush3.msra.mxu0 %v2996_v8  ;;  %3829 = vmatprep.subr.mxu1 %v6084_v57 }
 0x3a9   :  { %3792 = vmatprep.subr.mxu0 %v6084_v57  ;;  %3830 = vmatpush3.msra.mxu1 %v3090_v45 }
 0x3aa   :  { %3793 = vmatpush3.msra.mxu0 %v2995_v60  ;;  %3831 = vmatprep.subr.mxu1 %v6084_v57 }
 0x3ab   :  { %3794 = vmatprep.subr.mxu0 %v6084_v57  ;;  %3832 = vmatpush3.msra.mxu1 %v3089_v47 }
 0x3ac   :  { %3795 = vmatpush3.msra.mxu0 %v2994_v31  ;;  %3833 = vmatprep.subr.mxu1 %v6084_v57  ;;  %v3518_v31 = vld [vmem:[%s5965_s10] ss:$0 sm:$0xff] }
 0x3ad   :  { %3796 = vmatprep.subr.mxu0 %v6084_v57  ;;  %3834 = vmatpush3.msra.mxu1 %v3088_v32 }
 0x3ae   :  { %3797 = vmatpush3.msra.mxu0 %v2993_v16  ;;  %3835 = vmatprep.subr.mxu1 %v6084_v57 }
 0x3af   :  { %3798 = vmatprep.subr.mxu0 %v6084_v57  ;;  %3836 = vmatpush3.msra.mxu1 %v3087_v34 }
 0x3b0   :  { %3799 = vmatpush3.msra.mxu0 %v2992_v56  ;;  %3837 = vmatprep.subr.mxu1 %v6084_v57 }
 0x3b1   :  { %3800 = vmatprep.subr.mxu0 %v6084_v57  ;;  %3838 = vmatpush3.msra.mxu1 %v3086_v20 }
 0x3b2   :  { %3801 = vmatpush3.msra.mxu0 %v2991_v9  ;;  %3839 = vmatprep.subr.mxu1 %v6084_v57 }
 0x3b3   :  { %3802 = vmatprep.subr.mxu0 %v6084_v57  ;;  %3840 = vmatpush3.msra.mxu1 %v3085_v5 }
 0x3b4   :  { %3803 = vmatpush3.msra.mxu0 %v2990_v10  ;;  %3841 = vmatprep.subr.mxu1 %v6084_v57 }
 0x3b5   :  { %3804 = vmatprep.subr.mxu0 %v6084_v57  ;;  %3842 = vmatpush3.msra.mxu1 %v3084_v53 }
 0x3b6   :  { %3805 = vmatpush3.msra.mxu0 %v2989_v3  ;;  %3843 = vmatprep.subr.mxu1 %v6084_v57 }
 0x3b7   :  { %3806 = vmatprep.subr.mxu0 %v6084_v57  ;;  %3844 = vmatpush3.msra.mxu1 %v3083_v44 }
 0x3b8   :  { %3807 = vmatpush3.msra.mxu0 %v2988_v15 }
 0x3b9   :  { %3808 = vmatprep.subr.mxu0 %v6084_v57 }
 0x3ba   :  { %3809 = vmatpush3.msra.mxu0 %v2987_v48 }
 0x3bb   :  { %3811 = vmatmul.mubr.f32.vlgmr.msra.gmra.mxu0 %v2636_v41  ;;  %3848 = vmatprep.subr.mxu0 %v6084_v57 }
 0x3bc   :  { %3880 = vmatprep.mubr.msk.f32.mxu0 %vm3989_vm1, %v6084_v57  ;;  %3849 = vmatpush3.msra.mxu0 %v3192_v21 }
 0x3bd   :  { %3850 = vmatprep.subr.mxu0 %v6084_v57 }
 0x3be   :  { %3851 = vmatpush3.msra.mxu0 %v3191_v50 }
 0x3bf   :  { %3852 = vmatprep.subr.mxu0 %v6084_v57 }
 0x3c0   :  { %3853 = vmatpush3.msra.mxu0 %v3190_v28 }
 0x3c1   :  { %3854 = vmatprep.subr.mxu0 %v6084_v57 }
 0x3c2   :  { %3855 = vmatpush3.msra.mxu0 %v3189_v23 }
 0x3c3   :  { %3856 = vmatprep.subr.mxu0 %v6084_v57 }
 0x3c4   :  { %3857 = vmatpush3.msra.mxu0 %v3188_v2 }
 0x3c5   :  { %3858 = vmatprep.subr.mxu0 %v6084_v57 }
 0x3c6   :  { %3859 = vmatpush3.msra.mxu0 %v3187_v59 }
 0x3c7   :  { %3860 = vmatprep.subr.mxu0 %v6084_v57 }
 0x3c8   :  { %3861 = vmatpush3.msra.mxu0 %v3186_v33 }
 0x3c9   :  { %3862 = vmatprep.subr.mxu0 %v6084_v57 }
 0x3ca   :  { %3863 = vmatpush3.msra.mxu0 %v3185_v17 }
 0x3cb   :  { %3864 = vmatprep.subr.mxu0 %v6084_v57 }
 0x3cc   :  { %3865 = vmatpush3.msra.mxu0 %v3184_v24 }
 0x3cd   :  { %3866 = vmatprep.subr.mxu0 %v6084_v57 }
 0x3ce   :  { %3867 = vmatpush3.msra.mxu0 %v3183_v13 }
 0x3cf   :  { %3868 = vmatprep.subr.mxu0 %v6084_v57 }
 0x3d0   :  { %3869 = vmatpush3.msra.mxu0 %v3182_v51 }
 0x3d1   :  { %3870 = vmatprep.subr.mxu0 %v6084_v57 }
 0x3d2   :  { %3871 = vmatpush3.msra.mxu0 %v3181_v55 }
 0x3d3   :  { %3872 = vmatprep.subr.mxu0 %v6084_v57 }
 0x3d4   :  { %3873 = vmatpush3.msra.mxu0 %v3180_v52 }
 0x3d5   :  { %3874 = vmatprep.subr.mxu0 %v6084_v57 }
 0x3d6   :  { %3875 = vmatpush3.msra.mxu0 %v3179_v35 }
 0x3d7   :  { %3876 = vmatprep.subr.mxu0 %v6084_v57 }
 0x3d8   :  { %3877 = vmatpush3.msra.mxu0 %v3178_v18 }
 0x3d9   :  { %3878 = vmatprep.subr.mxu0 %v6084_v57 }
 0x3da   :  { %3879 = vmatpush3.msra.mxu0 %v3177_v7 }
 0x433   :  { %v2806_v46 = vpop.f32.mrf.mxu1 }
 0x435   :  { %v3707_v22 = vpop.f32.mrf.mxu1 }
 0x43b   :  { %v2736_v62 = vpop.f32.mrf.mxu0 }
 0x43c   :  { %v2807_v39 = vadd.f32 %v2806_v46, %v2736_v62 }
 0x43d   :  { %v3672_v37 = vpop.f32.mrf.mxu0 }
 0x453   :  { %v2981_v36 = vpop.f32.mrf.mxu1 }
 0x455   :  { %v3777_v54 = vpop.f32.mrf.mxu1 }
 0x45b   :  { %v2893_v40 = vpop.f32.mrf.mxu0 }
 0x45c   :  { %v2897_v63 = vadd.f32 %v2893_v40, %v2807_v39 }
 0x45d   :  { %v3742_v14 = vpop.f32.mrf.mxu0 }
 0x45e   :  { %v2985_v58 = vadd.f32 %v2981_v36, %v2897_v63 }
 0x47b   :  { %v3069_v61 = vpop.f32.mrf.mxu0 }
 0x47c   :  { %v3073_v27 = vadd.f32 %v3069_v61, %v2985_v58 }
 0x47d   :  { %v3812_v4 = vpop.f32.mrf.mxu0 }
 0x47e   :  { %v3081_v12 = vadd.f32 %v3516_v26, %v3073_v27 }
 0x480   :  { %v3082_v1 = vmax.f32 %v3081_v12, 0.0 }
 0x482   :  { %3846 = vmatmul.mubr.f32.vlgmr.msra.gmra.mxu1 %v3082_v1 }
 0x542   :  { %v3172_v38 = vpop.f32.mrf.mxu1 }
 0x543   :  { %v3173_v0 = vadd.f32 %v3517_v49, %v3172_v38 }
 0x544   :  { %v3847_v8 = vpop.f32.mrf.mxu1 }
 0x545   :  { %v3176_v60 = vmax.f32 %v3173_v0, 0.0 }
 0x547   :  { %3881 = vmatmul.mubr.f32.vlgmr.msra.gmra.mxu0 %v3176_v60 }
 0x607   :  { %v3266_v16 = vpop.f32.mrf.mxu0 }
 0x608   :  { %v3267_v56 = vadd.f32 %v3518_v31, %v3266_v16 }
 0x609   :  { %v3882_v9 = vpop.f32.mrf.mxu0 }
 0x60a   :  { %3270 = vst [vmem:[%s5966_s11] sm:$0xff] %v3267_v56 }
 0x60b   :  { %3275 = vsyncpa [#allocation3], 1 }
 0x60c   :  { %3276 = vsyncpa [#allocation5], 1 }
 0x60d   :  { %3277 = vsyncpa [#allocation8], 1 }

</bundles_post_ra>
